<compile_context>
chip_gen: v6e
topology: v6e:2x2x1
jax: 0.10.0
libtpu: 0.0.40
codegen_flags: <defaults>
</compile_context>

<pallas_src>
import functools

import jax
import jax.numpy as jnp
from jax import lax
from jax.experimental import pallas as pl
from jax.experimental.pallas import tpu as pltpu

PRIMITIVES = ('none', 'skip_connect', 'max_pool_3x3', 'avg_pool_3x3',
              'sep_conv_3x3', 'dil_conv_3x3')
NUM_OPS = len(PRIMITIVES)
BN_EPS = 1e-5


# ----------------------------- in-kernel helpers -----------------------------

def _shift_lanes(v, delta):
    """y[..., q] = v[..., q + delta] (cyclic over the flattened spatial lane axis).

    Callers mask out-of-window positions, so wrap-around (row / image boundary
    crossings) never leaks into the result."""
    L = v.shape[-1]
    s = (-delta) % L
    if s == 0:
        return v
    return pltpu.roll(v, shift=s, axis=v.ndim - 1)


def _depthwise3x3(p, dw_ref, dilation, rowv, colv, W):
    """Conv2d(C, C, 3, stride=1, padding=dilation, dilation=dilation, groups=C,
    bias=False), channel-batched.

    p: (C, N*H*W).  dw_ref: VMEM (9, C, 1) with dw_ref[a*3+b, c, 0] == weight[c,0,a,b].
    rowv/colv: precomputed per-offset validity vectors of shape (1, N*H*W)."""
    acc = None
    for a in range(3):
        for b in range(3):
            dy, dx = (a - 1) * dilation, (b - 1) * dilation
            z = jnp.where(rowv[dy] & colv[dx], _shift_lanes(p, dy * W + dx), 0.0)
            t = dw_ref[a * 3 + b] * z                       # (C,1) * (C,NHW)
            acc = t if acc is None else acc + t
    return acc


def _pointwise1x1(p, pwt_ref):
    """Conv2d(C, C, 1, bias=False): out[d] = sum_c pw[d, c] * p[c].

    pwt_ref: VMEM (C_in, C_out, 1) with pwt_ref[c, d, 0] == pw[d, c].
    Kept as VPU broadcast outer-product FMAs (C=4 is far below MXU width)."""
    C = p.shape[0]
    acc = None
    for c in range(C):
        t = pwt_ref[c] * p[c:c + 1, :]                      # (C,1) * (1,NHW)
        acc = t if acc is None else acc + t
    return acc


def _batchnorm(p, inv_count):
    """BatchNorm2d(C, affine=False), training mode: per-channel (= per-row) batch
    statistics over (N, H, W) (= all lanes), biased variance, eps=1e-5.
    Two-pass form kept to match reference numerics exactly."""
    mean = jnp.sum(p, axis=1, keepdims=True) * inv_count    # (C, 1)
    cen = p - mean
    var = jnp.sum(cen * cen, axis=1, keepdims=True) * inv_count
    return cen * lax.rsqrt(var + BN_EPS)


# --------------------------------- the kernel ---------------------------------

def mixed_op_kernel(w_ref, x_ref, dw1_ref, pw1_ref, dw2_ref, pw2_ref,
                    dwd_ref, pwd_ref, out_ref, *, H, W):
    x = x_ref[...]                                          # (C, N*H*W) f32
    C, NHW = x.shape
    HW = H * W
    inv_count = jnp.float32(1.0 / NHW)

    # ---- hoisted spatial index vectors & per-offset validity masks (1, NHW) ----
    q = lax.broadcasted_iota(jnp.int32, (1, NHW), 1)
    if (HW & (HW - 1)) == 0 and (W & (W - 1)) == 0:
        # powers of two: pure bitwise ops, no integer div/mod on the VPU
        pos = jnp.bitwise_and(q, HW - 1)
        ri = jnp.right_shift(pos, W.bit_length() - 1)
        ci = jnp.bitwise_and(pos, W - 1)
    else:
        pos = q % HW
        ri = pos // W
        ci = pos % W
    offs = (-2, -1, 0, 1, 2)
    rowv = {o: (ri + o >= 0) & (ri + o < H) for o in offs}
    colv = {o: (ci + o >= 0) & (ci + o < W) for o in offs}

    # avg-pool valid-neighbor count (count_include_pad=False), computed once;
    # exact divide (values in {4,6,9}) — approx reciprocal would risk tolerance.
    rc = 1.0 + (ri > 0).astype(jnp.float32) + (ri < H - 1).astype(jnp.float32)
    cc = 1.0 + (ci > 0).astype(jnp.float32) + (ci < W - 1).astype(jnp.float32)
    inv_cnt = 1.0 / (rc * cc)                               # (1, NHW)

    # ---- shared dilation-1 neighborhood of x: max-pool, avg-pool, first dw conv ----
    avg_sum = None
    max_acc = None
    dw1_acc = None
    for a in range(3):
        for b in range(3):
            dy, dx = a - 1, b - 1
            m = rowv[dy] & colv[dx]
            z = jnp.where(m, _shift_lanes(x, dy * W + dx), 0.0)   # zero-padded shift
            avg_sum = z if avg_sum is None else avg_sum + z
            mx = jnp.where(m, z, -jnp.inf)
            max_acc = mx if max_acc is None else jnp.maximum(max_acc, mx)
            # dw1 operates on ReLU(x); ReLU commutes with the zero-fill shift.
            t = dw1_ref[a * 3 + b] * jnp.maximum(z, 0.0)
            dw1_acc = t if dw1_acc is None else dw1_acc + t

    # weighted sum over ops; op 0 ('none' == Zero) contributes w0 * 0 and is skipped.
    acc = (w_ref[1] * x                                     # skip_connect
           + w_ref[2] * max_acc                             # max_pool_3x3
           + w_ref[3] * (avg_sum * inv_cnt))                # avg_pool_3x3

    # sep_conv_3x3: ReLU - dw3x3 - pw1x1 - BN - ReLU - dw3x3 - pw1x1 - BN
    h = _batchnorm(_pointwise1x1(dw1_acc, pw1_ref), inv_count)
    h = jnp.maximum(h, 0.0)
    h = _depthwise3x3(h, dw2_ref, 1, rowv, colv, W)
    sep = _batchnorm(_pointwise1x1(h, pw2_ref), inv_count)
    acc = acc + w_ref[4] * sep

    # dil_conv_3x3: ReLU - dw3x3(dilation=2, pad=2) - pw1x1 - BN
    g = _depthwise3x3(jnp.maximum(x, 0.0), dwd_ref, 2, rowv, colv, W)
    dil = _batchnorm(_pointwise1x1(g, pwd_ref), inv_count)
    acc = acc + w_ref[5] * dil

    # single full-block, lane-dense store
    out_ref[...] = acc


def mixed_op_forward(x, weights, dw1, pw1, dw2, pw2, dwd, pwd):
    N, C, H, W = x.shape
    NHW = N * H * W

    # lane-dense, channel-batched layout: row = channel, lane = n*H*W + i*W + j
    x2 = jnp.transpose(x, (1, 0, 2, 3)).reshape(C, NHW)
    # depthwise weights as per-tap (C,1) columns; pointwise as per-in-channel columns
    dw1_t = jnp.transpose(dw1)[:, :, None]                  # (9, C, 1)
    dw2_t = jnp.transpose(dw2)[:, :, None]
    dwd_t = jnp.transpose(dwd)[:, :, None]
    pw1_t = jnp.transpose(pw1)[:, :, None]                  # (C_in, C_out, 1)
    pw2_t = jnp.transpose(pw2)[:, :, None]
    pwd_t = jnp.transpose(pwd)[:, :, None]

    smem = pl.BlockSpec(memory_space=pltpu.MemorySpace.SMEM)
    vmem = pl.BlockSpec(memory_space=pltpu.MemorySpace.VMEM)

    out2 = pl.pallas_call(
        functools.partial(mixed_op_kernel, H=H, W=W),
        out_shape=jax.ShapeDtypeStruct((C, NHW), jnp.float32),
        in_specs=[smem, vmem, vmem, vmem, vmem, vmem, vmem, vmem],
        out_specs=vmem,
    )(weights, x2, dw1_t, pw1_t, dw2_t, pw2_t, dwd_t, pwd_t)

    return jnp.transpose(out2.reshape(C, N, H, W), (1, 0, 2, 3))


# --------------------------- pure-JAX reference check ---------------------------

def _ref_depthwise(x, dw, dilation):
    C = x.shape[1]
    w = dw.reshape(C, 1, 3, 3)
    return lax.conv_general_dilated(
        x, w, window_strides=(1, 1),
        padding=((dilation, dilation), (dilation, dilation)),
        rhs_dilation=(dilation, dilation),
        dimension_numbers=('NCHW', 'OIHW', 'NCHW'),
        feature_group_count=C)


def _ref_pointwise(x, pw):
    C = x.shape[1]
    w = pw.reshape(C, C, 1, 1)
    return lax.conv_general_dilated(
        x, w, (1, 1), 'VALID', dimension_numbers=('NCHW', 'OIHW', 'NCHW'))


def _ref_bn(x):
    m = jnp.mean(x, axis=(0, 2, 3), keepdims=True)
    v = jnp.mean((x - m) ** 2, axis=(0, 2, 3), keepdims=True)
    return (x - m) / jnp.sqrt(v + BN_EPS)


def _ref_maxpool(x):
    return lax.reduce_window(x, -jnp.inf, lax.max, (1, 1, 3, 3), (1, 1, 1, 1),
                             [(0, 0), (0, 0), (1, 1), (1, 1)])


def _ref_avgpool(x):
    pads = [(0, 0), (0, 0), (1, 1), (1, 1)]
    s = lax.reduce_window(x, 0.0, lax.add, (1, 1, 3, 3), (1, 1, 1, 1), pads)
    cnt = lax.reduce_window(jnp.ones_like(x), 0.0, lax.add, (1, 1, 3, 3),
                            (1, 1, 1, 1), pads)
    return s / cnt


def mixed_op_reference(x, weights, dw1, pw1, dw2, pw2, dwd, pwd):
    r = jnp.maximum(x, 0.0)
    h = _ref_bn(_ref_pointwise(_ref_depthwise(r, dw1, 1), pw1))
    h = jnp.maximum(h, 0.0)
    sep = _ref_bn(_ref_pointwise(_ref_depthwise(h, dw2, 1), pw2))
    dil = _ref_bn(_ref_pointwise(_ref_depthwise(r, dwd, 2), pwd))
    return (weights[0] * jnp.zeros_like(x)
            + weights[1] * x
            + weights[2] * _ref_maxpool(x)
            + weights[3] * _ref_avgpool(x)
            + weights[4] * sep
            + weights[5] * dil)


# ------------------------------------ main ------------------------------------

if __name__ == "__main__":
    key = jax.random.PRNGKey(0)
    N, C, H, W = 2, 4, 16, 16
    ks = jax.random.split(key, 8)

    x = jax.random.normal(ks[0], (N, C, H, W), dtype=jnp.float32)
    # architecture weights over the primitives (softmax, as in SNAS)
    weights = jax.nn.softmax(jax.random.normal(ks[1], (NUM_OPS,), dtype=jnp.float32))

    scale = 0.3  # deterministic synthetic conv parameters
    dw1 = scale * jax.random.normal(ks[2], (C, 9), dtype=jnp.float32)   # sep dw conv 1
    pw1 = scale * jax.random.normal(ks[3], (C, C), dtype=jnp.float32)   # sep pw conv 1
    dw2 = scale * jax.random.normal(ks[4], (C, 9), dtype=jnp.float32)   # sep dw conv 2
    pw2 = scale * jax.random.normal(ks[5], (C, C), dtype=jnp.float32)   # sep pw conv 2
    dwd = scale * jax.random.normal(ks[6], (C, 9), dtype=jnp.float32)   # dil dw conv
    pwd = scale * jax.random.normal(ks[7], (C, C), dtype=jnp.float32)   # dil pw conv

    out = mixed_op_forward(x, weights, dw1, pw1, dw2, pw2, dwd, pwd)
    jax.block_until_ready(out)

    ref = mixed_op_reference(x, weights, dw1, pw1, dw2, pw2, dwd, pwd)
    assert out.shape == (N, C, H, W) and out.dtype == jnp.float32
    max_err = float(jnp.max(jnp.abs(out - ref)))
    assert jnp.allclose(out, ref, rtol=1e-4, atol=1e-4), max_err

    print("KERNEL_OK")
</pallas_src>

<mosaic_0001>
module attributes {stable_mosaic.version = 11 : i64} {
  func.func @mixed_op_kernel(%arg0: memref<6xf32, #tpu.memory_space<smem>>, %arg1: memref<4x512xf32, #tpu.memory_space<vmem>>, %arg2: memref<9x4x1xf32, #tpu.memory_space<vmem>>, %arg3: memref<4x4x1xf32, #tpu.memory_space<vmem>>, %arg4: memref<9x4x1xf32, #tpu.memory_space<vmem>>, %arg5: memref<4x4x1xf32, #tpu.memory_space<vmem>>, %arg6: memref<9x4x1xf32, #tpu.memory_space<vmem>>, %arg7: memref<4x4x1xf32, #tpu.memory_space<vmem>>, %arg8: memref<4x512xf32, #tpu.memory_space<vmem>>) attributes {dimension_semantics = [], scalar_prefetch = 0 : i64, scratch_operands = 0 : i64, tpu.core_type = #tpu.core_type<tc>} {
    %c0 = arith.constant 0 : index
    %c0_0 = arith.constant 0 : index
    %0 = vector.load %arg1[%c0, %c0_0] : memref<4x512xf32, #tpu.memory_space<vmem>>, vector<4x512xf32>
    %1 = tpu.iota {dimensions = array<i32: 1>} : vector<1x512xi32>
    %c255_i32 = arith.constant 255 : i32
    %2 = vector.broadcast %c255_i32 : i32 to vector<1x512xi32>
    %3 = arith.andi %1, %2 : vector<1x512xi32>
    %c4_i32 = arith.constant 4 : i32
    %4 = vector.broadcast %c4_i32 : i32 to vector<1x512xi32>
    %5 = arith.shrsi %3, %4 : vector<1x512xi32>
    %c15_i32 = arith.constant 15 : i32
    %6 = vector.broadcast %c15_i32 : i32 to vector<1x512xi32>
    %7 = arith.andi %3, %6 : vector<1x512xi32>
    %c-2_i32 = arith.constant -2 : i32
    %8 = vector.broadcast %c-2_i32 : i32 to vector<1x512xi32>
    %9 = arith.addi %5, %8 : vector<1x512xi32>
    %c0_i32 = arith.constant 0 : i32
    %10 = vector.broadcast %c0_i32 : i32 to vector<1x512xi32>
    %11 = arith.cmpi sge, %9, %10 : vector<1x512xi32>
    %c-2_i32_1 = arith.constant -2 : i32
    %12 = vector.broadcast %c-2_i32_1 : i32 to vector<1x512xi32>
    %13 = arith.addi %5, %12 : vector<1x512xi32>
    %c16_i32 = arith.constant 16 : i32
    %14 = vector.broadcast %c16_i32 : i32 to vector<1x512xi32>
    %15 = arith.cmpi slt, %13, %14 : vector<1x512xi32>
    %16 = arith.andi %11, %15 : vector<1x512xi1>
    %c-1_i32 = arith.constant -1 : i32
    %17 = vector.broadcast %c-1_i32 : i32 to vector<1x512xi32>
    %18 = arith.addi %5, %17 : vector<1x512xi32>
    %c0_i32_2 = arith.constant 0 : i32
    %19 = vector.broadcast %c0_i32_2 : i32 to vector<1x512xi32>
    %20 = arith.cmpi sge, %18, %19 : vector<1x512xi32>
    %c-1_i32_3 = arith.constant -1 : i32
    %21 = vector.broadcast %c-1_i32_3 : i32 to vector<1x512xi32>
    %22 = arith.addi %5, %21 : vector<1x512xi32>
    %c16_i32_4 = arith.constant 16 : i32
    %23 = vector.broadcast %c16_i32_4 : i32 to vector<1x512xi32>
    %24 = arith.cmpi slt, %22, %23 : vector<1x512xi32>
    %25 = arith.andi %20, %24 : vector<1x512xi1>
    %c0_i32_5 = arith.constant 0 : i32
    %26 = vector.broadcast %c0_i32_5 : i32 to vector<1x512xi32>
    %27 = arith.addi %5, %26 : vector<1x512xi32>
    %c0_i32_6 = arith.constant 0 : i32
    %28 = vector.broadcast %c0_i32_6 : i32 to vector<1x512xi32>
    %29 = arith.cmpi sge, %27, %28 : vector<1x512xi32>
    %c0_i32_7 = arith.constant 0 : i32
    %30 = vector.broadcast %c0_i32_7 : i32 to vector<1x512xi32>
    %31 = arith.addi %5, %30 : vector<1x512xi32>
    %c16_i32_8 = arith.constant 16 : i32
    %32 = vector.broadcast %c16_i32_8 : i32 to vector<1x512xi32>
    %33 = arith.cmpi slt, %31, %32 : vector<1x512xi32>
    %34 = arith.andi %29, %33 : vector<1x512xi1>
    %c1_i32 = arith.constant 1 : i32
    %35 = vector.broadcast %c1_i32 : i32 to vector<1x512xi32>
    %36 = arith.addi %5, %35 : vector<1x512xi32>
    %c0_i32_9 = arith.constant 0 : i32
    %37 = vector.broadcast %c0_i32_9 : i32 to vector<1x512xi32>
    %38 = arith.cmpi sge, %36, %37 : vector<1x512xi32>
    %c1_i32_10 = arith.constant 1 : i32
    %39 = vector.broadcast %c1_i32_10 : i32 to vector<1x512xi32>
    %40 = arith.addi %5, %39 : vector<1x512xi32>
    %c16_i32_11 = arith.constant 16 : i32
    %41 = vector.broadcast %c16_i32_11 : i32 to vector<1x512xi32>
    %42 = arith.cmpi slt, %40, %41 : vector<1x512xi32>
    %43 = arith.andi %38, %42 : vector<1x512xi1>
    %c2_i32 = arith.constant 2 : i32
    %44 = vector.broadcast %c2_i32 : i32 to vector<1x512xi32>
    %45 = arith.addi %5, %44 : vector<1x512xi32>
    %c0_i32_12 = arith.constant 0 : i32
    %46 = vector.broadcast %c0_i32_12 : i32 to vector<1x512xi32>
    %47 = arith.cmpi sge, %45, %46 : vector<1x512xi32>
    %c2_i32_13 = arith.constant 2 : i32
    %48 = vector.broadcast %c2_i32_13 : i32 to vector<1x512xi32>
    %49 = arith.addi %5, %48 : vector<1x512xi32>
    %c16_i32_14 = arith.constant 16 : i32
    %50 = vector.broadcast %c16_i32_14 : i32 to vector<1x512xi32>
    %51 = arith.cmpi slt, %49, %50 : vector<1x512xi32>
    %52 = arith.andi %47, %51 : vector<1x512xi1>
    %c-2_i32_15 = arith.constant -2 : i32
    %53 = vector.broadcast %c-2_i32_15 : i32 to vector<1x512xi32>
    %54 = arith.addi %7, %53 : vector<1x512xi32>
    %c0_i32_16 = arith.constant 0 : i32
    %55 = vector.broadcast %c0_i32_16 : i32 to vector<1x512xi32>
    %56 = arith.cmpi sge, %54, %55 : vector<1x512xi32>
    %c-2_i32_17 = arith.constant -2 : i32
    %57 = vector.broadcast %c-2_i32_17 : i32 to vector<1x512xi32>
    %58 = arith.addi %7, %57 : vector<1x512xi32>
    %c16_i32_18 = arith.constant 16 : i32
    %59 = vector.broadcast %c16_i32_18 : i32 to vector<1x512xi32>
    %60 = arith.cmpi slt, %58, %59 : vector<1x512xi32>
    %61 = arith.andi %56, %60 : vector<1x512xi1>
    %c-1_i32_19 = arith.constant -1 : i32
    %62 = vector.broadcast %c-1_i32_19 : i32 to vector<1x512xi32>
    %63 = arith.addi %7, %62 : vector<1x512xi32>
    %c0_i32_20 = arith.constant 0 : i32
    %64 = vector.broadcast %c0_i32_20 : i32 to vector<1x512xi32>
    %65 = arith.cmpi sge, %63, %64 : vector<1x512xi32>
    %c-1_i32_21 = arith.constant -1 : i32
    %66 = vector.broadcast %c-1_i32_21 : i32 to vector<1x512xi32>
    %67 = arith.addi %7, %66 : vector<1x512xi32>
    %c16_i32_22 = arith.constant 16 : i32
    %68 = vector.broadcast %c16_i32_22 : i32 to vector<1x512xi32>
    %69 = arith.cmpi slt, %67, %68 : vector<1x512xi32>
    %70 = arith.andi %65, %69 : vector<1x512xi1>
    %c0_i32_23 = arith.constant 0 : i32
    %71 = vector.broadcast %c0_i32_23 : i32 to vector<1x512xi32>
    %72 = arith.addi %7, %71 : vector<1x512xi32>
    %c0_i32_24 = arith.constant 0 : i32
    %73 = vector.broadcast %c0_i32_24 : i32 to vector<1x512xi32>
    %74 = arith.cmpi sge, %72, %73 : vector<1x512xi32>
    %c0_i32_25 = arith.constant 0 : i32
    %75 = vector.broadcast %c0_i32_25 : i32 to vector<1x512xi32>
    %76 = arith.addi %7, %75 : vector<1x512xi32>
    %c16_i32_26 = arith.constant 16 : i32
    %77 = vector.broadcast %c16_i32_26 : i32 to vector<1x512xi32>
    %78 = arith.cmpi slt, %76, %77 : vector<1x512xi32>
    %79 = arith.andi %74, %78 : vector<1x512xi1>
    %c1_i32_27 = arith.constant 1 : i32
    %80 = vector.broadcast %c1_i32_27 : i32 to vector<1x512xi32>
    %81 = arith.addi %7, %80 : vector<1x512xi32>
    %c0_i32_28 = arith.constant 0 : i32
    %82 = vector.broadcast %c0_i32_28 : i32 to vector<1x512xi32>
    %83 = arith.cmpi sge, %81, %82 : vector<1x512xi32>
    %c1_i32_29 = arith.constant 1 : i32
    %84 = vector.broadcast %c1_i32_29 : i32 to vector<1x512xi32>
    %85 = arith.addi %7, %84 : vector<1x512xi32>
    %c16_i32_30 = arith.constant 16 : i32
    %86 = vector.broadcast %c16_i32_30 : i32 to vector<1x512xi32>
    %87 = arith.cmpi slt, %85, %86 : vector<1x512xi32>
    %88 = arith.andi %83, %87 : vector<1x512xi1>
    %c2_i32_31 = arith.constant 2 : i32
    %89 = vector.broadcast %c2_i32_31 : i32 to vector<1x512xi32>
    %90 = arith.addi %7, %89 : vector<1x512xi32>
    %c0_i32_32 = arith.constant 0 : i32
    %91 = vector.broadcast %c0_i32_32 : i32 to vector<1x512xi32>
    %92 = arith.cmpi sge, %90, %91 : vector<1x512xi32>
    %c2_i32_33 = arith.constant 2 : i32
    %93 = vector.broadcast %c2_i32_33 : i32 to vector<1x512xi32>
    %94 = arith.addi %7, %93 : vector<1x512xi32>
    %c16_i32_34 = arith.constant 16 : i32
    %95 = vector.broadcast %c16_i32_34 : i32 to vector<1x512xi32>
    %96 = arith.cmpi slt, %94, %95 : vector<1x512xi32>
    %97 = arith.andi %92, %96 : vector<1x512xi1>
    %c0_i32_35 = arith.constant 0 : i32
    %98 = vector.broadcast %c0_i32_35 : i32 to vector<1x512xi32>
    %99 = arith.cmpi sgt, %5, %98 : vector<1x512xi32>
    %100 = arith.extui %99 : vector<1x512xi1> to vector<1x512xi32>
    %101 = arith.sitofp %100 : vector<1x512xi32> to vector<1x512xf32>
    %cst = arith.constant 1.000000e+00 : f32
    %102 = vector.broadcast %cst : f32 to vector<1x512xf32>
    %103 = arith.addf %102, %101 : vector<1x512xf32>
    %c15_i32_36 = arith.constant 15 : i32
    %104 = vector.broadcast %c15_i32_36 : i32 to vector<1x512xi32>
    %105 = arith.cmpi slt, %5, %104 : vector<1x512xi32>
    %106 = arith.extui %105 : vector<1x512xi1> to vector<1x512xi32>
    %107 = arith.sitofp %106 : vector<1x512xi32> to vector<1x512xf32>
    %108 = arith.addf %103, %107 : vector<1x512xf32>
    %c0_i32_37 = arith.constant 0 : i32
    %109 = vector.broadcast %c0_i32_37 : i32 to vector<1x512xi32>
    %110 = arith.cmpi sgt, %7, %109 : vector<1x512xi32>
    %111 = arith.extui %110 : vector<1x512xi1> to vector<1x512xi32>
    %112 = arith.sitofp %111 : vector<1x512xi32> to vector<1x512xf32>
    %cst_38 = arith.constant 1.000000e+00 : f32
    %113 = vector.broadcast %cst_38 : f32 to vector<1x512xf32>
    %114 = arith.addf %113, %112 : vector<1x512xf32>
    %c15_i32_39 = arith.constant 15 : i32
    %115 = vector.broadcast %c15_i32_39 : i32 to vector<1x512xi32>
    %116 = arith.cmpi slt, %7, %115 : vector<1x512xi32>
    %117 = arith.extui %116 : vector<1x512xi1> to vector<1x512xi32>
    %118 = arith.sitofp %117 : vector<1x512xi32> to vector<1x512xf32>
    %119 = arith.addf %114, %118 : vector<1x512xf32>
    %120 = arith.mulf %108, %119 : vector<1x512xf32>
    %cst_40 = arith.constant 1.000000e+00 : f32
    %121 = vector.broadcast %cst_40 : f32 to vector<1x512xf32>
    %122 = arith.divf %121, %120 : vector<1x512xf32>
    %123 = arith.andi %25, %70 : vector<1x512xi1>
    %c17_i32 = arith.constant 17 : i32
    %124 = tpu.dynamic_rotate %0 by %c17_i32 dim 1 : vector<4x512xf32>, i32 -> vector<4x512xf32>
    %cst_41 = arith.constant 0.000000e+00 : f32
    %125 = vector.shape_cast %123 : vector<1x512xi1> to vector<1x512xi1>
    %126 = vector.broadcast %125 : vector<1x512xi1> to vector<4x512xi1>
    %127 = vector.broadcast %cst_41 : f32 to vector<4x512xf32>
    %128 = arith.select %126, %124, %127 : vector<4x512xi1>, vector<4x512xf32>
    %cst_42 = arith.constant 0xFF800000 : f32
    %129 = vector.shape_cast %123 : vector<1x512xi1> to vector<1x512xi1>
    %130 = vector.broadcast %129 : vector<1x512xi1> to vector<4x512xi1>
    %131 = vector.broadcast %cst_42 : f32 to vector<4x512xf32>
    %132 = arith.select %130, %128, %131 : vector<4x512xi1>, vector<4x512xf32>
    %c0_43 = arith.constant 0 : index
    %c0_44 = arith.constant 0 : index
    %c0_45 = arith.constant 0 : index
    %133 = vector.load %arg2[%c0_43, %c0_44, %c0_45] : memref<9x4x1xf32, #tpu.memory_space<vmem>>, vector<1x4x1xf32>
    %134 = vector.shape_cast %133 : vector<1x4x1xf32> to vector<4x1xf32>
    %cst_46 = arith.constant 0.000000e+00 : f32
    %135 = vector.broadcast %cst_46 : f32 to vector<4x512xf32>
    %136 = arith.maximumf %128, %135 : vector<4x512xf32>
    %137 = vector.broadcast %134 : vector<4x1xf32> to vector<4x512xf32>
    %138 = arith.mulf %137, %136 : vector<4x512xf32>
    %139 = arith.andi %25, %79 : vector<1x512xi1>
    %c16_i32_47 = arith.constant 16 : i32
    %140 = tpu.dynamic_rotate %0 by %c16_i32_47 dim 1 : vector<4x512xf32>, i32 -> vector<4x512xf32>
    %cst_48 = arith.constant 0.000000e+00 : f32
    %141 = vector.shape_cast %139 : vector<1x512xi1> to vector<1x512xi1>
    %142 = vector.broadcast %141 : vector<1x512xi1> to vector<4x512xi1>
    %143 = vector.broadcast %cst_48 : f32 to vector<4x512xf32>
    %144 = arith.select %142, %140, %143 : vector<4x512xi1>, vector<4x512xf32>
    %145 = arith.addf %128, %144 : vector<4x512xf32>
    %cst_49 = arith.constant 0xFF800000 : f32
    %146 = vector.shape_cast %139 : vector<1x512xi1> to vector<1x512xi1>
    %147 = vector.broadcast %146 : vector<1x512xi1> to vector<4x512xi1>
    %148 = vector.broadcast %cst_49 : f32 to vector<4x512xf32>
    %149 = arith.select %147, %144, %148 : vector<4x512xi1>, vector<4x512xf32>
    %150 = arith.maximumf %132, %149 : vector<4x512xf32>
    %c1 = arith.constant 1 : index
    %c0_50 = arith.constant 0 : index
    %c0_51 = arith.constant 0 : index
    %151 = vector.load %arg2[%c1, %c0_50, %c0_51] : memref<9x4x1xf32, #tpu.memory_space<vmem>>, vector<1x4x1xf32>
    %152 = vector.shape_cast %151 : vector<1x4x1xf32> to vector<4x1xf32>
    %cst_52 = arith.constant 0.000000e+00 : f32
    %153 = vector.broadcast %cst_52 : f32 to vector<4x512xf32>
    %154 = arith.maximumf %144, %153 : vector<4x512xf32>
    %155 = vector.broadcast %152 : vector<4x1xf32> to vector<4x512xf32>
    %156 = arith.mulf %155, %154 : vector<4x512xf32>
    %157 = arith.addf %138, %156 : vector<4x512xf32>
    %158 = arith.andi %25, %88 : vector<1x512xi1>
    %c15_i32_53 = arith.constant 15 : i32
    %159 = tpu.dynamic_rotate %0 by %c15_i32_53 dim 1 : vector<4x512xf32>, i32 -> vector<4x512xf32>
    %cst_54 = arith.constant 0.000000e+00 : f32
    %160 = vector.shape_cast %158 : vector<1x512xi1> to vector<1x512xi1>
    %161 = vector.broadcast %160 : vector<1x512xi1> to vector<4x512xi1>
    %162 = vector.broadcast %cst_54 : f32 to vector<4x512xf32>
    %163 = arith.select %161, %159, %162 : vector<4x512xi1>, vector<4x512xf32>
    %164 = arith.addf %145, %163 : vector<4x512xf32>
    %cst_55 = arith.constant 0xFF800000 : f32
    %165 = vector.shape_cast %158 : vector<1x512xi1> to vector<1x512xi1>
    %166 = vector.broadcast %165 : vector<1x512xi1> to vector<4x512xi1>
    %167 = vector.broadcast %cst_55 : f32 to vector<4x512xf32>
    %168 = arith.select %166, %163, %167 : vector<4x512xi1>, vector<4x512xf32>
    %169 = arith.maximumf %150, %168 : vector<4x512xf32>
    %c2 = arith.constant 2 : index
    %c0_56 = arith.constant 0 : index
    %c0_57 = arith.constant 0 : index
    %170 = vector.load %arg2[%c2, %c0_56, %c0_57] : memref<9x4x1xf32, #tpu.memory_space<vmem>>, vector<1x4x1xf32>
    %171 = vector.shape_cast %170 : vector<1x4x1xf32> to vector<4x1xf32>
    %cst_58 = arith.constant 0.000000e+00 : f32
    %172 = vector.broadcast %cst_58 : f32 to vector<4x512xf32>
    %173 = arith.maximumf %163, %172 : vector<4x512xf32>
    %174 = vector.broadcast %171 : vector<4x1xf32> to vector<4x512xf32>
    %175 = arith.mulf %174, %173 : vector<4x512xf32>
    %176 = arith.addf %157, %175 : vector<4x512xf32>
    %177 = arith.andi %34, %70 : vector<1x512xi1>
    %c1_i32_59 = arith.constant 1 : i32
    %178 = tpu.dynamic_rotate %0 by %c1_i32_59 dim 1 : vector<4x512xf32>, i32 -> vector<4x512xf32>
    %cst_60 = arith.constant 0.000000e+00 : f32
    %179 = vector.shape_cast %177 : vector<1x512xi1> to vector<1x512xi1>
    %180 = vector.broadcast %179 : vector<1x512xi1> to vector<4x512xi1>
    %181 = vector.broadcast %cst_60 : f32 to vector<4x512xf32>
    %182 = arith.select %180, %178, %181 : vector<4x512xi1>, vector<4x512xf32>
    %183 = arith.addf %164, %182 : vector<4x512xf32>
    %cst_61 = arith.constant 0xFF800000 : f32
    %184 = vector.shape_cast %177 : vector<1x512xi1> to vector<1x512xi1>
    %185 = vector.broadcast %184 : vector<1x512xi1> to vector<4x512xi1>
    %186 = vector.broadcast %cst_61 : f32 to vector<4x512xf32>
    %187 = arith.select %185, %182, %186 : vector<4x512xi1>, vector<4x512xf32>
    %188 = arith.maximumf %169, %187 : vector<4x512xf32>
    %c3 = arith.constant 3 : index
    %c0_62 = arith.constant 0 : index
    %c0_63 = arith.constant 0 : index
    %189 = vector.load %arg2[%c3, %c0_62, %c0_63] : memref<9x4x1xf32, #tpu.memory_space<vmem>>, vector<1x4x1xf32>
    %190 = vector.shape_cast %189 : vector<1x4x1xf32> to vector<4x1xf32>
    %cst_64 = arith.constant 0.000000e+00 : f32
    %191 = vector.broadcast %cst_64 : f32 to vector<4x512xf32>
    %192 = arith.maximumf %182, %191 : vector<4x512xf32>
    %193 = vector.broadcast %190 : vector<4x1xf32> to vector<4x512xf32>
    %194 = arith.mulf %193, %192 : vector<4x512xf32>
    %195 = arith.addf %176, %194 : vector<4x512xf32>
    %196 = arith.andi %34, %79 : vector<1x512xi1>
    %cst_65 = arith.constant 0.000000e+00 : f32
    %197 = vector.shape_cast %196 : vector<1x512xi1> to vector<1x512xi1>
    %198 = vector.broadcast %197 : vector<1x512xi1> to vector<4x512xi1>
    %199 = vector.broadcast %cst_65 : f32 to vector<4x512xf32>
    %200 = arith.select %198, %0, %199 : vector<4x512xi1>, vector<4x512xf32>
    %201 = arith.addf %183, %200 : vector<4x512xf32>
    %cst_66 = arith.constant 0xFF800000 : f32
    %202 = vector.shape_cast %196 : vector<1x512xi1> to vector<1x512xi1>
    %203 = vector.broadcast %202 : vector<1x512xi1> to vector<4x512xi1>
    %204 = vector.broadcast %cst_66 : f32 to vector<4x512xf32>
    %205 = arith.select %203, %200, %204 : vector<4x512xi1>, vector<4x512xf32>
    %206 = arith.maximumf %188, %205 : vector<4x512xf32>
    %c4 = arith.constant 4 : index
    %c0_67 = arith.constant 0 : index
    %c0_68 = arith.constant 0 : index
    %207 = vector.load %arg2[%c4, %c0_67, %c0_68] : memref<9x4x1xf32, #tpu.memory_space<vmem>>, vector<1x4x1xf32>
    %208 = vector.shape_cast %207 : vector<1x4x1xf32> to vector<4x1xf32>
    %cst_69 = arith.constant 0.000000e+00 : f32
    %209 = vector.broadcast %cst_69 : f32 to vector<4x512xf32>
    %210 = arith.maximumf %200, %209 : vector<4x512xf32>
    %211 = vector.broadcast %208 : vector<4x1xf32> to vector<4x512xf32>
    %212 = arith.mulf %211, %210 : vector<4x512xf32>
    %213 = arith.addf %195, %212 : vector<4x512xf32>
    %214 = arith.andi %34, %88 : vector<1x512xi1>
    %c511_i32 = arith.constant 511 : i32
    %215 = tpu.dynamic_rotate %0 by %c511_i32 dim 1 : vector<4x512xf32>, i32 -> vector<4x512xf32>
    %cst_70 = arith.constant 0.000000e+00 : f32
    %216 = vector.shape_cast %214 : vector<1x512xi1> to vector<1x512xi1>
    %217 = vector.broadcast %216 : vector<1x512xi1> to vector<4x512xi1>
    %218 = vector.broadcast %cst_70 : f32 to vector<4x512xf32>
    %219 = arith.select %217, %215, %218 : vector<4x512xi1>, vector<4x512xf32>
    %220 = arith.addf %201, %219 : vector<4x512xf32>
    %cst_71 = arith.constant 0xFF800000 : f32
    %221 = vector.shape_cast %214 : vector<1x512xi1> to vector<1x512xi1>
    %222 = vector.broadcast %221 : vector<1x512xi1> to vector<4x512xi1>
    %223 = vector.broadcast %cst_71 : f32 to vector<4x512xf32>
    %224 = arith.select %222, %219, %223 : vector<4x512xi1>, vector<4x512xf32>
    %225 = arith.maximumf %206, %224 : vector<4x512xf32>
    %c5 = arith.constant 5 : index
    %c0_72 = arith.constant 0 : index
    %c0_73 = arith.constant 0 : index
    %226 = vector.load %arg2[%c5, %c0_72, %c0_73] : memref<9x4x1xf32, #tpu.memory_space<vmem>>, vector<1x4x1xf32>
    %227 = vector.shape_cast %226 : vector<1x4x1xf32> to vector<4x1xf32>
    %cst_74 = arith.constant 0.000000e+00 : f32
    %228 = vector.broadcast %cst_74 : f32 to vector<4x512xf32>
    %229 = arith.maximumf %219, %228 : vector<4x512xf32>
    %230 = vector.broadcast %227 : vector<4x1xf32> to vector<4x512xf32>
    %231 = arith.mulf %230, %229 : vector<4x512xf32>
    %232 = arith.addf %213, %231 : vector<4x512xf32>
    %233 = arith.andi %43, %70 : vector<1x512xi1>
    %c497_i32 = arith.constant 497 : i32
    %234 = tpu.dynamic_rotate %0 by %c497_i32 dim 1 : vector<4x512xf32>, i32 -> vector<4x512xf32>
    %cst_75 = arith.constant 0.000000e+00 : f32
    %235 = vector.shape_cast %233 : vector<1x512xi1> to vector<1x512xi1>
    %236 = vector.broadcast %235 : vector<1x512xi1> to vector<4x512xi1>
    %237 = vector.broadcast %cst_75 : f32 to vector<4x512xf32>
    %238 = arith.select %236, %234, %237 : vector<4x512xi1>, vector<4x512xf32>
    %239 = arith.addf %220, %238 : vector<4x512xf32>
    %cst_76 = arith.constant 0xFF800000 : f32
    %240 = vector.shape_cast %233 : vector<1x512xi1> to vector<1x512xi1>
    %241 = vector.broadcast %240 : vector<1x512xi1> to vector<4x512xi1>
    %242 = vector.broadcast %cst_76 : f32 to vector<4x512xf32>
    %243 = arith.select %241, %238, %242 : vector<4x512xi1>, vector<4x512xf32>
    %244 = arith.maximumf %225, %243 : vector<4x512xf32>
    %c6 = arith.constant 6 : index
    %c0_77 = arith.constant 0 : index
    %c0_78 = arith.constant 0 : index
    %245 = vector.load %arg2[%c6, %c0_77, %c0_78] : memref<9x4x1xf32, #tpu.memory_space<vmem>>, vector<1x4x1xf32>
    %246 = vector.shape_cast %245 : vector<1x4x1xf32> to vector<4x1xf32>
    %cst_79 = arith.constant 0.000000e+00 : f32
    %247 = vector.broadcast %cst_79 : f32 to vector<4x512xf32>
    %248 = arith.maximumf %238, %247 : vector<4x512xf32>
    %249 = vector.broadcast %246 : vector<4x1xf32> to vector<4x512xf32>
    %250 = arith.mulf %249, %248 : vector<4x512xf32>
    %251 = arith.addf %232, %250 : vector<4x512xf32>
    %252 = arith.andi %43, %79 : vector<1x512xi1>
    %c496_i32 = arith.constant 496 : i32
    %253 = tpu.dynamic_rotate %0 by %c496_i32 dim 1 : vector<4x512xf32>, i32 -> vector<4x512xf32>
    %cst_80 = arith.constant 0.000000e+00 : f32
    %254 = vector.shape_cast %252 : vector<1x512xi1> to vector<1x512xi1>
    %255 = vector.broadcast %254 : vector<1x512xi1> to vector<4x512xi1>
    %256 = vector.broadcast %cst_80 : f32 to vector<4x512xf32>
    %257 = arith.select %255, %253, %256 : vector<4x512xi1>, vector<4x512xf32>
    %258 = arith.addf %239, %257 : vector<4x512xf32>
    %cst_81 = arith.constant 0xFF800000 : f32
    %259 = vector.shape_cast %252 : vector<1x512xi1> to vector<1x512xi1>
    %260 = vector.broadcast %259 : vector<1x512xi1> to vector<4x512xi1>
    %261 = vector.broadcast %cst_81 : f32 to vector<4x512xf32>
    %262 = arith.select %260, %257, %261 : vector<4x512xi1>, vector<4x512xf32>
    %263 = arith.maximumf %244, %262 : vector<4x512xf32>
    %c7 = arith.constant 7 : index
    %c0_82 = arith.constant 0 : index
    %c0_83 = arith.constant 0 : index
    %264 = vector.load %arg2[%c7, %c0_82, %c0_83] : memref<9x4x1xf32, #tpu.memory_space<vmem>>, vector<1x4x1xf32>
    %265 = vector.shape_cast %264 : vector<1x4x1xf32> to vector<4x1xf32>
    %cst_84 = arith.constant 0.000000e+00 : f32
    %266 = vector.broadcast %cst_84 : f32 to vector<4x512xf32>
    %267 = arith.maximumf %257, %266 : vector<4x512xf32>
    %268 = vector.broadcast %265 : vector<4x1xf32> to vector<4x512xf32>
    %269 = arith.mulf %268, %267 : vector<4x512xf32>
    %270 = arith.addf %251, %269 : vector<4x512xf32>
    %271 = arith.andi %43, %88 : vector<1x512xi1>
    %c495_i32 = arith.constant 495 : i32
    %272 = tpu.dynamic_rotate %0 by %c495_i32 dim 1 : vector<4x512xf32>, i32 -> vector<4x512xf32>
    %cst_85 = arith.constant 0.000000e+00 : f32
    %273 = vector.shape_cast %271 : vector<1x512xi1> to vector<1x512xi1>
    %274 = vector.broadcast %273 : vector<1x512xi1> to vector<4x512xi1>
    %275 = vector.broadcast %cst_85 : f32 to vector<4x512xf32>
    %276 = arith.select %274, %272, %275 : vector<4x512xi1>, vector<4x512xf32>
    %277 = arith.addf %258, %276 : vector<4x512xf32>
    %cst_86 = arith.constant 0xFF800000 : f32
    %278 = vector.shape_cast %271 : vector<1x512xi1> to vector<1x512xi1>
    %279 = vector.broadcast %278 : vector<1x512xi1> to vector<4x512xi1>
    %280 = vector.broadcast %cst_86 : f32 to vector<4x512xf32>
    %281 = arith.select %279, %276, %280 : vector<4x512xi1>, vector<4x512xf32>
    %282 = arith.maximumf %263, %281 : vector<4x512xf32>
    %c8 = arith.constant 8 : index
    %c0_87 = arith.constant 0 : index
    %c0_88 = arith.constant 0 : index
    %283 = vector.load %arg2[%c8, %c0_87, %c0_88] : memref<9x4x1xf32, #tpu.memory_space<vmem>>, vector<1x4x1xf32>
    %284 = vector.shape_cast %283 : vector<1x4x1xf32> to vector<4x1xf32>
    %cst_89 = arith.constant 0.000000e+00 : f32
    %285 = vector.broadcast %cst_89 : f32 to vector<4x512xf32>
    %286 = arith.maximumf %276, %285 : vector<4x512xf32>
    %287 = vector.broadcast %284 : vector<4x1xf32> to vector<4x512xf32>
    %288 = arith.mulf %287, %286 : vector<4x512xf32>
    %289 = arith.addf %270, %288 : vector<4x512xf32>
    %c1_90 = arith.constant 1 : index
    %290 = memref.load %arg0[%c1_90] : memref<6xf32, #tpu.memory_space<smem>>
    %291 = vector.broadcast %290 : f32 to vector<4x512xf32>
    %292 = arith.mulf %291, %0 : vector<4x512xf32>
    %c2_91 = arith.constant 2 : index
    %293 = memref.load %arg0[%c2_91] : memref<6xf32, #tpu.memory_space<smem>>
    %294 = vector.broadcast %293 : f32 to vector<4x512xf32>
    %295 = arith.mulf %294, %282 : vector<4x512xf32>
    %296 = arith.addf %292, %295 : vector<4x512xf32>
    %c3_92 = arith.constant 3 : index
    %297 = memref.load %arg0[%c3_92] : memref<6xf32, #tpu.memory_space<smem>>
    %298 = vector.broadcast %122 : vector<1x512xf32> to vector<4x512xf32>
    %299 = arith.mulf %277, %298 : vector<4x512xf32>
    %300 = vector.broadcast %297 : f32 to vector<4x512xf32>
    %301 = arith.mulf %300, %299 : vector<4x512xf32>
    %302 = arith.addf %296, %301 : vector<4x512xf32>
    %c0_93 = arith.constant 0 : index
    %c0_94 = arith.constant 0 : index
    %c0_95 = arith.constant 0 : index
    %303 = vector.load %arg3[%c0_93, %c0_94, %c0_95] : memref<4x4x1xf32, #tpu.memory_space<vmem>>, vector<1x4x1xf32>
    %304 = vector.shape_cast %303 : vector<1x4x1xf32> to vector<4x1xf32>
    %305 = vector.extract_strided_slice %289 {offsets = [0, 0], sizes = [1, 512], strides = [1, 1]} : vector<4x512xf32> to vector<1x512xf32>
    %306 = vector.broadcast %304 : vector<4x1xf32> to vector<4x512xf32>
    %307 = vector.broadcast %305 : vector<1x512xf32> to vector<4x512xf32>
    %308 = arith.mulf %306, %307 : vector<4x512xf32>
    %c1_96 = arith.constant 1 : index
    %c0_97 = arith.constant 0 : index
    %c0_98 = arith.constant 0 : index
    %309 = vector.load %arg3[%c1_96, %c0_97, %c0_98] : memref<4x4x1xf32, #tpu.memory_space<vmem>>, vector<1x4x1xf32>
    %310 = vector.shape_cast %309 : vector<1x4x1xf32> to vector<4x1xf32>
    %311 = vector.extract_strided_slice %289 {offsets = [1, 0], sizes = [1, 512], strides = [1, 1]} : vector<4x512xf32> to vector<1x512xf32>
    %312 = vector.broadcast %310 : vector<4x1xf32> to vector<4x512xf32>
    %313 = vector.broadcast %311 : vector<1x512xf32> to vector<4x512xf32>
    %314 = arith.mulf %312, %313 : vector<4x512xf32>
    %315 = arith.addf %308, %314 : vector<4x512xf32>
    %c2_99 = arith.constant 2 : index
    %c0_100 = arith.constant 0 : index
    %c0_101 = arith.constant 0 : index
    %316 = vector.load %arg3[%c2_99, %c0_100, %c0_101] : memref<4x4x1xf32, #tpu.memory_space<vmem>>, vector<1x4x1xf32>
    %317 = vector.shape_cast %316 : vector<1x4x1xf32> to vector<4x1xf32>
    %318 = vector.extract_strided_slice %289 {offsets = [2, 0], sizes = [1, 512], strides = [1, 1]} : vector<4x512xf32> to vector<1x512xf32>
    %319 = vector.broadcast %317 : vector<4x1xf32> to vector<4x512xf32>
    %320 = vector.broadcast %318 : vector<1x512xf32> to vector<4x512xf32>
    %321 = arith.mulf %319, %320 : vector<4x512xf32>
    %322 = arith.addf %315, %321 : vector<4x512xf32>
    %c3_102 = arith.constant 3 : index
    %c0_103 = arith.constant 0 : index
    %c0_104 = arith.constant 0 : index
    %323 = vector.load %arg3[%c3_102, %c0_103, %c0_104] : memref<4x4x1xf32, #tpu.memory_space<vmem>>, vector<1x4x1xf32>
    %324 = vector.shape_cast %323 : vector<1x4x1xf32> to vector<4x1xf32>
    %325 = vector.extract_strided_slice %289 {offsets = [3, 0], sizes = [1, 512], strides = [1, 1]} : vector<4x512xf32> to vector<1x512xf32>
    %326 = vector.broadcast %324 : vector<4x1xf32> to vector<4x512xf32>
    %327 = vector.broadcast %325 : vector<1x512xf32> to vector<4x512xf32>
    %328 = arith.mulf %326, %327 : vector<4x512xf32>
    %329 = arith.addf %322, %328 : vector<4x512xf32>
    %cst_105 = arith.constant dense<0.000000e+00> : vector<4xf32>
    %330 = vector.multi_reduction <add>, %329, %cst_105 [1] : vector<4x512xf32> to vector<4xf32>
    %331 = vector.shape_cast %330 : vector<4xf32> to vector<4x1xf32>
    %cst_106 = arith.constant 0.001953125 : f32
    %332 = vector.broadcast %cst_106 : f32 to vector<4x1xf32>
    %333 = arith.mulf %331, %332 : vector<4x1xf32>
    %334 = vector.broadcast %333 : vector<4x1xf32> to vector<4x512xf32>
    %335 = arith.subf %329, %334 : vector<4x512xf32>
    %336 = arith.mulf %335, %335 : vector<4x512xf32>
    %cst_107 = arith.constant dense<0.000000e+00> : vector<4xf32>
    %337 = vector.multi_reduction <add>, %336, %cst_107 [1] : vector<4x512xf32> to vector<4xf32>
    %338 = vector.shape_cast %337 : vector<4xf32> to vector<4x1xf32>
    %cst_108 = arith.constant 0.001953125 : f32
    %339 = vector.broadcast %cst_108 : f32 to vector<4x1xf32>
    %340 = arith.mulf %338, %339 : vector<4x1xf32>
    %cst_109 = arith.constant 9.99999974E-6 : f32
    %341 = vector.broadcast %cst_109 : f32 to vector<4x1xf32>
    %342 = arith.addf %340, %341 : vector<4x1xf32>
    %343 = math.rsqrt %342 : vector<4x1xf32>
    %344 = vector.broadcast %343 : vector<4x1xf32> to vector<4x512xf32>
    %345 = arith.mulf %335, %344 : vector<4x512xf32>
    %cst_110 = arith.constant 0.000000e+00 : f32
    %346 = vector.broadcast %cst_110 : f32 to vector<4x512xf32>
    %347 = arith.maximumf %345, %346 : vector<4x512xf32>
    %348 = arith.andi %25, %70 : vector<1x512xi1>
    %c17_i32_111 = arith.constant 17 : i32
    %349 = tpu.dynamic_rotate %347 by %c17_i32_111 dim 1 : vector<4x512xf32>, i32 -> vector<4x512xf32>
    %cst_112 = arith.constant 0.000000e+00 : f32
    %350 = vector.shape_cast %348 : vector<1x512xi1> to vector<1x512xi1>
    %351 = vector.broadcast %350 : vector<1x512xi1> to vector<4x512xi1>
    %352 = vector.broadcast %cst_112 : f32 to vector<4x512xf32>
    %353 = arith.select %351, %349, %352 : vector<4x512xi1>, vector<4x512xf32>
    %c0_113 = arith.constant 0 : index
    %c0_114 = arith.constant 0 : index
    %c0_115 = arith.constant 0 : index
    %354 = vector.load %arg4[%c0_113, %c0_114, %c0_115] : memref<9x4x1xf32, #tpu.memory_space<vmem>>, vector<1x4x1xf32>
    %355 = vector.shape_cast %354 : vector<1x4x1xf32> to vector<4x1xf32>
    %356 = vector.broadcast %355 : vector<4x1xf32> to vector<4x512xf32>
    %357 = arith.mulf %356, %353 : vector<4x512xf32>
    %358 = arith.andi %25, %79 : vector<1x512xi1>
    %c16_i32_116 = arith.constant 16 : i32
    %359 = tpu.dynamic_rotate %347 by %c16_i32_116 dim 1 : vector<4x512xf32>, i32 -> vector<4x512xf32>
    %cst_117 = arith.constant 0.000000e+00 : f32
    %360 = vector.shape_cast %358 : vector<1x512xi1> to vector<1x512xi1>
    %361 = vector.broadcast %360 : vector<1x512xi1> to vector<4x512xi1>
    %362 = vector.broadcast %cst_117 : f32 to vector<4x512xf32>
    %363 = arith.select %361, %359, %362 : vector<4x512xi1>, vector<4x512xf32>
    %c1_118 = arith.constant 1 : index
    %c0_119 = arith.constant 0 : index
    %c0_120 = arith.constant 0 : index
    %364 = vector.load %arg4[%c1_118, %c0_119, %c0_120] : memref<9x4x1xf32, #tpu.memory_space<vmem>>, vector<1x4x1xf32>
    %365 = vector.shape_cast %364 : vector<1x4x1xf32> to vector<4x1xf32>
    %366 = vector.broadcast %365 : vector<4x1xf32> to vector<4x512xf32>
    %367 = arith.mulf %366, %363 : vector<4x512xf32>
    %368 = arith.addf %357, %367 : vector<4x512xf32>
    %369 = arith.andi %25, %88 : vector<1x512xi1>
    %c15_i32_121 = arith.constant 15 : i32
    %370 = tpu.dynamic_rotate %347 by %c15_i32_121 dim 1 : vector<4x512xf32>, i32 -> vector<4x512xf32>
    %cst_122 = arith.constant 0.000000e+00 : f32
    %371 = vector.shape_cast %369 : vector<1x512xi1> to vector<1x512xi1>
    %372 = vector.broadcast %371 : vector<1x512xi1> to vector<4x512xi1>
    %373 = vector.broadcast %cst_122 : f32 to vector<4x512xf32>
    %374 = arith.select %372, %370, %373 : vector<4x512xi1>, vector<4x512xf32>
    %c2_123 = arith.constant 2 : index
    %c0_124 = arith.constant 0 : index
    %c0_125 = arith.constant 0 : index
    %375 = vector.load %arg4[%c2_123, %c0_124, %c0_125] : memref<9x4x1xf32, #tpu.memory_space<vmem>>, vector<1x4x1xf32>
    %376 = vector.shape_cast %375 : vector<1x4x1xf32> to vector<4x1xf32>
    %377 = vector.broadcast %376 : vector<4x1xf32> to vector<4x512xf32>
    %378 = arith.mulf %377, %374 : vector<4x512xf32>
    %379 = arith.addf %368, %378 : vector<4x512xf32>
    %380 = arith.andi %34, %70 : vector<1x512xi1>
    %c1_i32_126 = arith.constant 1 : i32
    %381 = tpu.dynamic_rotate %347 by %c1_i32_126 dim 1 : vector<4x512xf32>, i32 -> vector<4x512xf32>
    %cst_127 = arith.constant 0.000000e+00 : f32
    %382 = vector.shape_cast %380 : vector<1x512xi1> to vector<1x512xi1>
    %383 = vector.broadcast %382 : vector<1x512xi1> to vector<4x512xi1>
    %384 = vector.broadcast %cst_127 : f32 to vector<4x512xf32>
    %385 = arith.select %383, %381, %384 : vector<4x512xi1>, vector<4x512xf32>
    %c3_128 = arith.constant 3 : index
    %c0_129 = arith.constant 0 : index
    %c0_130 = arith.constant 0 : index
    %386 = vector.load %arg4[%c3_128, %c0_129, %c0_130] : memref<9x4x1xf32, #tpu.memory_space<vmem>>, vector<1x4x1xf32>
    %387 = vector.shape_cast %386 : vector<1x4x1xf32> to vector<4x1xf32>
    %388 = vector.broadcast %387 : vector<4x1xf32> to vector<4x512xf32>
    %389 = arith.mulf %388, %385 : vector<4x512xf32>
    %390 = arith.addf %379, %389 : vector<4x512xf32>
    %391 = arith.andi %34, %79 : vector<1x512xi1>
    %cst_131 = arith.constant 0.000000e+00 : f32
    %392 = vector.shape_cast %391 : vector<1x512xi1> to vector<1x512xi1>
    %393 = vector.broadcast %392 : vector<1x512xi1> to vector<4x512xi1>
    %394 = vector.broadcast %cst_131 : f32 to vector<4x512xf32>
    %395 = arith.select %393, %347, %394 : vector<4x512xi1>, vector<4x512xf32>
    %c4_132 = arith.constant 4 : index
    %c0_133 = arith.constant 0 : index
    %c0_134 = arith.constant 0 : index
    %396 = vector.load %arg4[%c4_132, %c0_133, %c0_134] : memref<9x4x1xf32, #tpu.memory_space<vmem>>, vector<1x4x1xf32>
    %397 = vector.shape_cast %396 : vector<1x4x1xf32> to vector<4x1xf32>
    %398 = vector.broadcast %397 : vector<4x1xf32> to vector<4x512xf32>
    %399 = arith.mulf %398, %395 : vector<4x512xf32>
    %400 = arith.addf %390, %399 : vector<4x512xf32>
    %401 = arith.andi %34, %88 : vector<1x512xi1>
    %c511_i32_135 = arith.constant 511 : i32
    %402 = tpu.dynamic_rotate %347 by %c511_i32_135 dim 1 : vector<4x512xf32>, i32 -> vector<4x512xf32>
    %cst_136 = arith.constant 0.000000e+00 : f32
    %403 = vector.shape_cast %401 : vector<1x512xi1> to vector<1x512xi1>
    %404 = vector.broadcast %403 : vector<1x512xi1> to vector<4x512xi1>
    %405 = vector.broadcast %cst_136 : f32 to vector<4x512xf32>
    %406 = arith.select %404, %402, %405 : vector<4x512xi1>, vector<4x512xf32>
    %c5_137 = arith.constant 5 : index
    %c0_138 = arith.constant 0 : index
    %c0_139 = arith.constant 0 : index
    %407 = vector.load %arg4[%c5_137, %c0_138, %c0_139] : memref<9x4x1xf32, #tpu.memory_space<vmem>>, vector<1x4x1xf32>
    %408 = vector.shape_cast %407 : vector<1x4x1xf32> to vector<4x1xf32>
    %409 = vector.broadcast %408 : vector<4x1xf32> to vector<4x512xf32>
    %410 = arith.mulf %409, %406 : vector<4x512xf32>
    %411 = arith.addf %400, %410 : vector<4x512xf32>
    %412 = arith.andi %43, %70 : vector<1x512xi1>
    %c497_i32_140 = arith.constant 497 : i32
    %413 = tpu.dynamic_rotate %347 by %c497_i32_140 dim 1 : vector<4x512xf32>, i32 -> vector<4x512xf32>
    %cst_141 = arith.constant 0.000000e+00 : f32
    %414 = vector.shape_cast %412 : vector<1x512xi1> to vector<1x512xi1>
    %415 = vector.broadcast %414 : vector<1x512xi1> to vector<4x512xi1>
    %416 = vector.broadcast %cst_141 : f32 to vector<4x512xf32>
    %417 = arith.select %415, %413, %416 : vector<4x512xi1>, vector<4x512xf32>
    %c6_142 = arith.constant 6 : index
    %c0_143 = arith.constant 0 : index
    %c0_144 = arith.constant 0 : index
    %418 = vector.load %arg4[%c6_142, %c0_143, %c0_144] : memref<9x4x1xf32, #tpu.memory_space<vmem>>, vector<1x4x1xf32>
    %419 = vector.shape_cast %418 : vector<1x4x1xf32> to vector<4x1xf32>
    %420 = vector.broadcast %419 : vector<4x1xf32> to vector<4x512xf32>
    %421 = arith.mulf %420, %417 : vector<4x512xf32>
    %422 = arith.addf %411, %421 : vector<4x512xf32>
    %423 = arith.andi %43, %79 : vector<1x512xi1>
    %c496_i32_145 = arith.constant 496 : i32
    %424 = tpu.dynamic_rotate %347 by %c496_i32_145 dim 1 : vector<4x512xf32>, i32 -> vector<4x512xf32>
    %cst_146 = arith.constant 0.000000e+00 : f32
    %425 = vector.shape_cast %423 : vector<1x512xi1> to vector<1x512xi1>
    %426 = vector.broadcast %425 : vector<1x512xi1> to vector<4x512xi1>
    %427 = vector.broadcast %cst_146 : f32 to vector<4x512xf32>
    %428 = arith.select %426, %424, %427 : vector<4x512xi1>, vector<4x512xf32>
    %c7_147 = arith.constant 7 : index
    %c0_148 = arith.constant 0 : index
    %c0_149 = arith.constant 0 : index
    %429 = vector.load %arg4[%c7_147, %c0_148, %c0_149] : memref<9x4x1xf32, #tpu.memory_space<vmem>>, vector<1x4x1xf32>
    %430 = vector.shape_cast %429 : vector<1x4x1xf32> to vector<4x1xf32>
    %431 = vector.broadcast %430 : vector<4x1xf32> to vector<4x512xf32>
    %432 = arith.mulf %431, %428 : vector<4x512xf32>
    %433 = arith.addf %422, %432 : vector<4x512xf32>
    %434 = arith.andi %43, %88 : vector<1x512xi1>
    %c495_i32_150 = arith.constant 495 : i32
    %435 = tpu.dynamic_rotate %347 by %c495_i32_150 dim 1 : vector<4x512xf32>, i32 -> vector<4x512xf32>
    %cst_151 = arith.constant 0.000000e+00 : f32
    %436 = vector.shape_cast %434 : vector<1x512xi1> to vector<1x512xi1>
    %437 = vector.broadcast %436 : vector<1x512xi1> to vector<4x512xi1>
    %438 = vector.broadcast %cst_151 : f32 to vector<4x512xf32>
    %439 = arith.select %437, %435, %438 : vector<4x512xi1>, vector<4x512xf32>
    %c8_152 = arith.constant 8 : index
    %c0_153 = arith.constant 0 : index
    %c0_154 = arith.constant 0 : index
    %440 = vector.load %arg4[%c8_152, %c0_153, %c0_154] : memref<9x4x1xf32, #tpu.memory_space<vmem>>, vector<1x4x1xf32>
    %441 = vector.shape_cast %440 : vector<1x4x1xf32> to vector<4x1xf32>
    %442 = vector.broadcast %441 : vector<4x1xf32> to vector<4x512xf32>
    %443 = arith.mulf %442, %439 : vector<4x512xf32>
    %444 = arith.addf %433, %443 : vector<4x512xf32>
    %c0_155 = arith.constant 0 : index
    %c0_156 = arith.constant 0 : index
    %c0_157 = arith.constant 0 : index
    %445 = vector.load %arg5[%c0_155, %c0_156, %c0_157] : memref<4x4x1xf32, #tpu.memory_space<vmem>>, vector<1x4x1xf32>
    %446 = vector.shape_cast %445 : vector<1x4x1xf32> to vector<4x1xf32>
    %447 = vector.extract_strided_slice %444 {offsets = [0, 0], sizes = [1, 512], strides = [1, 1]} : vector<4x512xf32> to vector<1x512xf32>
    %448 = vector.broadcast %446 : vector<4x1xf32> to vector<4x512xf32>
    %449 = vector.broadcast %447 : vector<1x512xf32> to vector<4x512xf32>
    %450 = arith.mulf %448, %449 : vector<4x512xf32>
    %c1_158 = arith.constant 1 : index
    %c0_159 = arith.constant 0 : index
    %c0_160 = arith.constant 0 : index
    %451 = vector.load %arg5[%c1_158, %c0_159, %c0_160] : memref<4x4x1xf32, #tpu.memory_space<vmem>>, vector<1x4x1xf32>
    %452 = vector.shape_cast %451 : vector<1x4x1xf32> to vector<4x1xf32>
    %453 = vector.extract_strided_slice %444 {offsets = [1, 0], sizes = [1, 512], strides = [1, 1]} : vector<4x512xf32> to vector<1x512xf32>
    %454 = vector.broadcast %452 : vector<4x1xf32> to vector<4x512xf32>
    %455 = vector.broadcast %453 : vector<1x512xf32> to vector<4x512xf32>
    %456 = arith.mulf %454, %455 : vector<4x512xf32>
    %457 = arith.addf %450, %456 : vector<4x512xf32>
    %c2_161 = arith.constant 2 : index
    %c0_162 = arith.constant 0 : index
    %c0_163 = arith.constant 0 : index
    %458 = vector.load %arg5[%c2_161, %c0_162, %c0_163] : memref<4x4x1xf32, #tpu.memory_space<vmem>>, vector<1x4x1xf32>
    %459 = vector.shape_cast %458 : vector<1x4x1xf32> to vector<4x1xf32>
    %460 = vector.extract_strided_slice %444 {offsets = [2, 0], sizes = [1, 512], strides = [1, 1]} : vector<4x512xf32> to vector<1x512xf32>
    %461 = vector.broadcast %459 : vector<4x1xf32> to vector<4x512xf32>
    %462 = vector.broadcast %460 : vector<1x512xf32> to vector<4x512xf32>
    %463 = arith.mulf %461, %462 : vector<4x512xf32>
    %464 = arith.addf %457, %463 : vector<4x512xf32>
    %c3_164 = arith.constant 3 : index
    %c0_165 = arith.constant 0 : index
    %c0_166 = arith.constant 0 : index
    %465 = vector.load %arg5[%c3_164, %c0_165, %c0_166] : memref<4x4x1xf32, #tpu.memory_space<vmem>>, vector<1x4x1xf32>
    %466 = vector.shape_cast %465 : vector<1x4x1xf32> to vector<4x1xf32>
    %467 = vector.extract_strided_slice %444 {offsets = [3, 0], sizes = [1, 512], strides = [1, 1]} : vector<4x512xf32> to vector<1x512xf32>
    %468 = vector.broadcast %466 : vector<4x1xf32> to vector<4x512xf32>
    %469 = vector.broadcast %467 : vector<1x512xf32> to vector<4x512xf32>
    %470 = arith.mulf %468, %469 : vector<4x512xf32>
    %471 = arith.addf %464, %470 : vector<4x512xf32>
    %cst_167 = arith.constant dense<0.000000e+00> : vector<4xf32>
    %472 = vector.multi_reduction <add>, %471, %cst_167 [1] : vector<4x512xf32> to vector<4xf32>
    %473 = vector.shape_cast %472 : vector<4xf32> to vector<4x1xf32>
    %cst_168 = arith.constant 0.001953125 : f32
    %474 = vector.broadcast %cst_168 : f32 to vector<4x1xf32>
    %475 = arith.mulf %473, %474 : vector<4x1xf32>
    %476 = vector.broadcast %475 : vector<4x1xf32> to vector<4x512xf32>
    %477 = arith.subf %471, %476 : vector<4x512xf32>
    %478 = arith.mulf %477, %477 : vector<4x512xf32>
    %cst_169 = arith.constant dense<0.000000e+00> : vector<4xf32>
    %479 = vector.multi_reduction <add>, %478, %cst_169 [1] : vector<4x512xf32> to vector<4xf32>
    %480 = vector.shape_cast %479 : vector<4xf32> to vector<4x1xf32>
    %cst_170 = arith.constant 0.001953125 : f32
    %481 = vector.broadcast %cst_170 : f32 to vector<4x1xf32>
    %482 = arith.mulf %480, %481 : vector<4x1xf32>
    %cst_171 = arith.constant 9.99999974E-6 : f32
    %483 = vector.broadcast %cst_171 : f32 to vector<4x1xf32>
    %484 = arith.addf %482, %483 : vector<4x1xf32>
    %485 = math.rsqrt %484 : vector<4x1xf32>
    %486 = vector.broadcast %485 : vector<4x1xf32> to vector<4x512xf32>
    %487 = arith.mulf %477, %486 : vector<4x512xf32>
    %c4_172 = arith.constant 4 : index
    %488 = memref.load %arg0[%c4_172] : memref<6xf32, #tpu.memory_space<smem>>
    %489 = vector.broadcast %488 : f32 to vector<4x512xf32>
    %490 = arith.mulf %489, %487 : vector<4x512xf32>
    %491 = arith.addf %302, %490 : vector<4x512xf32>
    %cst_173 = arith.constant 0.000000e+00 : f32
    %492 = vector.broadcast %cst_173 : f32 to vector<4x512xf32>
    %493 = arith.maximumf %0, %492 : vector<4x512xf32>
    %494 = arith.andi %16, %61 : vector<1x512xi1>
    %c34_i32 = arith.constant 34 : i32
    %495 = tpu.dynamic_rotate %493 by %c34_i32 dim 1 : vector<4x512xf32>, i32 -> vector<4x512xf32>
    %cst_174 = arith.constant 0.000000e+00 : f32
    %496 = vector.shape_cast %494 : vector<1x512xi1> to vector<1x512xi1>
    %497 = vector.broadcast %496 : vector<1x512xi1> to vector<4x512xi1>
    %498 = vector.broadcast %cst_174 : f32 to vector<4x512xf32>
    %499 = arith.select %497, %495, %498 : vector<4x512xi1>, vector<4x512xf32>
    %c0_175 = arith.constant 0 : index
    %c0_176 = arith.constant 0 : index
    %c0_177 = arith.constant 0 : index
    %500 = vector.load %arg6[%c0_175, %c0_176, %c0_177] : memref<9x4x1xf32, #tpu.memory_space<vmem>>, vector<1x4x1xf32>
    %501 = vector.shape_cast %500 : vector<1x4x1xf32> to vector<4x1xf32>
    %502 = vector.broadcast %501 : vector<4x1xf32> to vector<4x512xf32>
    %503 = arith.mulf %502, %499 : vector<4x512xf32>
    %504 = arith.andi %16, %79 : vector<1x512xi1>
    %c32_i32 = arith.constant 32 : i32
    %505 = tpu.dynamic_rotate %493 by %c32_i32 dim 1 : vector<4x512xf32>, i32 -> vector<4x512xf32>
    %cst_178 = arith.constant 0.000000e+00 : f32
    %506 = vector.shape_cast %504 : vector<1x512xi1> to vector<1x512xi1>
    %507 = vector.broadcast %506 : vector<1x512xi1> to vector<4x512xi1>
    %508 = vector.broadcast %cst_178 : f32 to vector<4x512xf32>
    %509 = arith.select %507, %505, %508 : vector<4x512xi1>, vector<4x512xf32>
    %c1_179 = arith.constant 1 : index
    %c0_180 = arith.constant 0 : index
    %c0_181 = arith.constant 0 : index
    %510 = vector.load %arg6[%c1_179, %c0_180, %c0_181] : memref<9x4x1xf32, #tpu.memory_space<vmem>>, vector<1x4x1xf32>
    %511 = vector.shape_cast %510 : vector<1x4x1xf32> to vector<4x1xf32>
    %512 = vector.broadcast %511 : vector<4x1xf32> to vector<4x512xf32>
    %513 = arith.mulf %512, %509 : vector<4x512xf32>
    %514 = arith.addf %503, %513 : vector<4x512xf32>
    %515 = arith.andi %16, %97 : vector<1x512xi1>
    %c30_i32 = arith.constant 30 : i32
    %516 = tpu.dynamic_rotate %493 by %c30_i32 dim 1 : vector<4x512xf32>, i32 -> vector<4x512xf32>
    %cst_182 = arith.constant 0.000000e+00 : f32
    %517 = vector.shape_cast %515 : vector<1x512xi1> to vector<1x512xi1>
    %518 = vector.broadcast %517 : vector<1x512xi1> to vector<4x512xi1>
    %519 = vector.broadcast %cst_182 : f32 to vector<4x512xf32>
    %520 = arith.select %518, %516, %519 : vector<4x512xi1>, vector<4x512xf32>
    %c2_183 = arith.constant 2 : index
    %c0_184 = arith.constant 0 : index
    %c0_185 = arith.constant 0 : index
    %521 = vector.load %arg6[%c2_183, %c0_184, %c0_185] : memref<9x4x1xf32, #tpu.memory_space<vmem>>, vector<1x4x1xf32>
    %522 = vector.shape_cast %521 : vector<1x4x1xf32> to vector<4x1xf32>
    %523 = vector.broadcast %522 : vector<4x1xf32> to vector<4x512xf32>
    %524 = arith.mulf %523, %520 : vector<4x512xf32>
    %525 = arith.addf %514, %524 : vector<4x512xf32>
    %526 = arith.andi %34, %61 : vector<1x512xi1>
    %c2_i32_186 = arith.constant 2 : i32
    %527 = tpu.dynamic_rotate %493 by %c2_i32_186 dim 1 : vector<4x512xf32>, i32 -> vector<4x512xf32>
    %cst_187 = arith.constant 0.000000e+00 : f32
    %528 = vector.shape_cast %526 : vector<1x512xi1> to vector<1x512xi1>
    %529 = vector.broadcast %528 : vector<1x512xi1> to vector<4x512xi1>
    %530 = vector.broadcast %cst_187 : f32 to vector<4x512xf32>
    %531 = arith.select %529, %527, %530 : vector<4x512xi1>, vector<4x512xf32>
    %c3_188 = arith.constant 3 : index
    %c0_189 = arith.constant 0 : index
    %c0_190 = arith.constant 0 : index
    %532 = vector.load %arg6[%c3_188, %c0_189, %c0_190] : memref<9x4x1xf32, #tpu.memory_space<vmem>>, vector<1x4x1xf32>
    %533 = vector.shape_cast %532 : vector<1x4x1xf32> to vector<4x1xf32>
    %534 = vector.broadcast %533 : vector<4x1xf32> to vector<4x512xf32>
    %535 = arith.mulf %534, %531 : vector<4x512xf32>
    %536 = arith.addf %525, %535 : vector<4x512xf32>
    %537 = arith.andi %34, %79 : vector<1x512xi1>
    %cst_191 = arith.constant 0.000000e+00 : f32
    %538 = vector.shape_cast %537 : vector<1x512xi1> to vector<1x512xi1>
    %539 = vector.broadcast %538 : vector<1x512xi1> to vector<4x512xi1>
    %540 = vector.broadcast %cst_191 : f32 to vector<4x512xf32>
    %541 = arith.select %539, %493, %540 : vector<4x512xi1>, vector<4x512xf32>
    %c4_192 = arith.constant 4 : index
    %c0_193 = arith.constant 0 : index
    %c0_194 = arith.constant 0 : index
    %542 = vector.load %arg6[%c4_192, %c0_193, %c0_194] : memref<9x4x1xf32, #tpu.memory_space<vmem>>, vector<1x4x1xf32>
    %543 = vector.shape_cast %542 : vector<1x4x1xf32> to vector<4x1xf32>
    %544 = vector.broadcast %543 : vector<4x1xf32> to vector<4x512xf32>
    %545 = arith.mulf %544, %541 : vector<4x512xf32>
    %546 = arith.addf %536, %545 : vector<4x512xf32>
    %547 = arith.andi %34, %97 : vector<1x512xi1>
    %c510_i32 = arith.constant 510 : i32
    %548 = tpu.dynamic_rotate %493 by %c510_i32 dim 1 : vector<4x512xf32>, i32 -> vector<4x512xf32>
    %cst_195 = arith.constant 0.000000e+00 : f32
    %549 = vector.shape_cast %547 : vector<1x512xi1> to vector<1x512xi1>
    %550 = vector.broadcast %549 : vector<1x512xi1> to vector<4x512xi1>
    %551 = vector.broadcast %cst_195 : f32 to vector<4x512xf32>
    %552 = arith.select %550, %548, %551 : vector<4x512xi1>, vector<4x512xf32>
    %c5_196 = arith.constant 5 : index
    %c0_197 = arith.constant 0 : index
    %c0_198 = arith.constant 0 : index
    %553 = vector.load %arg6[%c5_196, %c0_197, %c0_198] : memref<9x4x1xf32, #tpu.memory_space<vmem>>, vector<1x4x1xf32>
    %554 = vector.shape_cast %553 : vector<1x4x1xf32> to vector<4x1xf32>
    %555 = vector.broadcast %554 : vector<4x1xf32> to vector<4x512xf32>
    %556 = arith.mulf %555, %552 : vector<4x512xf32>
    %557 = arith.addf %546, %556 : vector<4x512xf32>
    %558 = arith.andi %52, %61 : vector<1x512xi1>
    %c482_i32 = arith.constant 482 : i32
    %559 = tpu.dynamic_rotate %493 by %c482_i32 dim 1 : vector<4x512xf32>, i32 -> vector<4x512xf32>
    %cst_199 = arith.constant 0.000000e+00 : f32
    %560 = vector.shape_cast %558 : vector<1x512xi1> to vector<1x512xi1>
    %561 = vector.broadcast %560 : vector<1x512xi1> to vector<4x512xi1>
    %562 = vector.broadcast %cst_199 : f32 to vector<4x512xf32>
    %563 = arith.select %561, %559, %562 : vector<4x512xi1>, vector<4x512xf32>
    %c6_200 = arith.constant 6 : index
    %c0_201 = arith.constant 0 : index
    %c0_202 = arith.constant 0 : index
    %564 = vector.load %arg6[%c6_200, %c0_201, %c0_202] : memref<9x4x1xf32, #tpu.memory_space<vmem>>, vector<1x4x1xf32>
    %565 = vector.shape_cast %564 : vector<1x4x1xf32> to vector<4x1xf32>
    %566 = vector.broadcast %565 : vector<4x1xf32> to vector<4x512xf32>
    %567 = arith.mulf %566, %563 : vector<4x512xf32>
    %568 = arith.addf %557, %567 : vector<4x512xf32>
    %569 = arith.andi %52, %79 : vector<1x512xi1>
    %c480_i32 = arith.constant 480 : i32
    %570 = tpu.dynamic_rotate %493 by %c480_i32 dim 1 : vector<4x512xf32>, i32 -> vector<4x512xf32>
    %cst_203 = arith.constant 0.000000e+00 : f32
    %571 = vector.shape_cast %569 : vector<1x512xi1> to vector<1x512xi1>
    %572 = vector.broadcast %571 : vector<1x512xi1> to vector<4x512xi1>
    %573 = vector.broadcast %cst_203 : f32 to vector<4x512xf32>
    %574 = arith.select %572, %570, %573 : vector<4x512xi1>, vector<4x512xf32>
    %c7_204 = arith.constant 7 : index
    %c0_205 = arith.constant 0 : index
    %c0_206 = arith.constant 0 : index
    %575 = vector.load %arg6[%c7_204, %c0_205, %c0_206] : memref<9x4x1xf32, #tpu.memory_space<vmem>>, vector<1x4x1xf32>
    %576 = vector.shape_cast %575 : vector<1x4x1xf32> to vector<4x1xf32>
    %577 = vector.broadcast %576 : vector<4x1xf32> to vector<4x512xf32>
    %578 = arith.mulf %577, %574 : vector<4x512xf32>
    %579 = arith.addf %568, %578 : vector<4x512xf32>
    %580 = arith.andi %52, %97 : vector<1x512xi1>
    %c478_i32 = arith.constant 478 : i32
    %581 = tpu.dynamic_rotate %493 by %c478_i32 dim 1 : vector<4x512xf32>, i32 -> vector<4x512xf32>
    %cst_207 = arith.constant 0.000000e+00 : f32
    %582 = vector.shape_cast %580 : vector<1x512xi1> to vector<1x512xi1>
    %583 = vector.broadcast %582 : vector<1x512xi1> to vector<4x512xi1>
    %584 = vector.broadcast %cst_207 : f32 to vector<4x512xf32>
    %585 = arith.select %583, %581, %584 : vector<4x512xi1>, vector<4x512xf32>
    %c8_208 = arith.constant 8 : index
    %c0_209 = arith.constant 0 : index
    %c0_210 = arith.constant 0 : index
    %586 = vector.load %arg6[%c8_208, %c0_209, %c0_210] : memref<9x4x1xf32, #tpu.memory_space<vmem>>, vector<1x4x1xf32>
    %587 = vector.shape_cast %586 : vector<1x4x1xf32> to vector<4x1xf32>
    %588 = vector.broadcast %587 : vector<4x1xf32> to vector<4x512xf32>
    %589 = arith.mulf %588, %585 : vector<4x512xf32>
    %590 = arith.addf %579, %589 : vector<4x512xf32>
    %c0_211 = arith.constant 0 : index
    %c0_212 = arith.constant 0 : index
    %c0_213 = arith.constant 0 : index
    %591 = vector.load %arg7[%c0_211, %c0_212, %c0_213] : memref<4x4x1xf32, #tpu.memory_space<vmem>>, vector<1x4x1xf32>
    %592 = vector.shape_cast %591 : vector<1x4x1xf32> to vector<4x1xf32>
    %593 = vector.extract_strided_slice %590 {offsets = [0, 0], sizes = [1, 512], strides = [1, 1]} : vector<4x512xf32> to vector<1x512xf32>
    %594 = vector.broadcast %592 : vector<4x1xf32> to vector<4x512xf32>
    %595 = vector.broadcast %593 : vector<1x512xf32> to vector<4x512xf32>
    %596 = arith.mulf %594, %595 : vector<4x512xf32>
    %c1_214 = arith.constant 1 : index
    %c0_215 = arith.constant 0 : index
    %c0_216 = arith.constant 0 : index
    %597 = vector.load %arg7[%c1_214, %c0_215, %c0_216] : memref<4x4x1xf32, #tpu.memory_space<vmem>>, vector<1x4x1xf32>
    %598 = vector.shape_cast %597 : vector<1x4x1xf32> to vector<4x1xf32>
    %599 = vector.extract_strided_slice %590 {offsets = [1, 0], sizes = [1, 512], strides = [1, 1]} : vector<4x512xf32> to vector<1x512xf32>
    %600 = vector.broadcast %598 : vector<4x1xf32> to vector<4x512xf32>
    %601 = vector.broadcast %599 : vector<1x512xf32> to vector<4x512xf32>
    %602 = arith.mulf %600, %601 : vector<4x512xf32>
    %603 = arith.addf %596, %602 : vector<4x512xf32>
    %c2_217 = arith.constant 2 : index
    %c0_218 = arith.constant 0 : index
    %c0_219 = arith.constant 0 : index
    %604 = vector.load %arg7[%c2_217, %c0_218, %c0_219] : memref<4x4x1xf32, #tpu.memory_space<vmem>>, vector<1x4x1xf32>
    %605 = vector.shape_cast %604 : vector<1x4x1xf32> to vector<4x1xf32>
    %606 = vector.extract_strided_slice %590 {offsets = [2, 0], sizes = [1, 512], strides = [1, 1]} : vector<4x512xf32> to vector<1x512xf32>
    %607 = vector.broadcast %605 : vector<4x1xf32> to vector<4x512xf32>
    %608 = vector.broadcast %606 : vector<1x512xf32> to vector<4x512xf32>
    %609 = arith.mulf %607, %608 : vector<4x512xf32>
    %610 = arith.addf %603, %609 : vector<4x512xf32>
    %c3_220 = arith.constant 3 : index
    %c0_221 = arith.constant 0 : index
    %c0_222 = arith.constant 0 : index
    %611 = vector.load %arg7[%c3_220, %c0_221, %c0_222] : memref<4x4x1xf32, #tpu.memory_space<vmem>>, vector<1x4x1xf32>
    %612 = vector.shape_cast %611 : vector<1x4x1xf32> to vector<4x1xf32>
    %613 = vector.extract_strided_slice %590 {offsets = [3, 0], sizes = [1, 512], strides = [1, 1]} : vector<4x512xf32> to vector<1x512xf32>
    %614 = vector.broadcast %612 : vector<4x1xf32> to vector<4x512xf32>
    %615 = vector.broadcast %613 : vector<1x512xf32> to vector<4x512xf32>
    %616 = arith.mulf %614, %615 : vector<4x512xf32>
    %617 = arith.addf %610, %616 : vector<4x512xf32>
    %cst_223 = arith.constant dense<0.000000e+00> : vector<4xf32>
    %618 = vector.multi_reduction <add>, %617, %cst_223 [1] : vector<4x512xf32> to vector<4xf32>
    %619 = vector.shape_cast %618 : vector<4xf32> to vector<4x1xf32>
    %cst_224 = arith.constant 0.001953125 : f32
    %620 = vector.broadcast %cst_224 : f32 to vector<4x1xf32>
    %621 = arith.mulf %619, %620 : vector<4x1xf32>
    %622 = vector.broadcast %621 : vector<4x1xf32> to vector<4x512xf32>
    %623 = arith.subf %617, %622 : vector<4x512xf32>
    %624 = arith.mulf %623, %623 : vector<4x512xf32>
    %cst_225 = arith.constant dense<0.000000e+00> : vector<4xf32>
    %625 = vector.multi_reduction <add>, %624, %cst_225 [1] : vector<4x512xf32> to vector<4xf32>
    %626 = vector.shape_cast %625 : vector<4xf32> to vector<4x1xf32>
    %cst_226 = arith.constant 0.001953125 : f32
    %627 = vector.broadcast %cst_226 : f32 to vector<4x1xf32>
    %628 = arith.mulf %626, %627 : vector<4x1xf32>
    %cst_227 = arith.constant 9.99999974E-6 : f32
    %629 = vector.broadcast %cst_227 : f32 to vector<4x1xf32>
    %630 = arith.addf %628, %629 : vector<4x1xf32>
    %631 = math.rsqrt %630 : vector<4x1xf32>
    %632 = vector.broadcast %631 : vector<4x1xf32> to vector<4x512xf32>
    %633 = arith.mulf %623, %632 : vector<4x512xf32>
    %c5_228 = arith.constant 5 : index
    %634 = memref.load %arg0[%c5_228] : memref<6xf32, #tpu.memory_space<smem>>
    %635 = vector.broadcast %634 : f32 to vector<4x512xf32>
    %636 = arith.mulf %635, %633 : vector<4x512xf32>
    %637 = arith.addf %491, %636 : vector<4x512xf32>
    %c0_229 = arith.constant 0 : index
    %c0_230 = arith.constant 0 : index
    %638 = vector.load %arg8[%c0_229, %c0_230] : memref<4x512xf32, #tpu.memory_space<vmem>>, vector<4x512xf32>
    tpu.vector_store %arg8[%c0_229, %c0_230], %637 {strides = array<i32>} : memref<4x512xf32, #tpu.memory_space<vmem>>, vector<4x512xf32>,
    return
  }
}

</mosaic_0001>

<bundles_post_ra>
// kernel: tpu_custom_call.1
= control target key start
LH: loop header
LB: loop body
LE: loop exit
PB: predicated region body
PF: predicated region fallthrough
CT: control target
= control target key end

     0   :  { %13 = vsyncpa [#allocation4], 0  ;;  %s4375_s0 = inlined_call_operand.vmem [shape: f32[6], index: 0, kind: input, shape index: {}]   ;;  %s4376_s1 = inlined_call_operand.vmem [shape: f32[4,512], index: 1, kind: input, shape index: {}]   ;;  %s4377_s2 = inlined_call_operand.vmem [shape: f32[9,4,1], index: 2, kind: input, shape index: {}]   ;;  %s4378_s3 = inlined_call_operand.vmem [shape: f32[4,4,1], index: 3, kind: input, shape index: {}]   ;;  %s4379_s4 = inlined_call_operand.vmem [shape: f32[9,4,1], index: 4, kind: input, shape index: {}]   ;;  %s4380_s5 = inlined_call_operand.vmem [shape: f32[4,4,1], index: 5, kind: input, shape index: {}]   ;;  %s4381_s6 = inlined_call_operand.vmem [shape: f32[9,4,1], index: 6, kind: input, shape index: {}]   ;;  %s4382_s7 = inlined_call_operand.vmem [shape: f32[4,4,1], index: 7, kind: input, shape index: {}]   ;;  %s4383_s8 = inlined_call_operand.hbm [shape: f32[4,512], index: 8, kind: output, shape index: {}]  }
   0x1   :  { %14 = vsyncpa [#allocation3], 0  ;;  %s21_s29 = sshll.u32 %s4375_s0, 4  ;;  %s22_s29 = int_to_ptr.vmem [resolvable:$true] %s21_s29 }
   0x2   :  { %s2092_s30 = scalar_lea.vmem %s22_s29, 16  ;;  %p2097_p1 = scmp.lt.s32.totalorder %s22_s29, %s22_s29 }
   0x3   :  { %p2093_p0 = scmp.ne.s32.totalorder %s22_s29, %s2092_s30  ;;  %p2098_p2 = scmp.lt.s32.totalorder %s2092_s30, %s2092_s30 }
   0x5   :  { %p2099_p3 = por %p2098_p2, %p2097_p1 }
   0x7   :  { %p2100_p4 = pnand %p2099_p3, %p2093_p0 }
   0x9   :  { %2103 = shalt.err (!%p2100_p4)
}
   0xa   :  { %s2128_s9 = smov [#allocation2]  }
   0xb   :  { %24 = dma.vmem_to_smem %s22_s29, 16, %s2128_s9, [#allocation4]  }
   0xc   :  { %2124 = dma.done.wait [#allocation4], 16  }
   0xd   :  { %2125 = vsyncadd [#allocation4], 4294967280 }
   0xe   :  { %42 = sfence }
   0xf   :  { %v2199_v0 = vld [vmem:[%s4376_s1] sm:$0xff]  ;;  %v2129_v2 = vmov 0   ;;  %s2130_s13 = smov 17   ;;  %v2216_v5 = vld [vmem:[%s4376_s1 + $0x8] sm:$0xff]  ;;  %s2131_s18 = smov 16   ;;  %v4384_v23 = vlaneseq  ;;  %v4543_v61 = vmov 0 }
  0x10   :  { %v329_v1 = vld [vmem:[%s4377_s2] sm:$0xf]  ;;  %2073 = vset.pattern.permute.xlu0 %v2129_v2  ;;  %300 = vrot.lane.b32.xlu1 %v2199_v0, %s2130_s13  ;;  %v2208_v3 = vcombine.high %v2199_v0, %v2199_v0  ;;  %v2015_v4 = vld [vmem:[%s4377_s2 + $0x4] sm:$0xf]  ;;  %v2222_v6 = vcombine.high %v2216_v5, %v2216_v5  ;;  %v2016_v7 = vld [vmem:[%s4377_s2 + $0x8] sm:$0xf] }
  0x11   :  { %336 = vperm.xlu0 %2073, %v329_v1   ;;  %2074 = vset.pattern.permute.xlu1 %v2129_v2  ;;  %s2132_s21 = smov 15   ;;  %v2017_v8 = vld [vmem:[%s4377_s2 + $0xc] sm:$0xf]  ;;  %s2133_s24 = smov 1   ;;  %v2018_v9 = vld [vmem:[%s4377_s2 + $0x10] sm:$0xf] }
  0x12   :  { %4529 = vst [vmem:[#allocation8_spill] sm:$0xff] %v2208_v3  ;;  %v2019_v10 = vld [vmem:[%s4377_s2 + $0x14] sm:$0xf]  ;;  %s2134_s29 = smov 127   ;;  %v2020_v11 = vld [vmem:[%s4377_s2 + $0x18] sm:$0xf] }
  0x13   :  { %s2135_s10 = smov 113   ;;  %v2021_v12 = vld [vmem:[%s4377_s2 + $0x1c] sm:$0xf]  ;;  %s2136_s0 = smov 112   ;;  %v2022_v13 = vld [vmem:[%s4377_s2 + $0x20] sm:$0xf] }
  0x14   :  { %302 = vrot.lane.b32.xlu1 %v2208_v3, %s2130_s13  ;;  %s2137_s16 = smov 111   ;;  %v850_v14 = vld [vmem:[%s4378_s3] sm:$0xf]  ;;  %v2027_v15 = vld [vmem:[%s4378_s3 + $0x8] sm:$0xf]  ;;  %v2333_v24 = vmax.f32 %v2199_v0, 0.0 }
  0x15   :  { %392 = vperm.xlu0 %2073, %v2015_v4   ;;  %v2026_v16 = vld [vmem:[%s4378_s3 + $0x4] sm:$0xf]  ;;  %v1024_v17 = vld [vmem:[%s4379_s4] sm:$0xf]  ;;  %v2028_v18 = vld [vmem:[%s4378_s3 + $0xc] sm:$0xf] }
  0x16   :  { %v2029_v19 = vld [vmem:[%s4379_s4 + $0x4] sm:$0xf]  ;;  %v2030_v20 = vld [vmem:[%s4379_s4 + $0x8] sm:$0xf]  ;;  %v1476_v21 = vld [vmem:[%s4381_s6] sm:$0xf]  ;;  %v2346_v28 = vcombine.high %v2333_v24, %v2333_v24 }
  0x17   :  { %v2041_v22 = vld [vmem:[%s4381_s6 + $0x4] sm:$0xf]  ;;  %4530 = vst [vmem:[#allocation9_spill] sm:$0xff] %v2333_v24  ;;  %v2042_v25 = vld [vmem:[%s4381_s6 + $0x8] sm:$0xf]  ;;  %v2342_v27 = vand.u32 127, %v4384_v23 }
  0x18   :  { %347 = vrot.lane.b32.xlu1 %v2199_v0, %s2131_s18  ;;  %v2031_v26 = vld [vmem:[%s4379_s4 + $0xc] sm:$0xf]  ;;  %4531 = vst [vmem:[#allocation10_spill] sm:$0xff] %v2346_v28  ;;  %s2138_s23 = smov 34   ;;  %v2352_v30 = vmax.f32 %v2216_v5, 0.0  ;;  %s2139_s25 = smov 32  }
  0x19   :  { %306 = vrot.lane.b32.xlu0 %v2222_v6, %s2130_s13  ;;  %v47_v29 = vadd.s32 128, %v2342_v27  ;;  %v50_v31 = vand.u32 255, %v2342_v27  ;;  %v48_v32 = vadd.s32 256, %v2342_v27  ;;  %v49_v34 = vadd.s32 384, %v2342_v27  ;;  %v2043_v42 = vld [vmem:[%s4381_s6 + $0xc] sm:$0xf] }
  0x1a   :  { %v2361_v35 = vcombine.high %v2352_v30, %v2352_v30  ;;  %s2140_s28 = smov 30   ;;  %v4545_v62 = vmov 0  ;;  %v4393_v63 = vmov 0.0   ;;  %v4548_v4 = vmov 0  ;;  %s2142_s11 = smov 2  }
  0x1b   :  { %v51_v33 = vand.u32 255, %v47_v29  ;;  %v2363_v36 = vshra.s32 %v50_v31, 4  ;;  %v52_v37 = vand.u32 255, %v48_v32  ;;  %v53_v39 = vand.u32 255, %v49_v34  ;;  %s2864_s19 = sld [smem:[#allocation2 + $0x2]]  ;;  %s2143_s20 = smov 126  }
  0x1c   :  { %353 = vrot.lane.b32.xlu1 %v2222_v6, %s2131_s18  ;;  %4532 = vst [vmem:[#allocation11_spill] sm:$0xff] %v2361_v35  ;;  %v2376_v43 = vand.u32 15, %v50_v31  ;;  %v4568_v34 = vmov 0  ;;  %s2874_s3 = sld [smem:[#allocation2 + $0x3]]  ;;  %s2144_s27 = smov 98  }
  0x1d   :  { %349 = vrot.lane.b32.xlu0 %v2208_v3, %s2131_s18  ;;  %4533 = vst [vmem:[#allocation12_spill] sm:$0xff] %v2363_v36  ;;  %v2365_v38 = vshra.s32 %v51_v33, 4  ;;  %v2369_v40 = vand.u32 15, %v51_v33  ;;  %v78_v44 = vadd.s32 4294967295, %v2363_v36  ;;  %v2379_v45 = vshra.s32 %v52_v37, 4  ;;  %s2895_s2 = sld [smem:[#allocation2 + $0x1]] }
  0x1e   :  { %4536 = vst [vmem:[#allocation15_spill] sm:$0xff] %v2376_v43  ;;  %v2381_v46 = vand.u32 15, %v52_v37  ;;  %v2386_v48 = vshra.s32 %v53_v39, 4  ;;  %v2388_v49 = vand.u32 15, %v53_v39  ;;  %v2396_v52 = vadd.s32 4294967295, %v2376_v43  ;;  %s2145_s12 = smov 96  }
  0x1f   :  { %4534 = vst [vmem:[#allocation13_spill] sm:$0xff] %v2365_v38  ;;  %4535 = vst [vmem:[#allocation14_spill] sm:$0xff] %v2369_v40  ;;  %v2384_v47 = vadd.s32 4294967295, %v2365_v38  ;;  %v2391_v50 = vadd.s32 4294967295, %v2369_v40  ;;  %vm82_vm0 = vcmp.ge.s32.totalorder %v78_v44, 0  ;;  %vm86_vm1 = vcmp.lt.s32.totalorder %v78_v44, 16 }
  0x20   :  { %304 = vrot.lane.b32.xlu1 %v2216_v5, %s2130_s13  ;;  %4537 = vst [vmem:[#allocation16_spill] sm:$0xff] %v2379_v45  ;;  %4538 = vst [vmem:[#allocation17_spill] sm:$0xff] %v2381_v46  ;;  %v2399_v53 = vadd.s32 4294967295, %v2379_v45  ;;  %v2402_v54 = vadd.s32 4294967295, %v2381_v46  ;;  %v2408_v55 = vadd.s32 4294967295, %v2386_v48  ;;  %v2411_v56 = vadd.s32 4294967295, %v2388_v49 }
  0x21   :  { %452 = vperm.xlu0 %2073, %v2016_v7   ;;  %4539 = vst [vmem:[#allocation18_spill] sm:$0xff] %v2386_v48  ;;  %4540 = vst [vmem:[#allocation19_spill] sm:$0xff] %v2388_v49  ;;  %vm87_vm3 = vcmp.lt.s32.totalorder %v2384_v47, 16  ;;  %vm95_vm6 = vcmp.ge.s32.totalorder %v2365_v38, 0  ;;  %vm99_vm7 = vcmp.lt.s32.totalorder %v2365_v38, 16  ;;  %vm94_vm8 = vcmp.ge.s32.totalorder %v2363_v36, 0 }
  0x22   :  { %vm98_vm9 = vcmp.lt.s32.totalorder %v2363_v36, 16  ;;  %vm214_vm10 = vcmp.gt.s32.totalorder %v2363_v36, 0  ;;  %vm215_vm11 = vcmp.gt.s32.totalorder %v2365_v38, 0  ;;  %v2428_v58 = vadd.s32 1, %v2376_v43  ;;  %vm2443_vm13 = vmand %vm95_vm6, %vm99_vm7  ;;  %s2147_s15 = smov [#allocation5]  }
  0x23   :  { %v2437_v60 = vadd.s32 1, %v2388_v49  ;;  %v4544_v61 = vsel %vm2443_vm13, 4294967295, %v4543_v61  ;;  %vm96_vm14 = vcmp.ge.s32.totalorder %v2379_v45, 0  ;;  %vm100_vm15 = vcmp.lt.s32.totalorder %v2379_v45, 16  ;;  %vm2459_vm6 = vmand %vm94_vm8, %vm98_vm9 }
  0x24   :  { %407 = vrot.lane.b32.xlu1 %v2199_v0, %s2132_s21  ;;  %4541 = vst [vmem:[#allocation20_spill] sm:$0xff] %v2428_v58  ;;  %vm97_vm2 = vcmp.ge.s32.totalorder %v2386_v48, 0  ;;  %vm101_vm12 = vcmp.lt.s32.totalorder %v2386_v48, 16  ;;  %v4546_v62 = vsel %vm2459_vm6, 4294967295, %v4545_v62  ;;  %v1999_v1 = vsel %vm214_vm10, 1.0, %v4393_v63  ;;  %vm2471_vm7 = vmand %vm82_vm0, %vm86_vm1 }
  0x25   :  { %351 = vrot.lane.b32.xlu0 %v2216_v5, %s2131_s18  ;;  %4547 = vst [vmem:[#allocation22_spill] sm:$0xff] %v4546_v62  ;;  %v2000_v2 = vsel %vm215_vm11, 1.0, %v4393_v63  ;;  %v4549_v4 = vsel %vm2471_vm7, 4294967295, %v4548_v4  ;;  %vm230_vm0 = vcmp.lt.s32.totalorder %v2363_v36, 15  ;;  %vm231_vm1 = vcmp.lt.s32.totalorder %v2365_v38, 15  ;;  %vm2501_vm8 = vmand %vm96_vm14, %vm100_vm15 }
  0x26   :  { %4550 = vst [vmem:[#allocation23_spill] sm:$0xff] %v4549_v4  ;;  %vm246_vm10 = vcmp.gt.s32.totalorder %v2376_v43, 0  ;;  %vm247_vm9 = vcmp.gt.s32.totalorder %v2369_v40, 0  ;;  %vm2512_vm11 = vmand %vm97_vm2, %vm101_vm12  ;;  %vm4558_vm14 = vcmp.ge.s32.totalorder %v2384_v47, 0  ;;  %vm4563_vm12 = vcmp.ge.s32.totalorder %v2391_v50, 0 }
  0x27   :  { %vm2528_vm15 = vmand %vm4558_vm14, %vm87_vm3  ;;  %vm4562_vm3 = vcmp.lt.s32.totalorder %v2391_v50, 16  ;;  %v2556_v31 = vsel %vm2501_vm8, %v2216_v5, 0.0  ;;  %v2008_v32 = vsel %vm247_vm9, 1.0, %v4393_v63  ;;  %v2580_v37 = vsel %vm2512_vm11, %v2222_v6, 0.0 }
  0x28   :  { %413 = vrot.lane.b32.xlu1 %v2222_v6, %s2132_s21  ;;  %vm2547_vm14 = vmand %vm4563_vm12, %vm4562_vm3  ;;  %vm4567_vm3 = vcmp.ge.s32.totalorder %v2396_v52, 0  ;;  %vm4576_vm2 = vcmp.ge.s32.totalorder %v2399_v53, 0  ;;  %vm4588_vm5 = vcmp.ge.s32.totalorder %v2408_v55, 0 }
  0x29   :  { %409 = vrot.lane.b32.xlu0 %v2208_v3, %s2132_s21  ;;  %vm2571_vm12 = vmand %vm2471_vm7, %vm4567_vm3  ;;  %vm4574_vm3 = vcmp.lt.s32.totalorder %v2342_v27, 17 }
  0x2a   :  { %v4569_v34 = vsel %vm2571_vm12, 4294967295, %v4568_v34  ;;  %vm2597_vm9 = vmand %vm2528_vm15, %vm2547_vm14 }
  0x2b   :  { %4570 = vst [vmem:[#allocation28_spill] sm:$0xff] %v4569_v34 }
  0x2c   :  { %411 = vrot.lane.b32.xlu1 %v2216_v5, %s2132_s21 }
  0x2d   :  { %512 = vperm.xlu0 %2073, %v2017_v8   ;;  %v2033_v8 = vld [vmem:[%s4379_s4 + $0x14] sm:$0xf] }
  0x30   :  { %469 = vrot.lane.b32.xlu1 %v2208_v3, %s2133_s24 }
  0x31   :  { %467 = vrot.lane.b32.xlu0 %v2199_v0, %s2133_s24 }
  0x34   :  { %559 = vperm.xlu1 %2074, %v2018_v9   ;;  %v2485_v9 = vsel %vm2443_vm13, %v2208_v3, 0.0  ;;  %vm4593_vm13 = vcmp.ge.s32.totalorder %v2411_v56, 0 }
  0x35   :  { %473 = vrot.lane.b32.xlu0 %v2222_v6, %s2133_s24  ;;  %4551 = vst [vmem:[#allocation24_spill] sm:$0xff] %v2485_v9  ;;  %v4606_v9 = vmov 0 }
  0x38   :  { %619 = vperm.xlu1 %2074, %v2019_v10   ;;  %v2492_v10 = vadd.s32 1, %v2369_v40 }
  0x39   :  { %471 = vrot.lane.b32.xlu0 %v2216_v5, %s2133_s24 }
  0x3c   :  { %576 = vrot.lane.b32.xlu1 %v2208_v3, %s2134_s29 }
  0x3d   :  { %574 = vrot.lane.b32.xlu0 %v2199_v0, %s2134_s29 }
  0x40   :  { %679 = vperm.xlu1 %2074, %v2020_v11   ;;  %v2495_v11 = vadd.s32 1, %v2381_v46 }
  0x41   :  { %578 = vrot.lane.b32.xlu0 %v2216_v5, %s2134_s29 }
  0x44   :  { %634 = vrot.lane.b32.xlu1 %v2199_v0, %s2135_s10 }
  0x45   :  { %580 = vrot.lane.b32.xlu0 %v2222_v6, %s2134_s29 }
  0x48   :  { %638 = vrot.lane.b32.xlu1 %v2216_v5, %s2135_s10 }
  0x49   :  { %636 = vrot.lane.b32.xlu0 %v2208_v3, %s2135_s10 }
  0x4c   :  { %640 = vrot.lane.b32.xlu1 %v2222_v6, %s2135_s10 }
  0x4d   :  { %739 = vperm.xlu0 %2073, %v2021_v12   ;;  %v4552_v12 = vmov 0 }
  0x4e   :  { %v4553_v12 = vsel %vm2501_vm8, 4294967295, %v4552_v12 }
  0x50   :  { %696 = vrot.lane.b32.xlu1 %v2208_v3, %s2136_s0 }
  0x51   :  { %694 = vrot.lane.b32.xlu0 %v2199_v0, %s2136_s0 }
  0x54   :  { %799 = vperm.xlu1 %2074, %v2022_v13  }
  0x55   :  { %698 = vrot.lane.b32.xlu0 %v2216_v5, %s2136_s0 }
  0x58   :  { %754 = vrot.lane.b32.xlu1 %v2199_v0, %s2137_s16 }
  0x59   :  { %700 = vrot.lane.b32.xlu0 %v2222_v6, %s2136_s0 }
  0x5c   :  { %758 = vrot.lane.b32.xlu1 %v2216_v5, %s2137_s16 }
  0x5d   :  { %756 = vrot.lane.b32.xlu0 %v2208_v3, %s2137_s16 }
  0x60   :  { %853 = vperm.xlu1 %2074, %v850_v14   ;;  %v4555_v14 = vmov 0 }
  0x61   :  { %760 = vrot.lane.b32.xlu0 %v2222_v6, %s2137_s16  ;;  %v4556_v14 = vsel %vm2512_vm11, 4294967295, %v4555_v14  ;;  %vm4592_vm11 = vcmp.lt.s32.totalorder %v2411_v56, 16 }
  0x64   :  { %911 = vperm.xlu1 %2074, %v2027_v15   ;;  %v2519_v15 = vsel %vm2459_vm6, %v2199_v0, 0.0 }
  0x65   :  { %880 = vperm.xlu0 %2073, %v2026_v16   ;;  %4557 = vst [vmem:[#allocation26_spill] sm:$0xff] %v2519_v15 }
  0x68   :  { %1027 = vperm.xlu1 %2074, %v1024_v17   ;;  %v226_v17 = vadd.f32 1.0, %v1999_v1  ;;  %v4571_v1 = vmov 0 }
  0x69   :  { %942 = vperm.xlu0 %2073, %v2028_v18   ;;  %v227_v18 = vadd.f32 1.0, %v2000_v2  ;;  %v4572_v1 = vsel %vm2597_vm9, 4294967295, %v4571_v1 }
  0x6a   :  { %4573 = vst [vmem:[#allocation29_spill] sm:$0xff] %v4572_v1 }
  0x6c   :  { %1054 = vperm.xlu1 %2074, %v2029_v19   ;;  %v4559_v19 = vmov 0 }
  0x6d   :  { %1085 = vperm.xlu0 %2073, %v2030_v20   ;;  %v4560_v19 = vsel %vm2528_vm15, 4294967295, %v4559_v19 }
  0x6e   :  { %4561 = vst [vmem:[#allocation27_spill] sm:$0xff] %v4560_v19 }
  0x70   :  { %1479 = vperm.xlu1 %2074, %v1476_v21   ;;  %v2003_v21 = vsel %vm230_vm0, 1.0, %v4393_v63  ;;  %vm262_vm0 = vcmp.lt.s32.totalorder %v2376_v43, 15 }
  0x71   :  { %1519 = vperm.xlu0 %2073, %v2041_v22   ;;  %v2004_v22 = vsel %vm231_vm1, 1.0, %v4393_v63  ;;  %vm216_vm1 = vcmp.gt.s32.totalorder %v2379_v45, 0  ;;  %v2588_v44 = vadd.f32 %v2003_v21, %v226_v17  ;;  %v2011_v17 = vsel %vm262_vm0, 1.0, %v4393_v63 }
  0x72   :  { %v2590_v47 = vadd.f32 %v2004_v22, %v227_v18  ;;  %v2001_v18 = vsel %vm216_vm1, 1.0, %v4393_v63  ;;  %v4577_v22 = vmov 0  ;;  %vm4581_vm0 = vcmp.lt.s32.totalorder %v2402_v54, 16 }
  0x73   :  { %vm4582_vm1 = vcmp.ge.s32.totalorder %v2402_v54, 0  ;;  %v228_v43 = vadd.f32 1.0, %v2001_v18 }
  0x74   :  { %1563 = vperm.xlu1 %2074, %v2042_v25   ;;  %v2007_v25 = vsel %vm246_vm10, 1.0, %v4393_v63  ;;  %vm4566_vm10 = vcmp.lt.s32.totalorder %v2342_v27, 16 }
  0x75   :  { %1116 = vperm.xlu0 %2073, %v2031_v26   ;;  %v258_v50 = vadd.f32 1.0, %v2007_v25  ;;  %v4729_v26 = vmov 0 }
  0x79   :  { %1453 = vrot.lane.b32.xlu0 %v2346_v28, %s2138_s23 }
  0x7d   :  { %1490 = vrot.lane.b32.xlu0 %v2333_v24, %s2139_s25 }
  0x81   :  { %1496 = vrot.lane.b32.xlu0 %v2361_v35, %s2139_s25 }
  0x82   :  { %v2371_v41 = vpop.permute.xlu1 %300 }
  0x85   :  { %1607 = vperm.xlu0 %2073, %v2043_v42  }
  0x86   :  { %v2393_v51 = vpop.permute.xlu1 %302 }
  0x89   :  { %1494 = vrot.lane.b32.xlu0 %v2352_v30, %s2139_s25 }
  0x8a   :  { %v2419_v57 = vpop.permute.xlu1 %347 }
  0x8c   :  { %v2431_v59 = vpop.permute.xlu0 %336 }
  0x8d   :  { %4542 = vst [vmem:[#allocation21_spill] sm:$0xff] %v2431_v59  ;;  %1536 = vrot.lane.b32.xlu0 %v2346_v28, %s2140_s28  ;;  %v274_v59 = vadd.f32 %v2011_v17, %v258_v50 }
  0x8e   :  { %v2475_v7 = vpop.permute.xlu1 %353 }
  0x8f   :  { %v359_v33 = vsel %vm4566_vm10, %v2475_v7, %v2419_v57  ;;  %vm217_vm10 = vcmp.gt.s32.totalorder %v2386_v48, 0 }
  0x90   :  { %v2506_v13 = vpop.permute.xlu0 %392  ;;  %v2617_v21 = vsel %vm2471_vm7, %v359_v33, 0.0  ;;  %v2002_v39 = vsel %vm217_vm10, 1.0, %v4393_v63  ;;  %v376_v16 = vsel %vm2471_vm7, %v359_v33, -inf  ;;  %vm4586_vm10 = vcmp.lt.s32.totalorder %v2369_v40, 15 }
  0x91   :  { %4554 = vst [vmem:[#allocation25_spill] sm:$0xff] %v2506_v13  ;;  %1166 = vperm.xlu0 %2073, %v2033_v8   ;;  %v259_v8 = vadd.f32 1.0, %v2008_v32  ;;  %v2012_v34 = vsel %vm4586_vm10, 1.0, %v4393_v63  ;;  %vm2671_vm10 = vmand %vm4593_vm13, %vm4592_vm11  ;;  %v4594_v63 = vmov 0  ;;  %vm4600_vm13 = vcmp.lt.s32.totalorder %v2428_v58, 16 }
  0x92   :  { %v2551_v29 = vpop.permute.xlu1 %304  ;;  %v4595_v63 = vsel %vm2671_vm10, 4294967295, %v4594_v63  ;;  %vm2698_vm11 = vmand %vm2471_vm7, %vm4600_vm13  ;;  %vm4622_vm7 = vcmp.ge.s32.totalorder %v2492_v10, 0 }
  0x93   :  { %4596 = vst [vmem:[#allocation33_spill] sm:$0xff] %v4595_v63 }
  0x94   :  { %v2584_v42 = vpop.permute.xlu0 %306 }
  0x95   :  { %v312_v2 = vsel %vm4574_vm3, %v2584_v42, %v2371_v41  ;;  %1578 = vrot.lane.b32.xlu0 %v2333_v24, %s2142_s11  ;;  %vm4575_vm3 = vcmp.lt.s32.totalorder %v2399_v53, 16 }
  0x96   :  { %vm2623_vm4 = vmand %vm4576_vm2, %vm4575_vm3  ;;  %v2629_v25 = vsel %vm2571_vm12, %v312_v2, 0.0  ;;  %v325_v32 = vsel %vm2571_vm12, %v312_v2, -inf  ;;  %v2633_v20 = vpop.permute.xlu1 %407  ;;  %vm4580_vm2 = vcmp.lt.s32.totalorder %v2342_v27, 17  ;;  %v4583_v2 = vmov 0 }
  0x97   :  { %v4578_v22 = vsel %vm2623_vm4, 4294967295, %v4577_v22  ;;  %v311_v53 = vsel %vm4580_vm2, %v2371_v41, %v2393_v51  ;;  %vm2648_vm3 = vmand %vm4582_vm1, %vm4581_vm0  ;;  %v372_v23 = vadd.f32 %v2617_v21, %v2629_v25  ;;  %vm4587_vm2 = vcmp.lt.s32.totalorder %v2408_v55, 16 }
  0x98   :  { %4579 = vst [vmem:[#allocation30_spill] sm:$0xff] %v4578_v22  ;;  %v4584_v2 = vsel %vm2648_vm3, 4294967295, %v4583_v2  ;;  %vm2661_vm12 = vmand %vm4588_vm5, %vm4587_vm2  ;;  %v4589_v41 = vmov 0  ;;  %v380_v54 = vmax.f32 %v325_v32, %v376_v16  ;;  %v350_v33 = vpop.permute.xlu0 %349  ;;  %vm232_vm0 = vcmp.lt.s32.totalorder %v2379_v45, 15 }
  0x99   :  { %4585 = vst [vmem:[#allocation31_spill] sm:$0xff] %v4584_v2  ;;  %v4590_v41 = vsel %vm2661_vm12, 4294967295, %v4589_v41  ;;  %vm4597_vm5 = vcmp.lt.s32.totalorder %v2342_v27, 16  ;;  %1584 = vrot.lane.b32.xlu0 %v2361_v35, %s2142_s11  ;;  %v229_v16 = vadd.f32 1.0, %v2002_v39  ;;  %vm248_vm2 = vcmp.gt.s32.totalorder %v2381_v46, 0  ;;  %vm2721_vm13 = vmand %vm2623_vm4, %vm2648_vm3 }
  0x9a   :  { %4591 = vst [vmem:[#allocation32_spill] sm:$0xff] %v4590_v41  ;;  %v358_v55 = vsel %vm4597_vm5, %v2419_v57, %v350_v33  ;;  %v2684_v18 = vsel %vm2597_vm9, %v311_v53, 0.0  ;;  %v326_v56 = vsel %vm2597_vm9, %v311_v53, -inf  ;;  %v4601_v39 = vmov 0  ;;  %v414_v40 = vpop.permute.xlu1 %413  ;;  %v2045_v53 = vld [vmem:[%s4381_s6 + $0x14] sm:$0xf] }
  0x9b   :  { %4598 = vst [vmem:[#allocation34_spill] sm:$0xff] %v2684_v18  ;;  %v2690_v32 = vsel %vm2528_vm15, %v358_v55, 0.0  ;;  %v377_v57 = vsel %vm2528_vm15, %v358_v55, -inf  ;;  %v4602_v39 = vsel %vm2698_vm11, 4294967295, %v4601_v39  ;;  %v4604_v55 = vmov 0.0  }
  0x9c   :  { %4599 = vst [vmem:[#allocation35_spill] sm:$0xff] %v2690_v32  ;;  %4603 = vst [vmem:[#allocation36_spill] sm:$0xff] %v4602_v39  ;;  %v2707_v1 = vadd.f32 %v2690_v32, %v2684_v18  ;;  %v2709_v24 = vmax.f32 %v326_v56, %v377_v57  ;;  %v2005_v3 = vsel %vm232_vm0, 1.0, %v4604_v55  ;;  %vm4605_vm5 = vcmp.lt.s32.totalorder %v2386_v48, 15  ;;  %v2728_v57 = vpop.permute.xlu0 %452 }
  0x9d   :  { %v2006_v4 = vsel %vm4605_vm5, 1.0, %v4604_v55  ;;  %v4607_v9 = vsel %vm2721_vm13, 4294967295, %v4606_v9  ;;  %vm4609_vm1 = vcmp.lt.s32.totalorder %v2342_v27, 15  ;;  %4610 = vst [vmem:[#allocation38_spill] sm:$0xff] %v2728_v57  ;;  %v2009_v15 = vsel %vm248_vm2, 1.0, %v4604_v55  ;;  %1670 = vperm.xlu0 %2073, %v2045_v53  }
  0x9e   :  { %4608 = vst [vmem:[#allocation37_spill] sm:$0xff] %v4607_v9  ;;  %v419_v56 = vsel %vm4609_vm1, %v414_v40, %v2633_v20  ;;  %vm4611_vm0 = vcmp.gt.s32.totalorder %v2388_v49, 0  ;;  %vm4612_vm9 = vcmp.lt.s32.totalorder %v2342_v27, 17  ;;  %vm2745_vm1 = vmand %vm2661_vm12, %vm2671_vm10  ;;  %v4613_v57 = vmov 0  ;;  %v412_v18 = vpop.permute.xlu1 %411 }
  0x9f   :  { %v2010_v58 = vsel %vm4611_vm0, 1.0, %v4604_v55  ;;  %v310_v32 = vsel %vm4612_vm9, %v2393_v51, %v2551_v29  ;;  %v4614_v57 = vsel %vm2745_vm1, 4294967295, %v4613_v57  ;;  %v2751_v2 = vsel %vm2698_vm11, %v419_v56, 0.0 }
  0xa0   :  { %4615 = vst [vmem:[#allocation39_spill] sm:$0xff] %v4614_v57  ;;  %v436_v13 = vsel %vm2698_vm11, %v419_v56, -inf  ;;  %v2757_v51 = vadd.f32 %v2751_v2, %v372_v23  ;;  %vm4616_vm9 = vcmp.lt.s32.totalorder %v2437_v60, 16  ;;  %vm4617_vm0 = vcmp.ge.s32.totalorder %v2437_v60, 0 }
  0xa1   :  { %v2759_v63 = vmax.f32 %v380_v54, %v436_v13  ;;  %vm2765_vm5 = vmand %vm4617_vm0, %vm4616_vm9  ;;  %v275_v39 = vadd.f32 %v2012_v34, %v259_v8  ;;  %vm4620_vm2 = vcmp.lt.s32.totalorder %v2342_v27, 17  ;;  %vm4621_vm11 = vcmp.lt.s32.totalorder %v2492_v10, 16  ;;  %v352_v34 = vpop.permute.xlu0 %351  ;;  %1582 = vrot.lane.b32.xlu0 %v2352_v30, %s2142_s11 }
  0xa2   :  { %v309_v53 = vsel %vm4620_vm2, %v2551_v29, %v2584_v42  ;;  %vm2777_vm10 = vmand %vm4622_vm7, %vm4621_vm11  ;;  %v244_v60 = vadd.f32 %v2005_v3, %v228_v43  ;;  %v245_v13 = vadd.f32 %v2006_v4, %v229_v16  ;;  %v260_v54 = vadd.f32 1.0, %v2009_v15  ;;  %v2046_v16 = vld [vmem:[%s4381_s6 + $0x18] sm:$0xf] }
  0xa3   :  { %v2783_v50 = vsel %vm2721_vm13, %v310_v32, 0.0  ;;  %vm4625_vm9 = vcmp.lt.s32.totalorder %v2495_v11, 16  ;;  %vm4626_vm2 = vcmp.ge.s32.totalorder %v2495_v11, 0  ;;  %v261_v10 = vadd.f32 1.0, %v2010_v58 }
  0xa4   :  { %vm2789_vm0 = vmand %vm4626_vm2, %vm4625_vm9  ;;  %vm4629_vm7 = vcmp.lt.s32.totalorder %v2381_v46, 15  ;;  %vm4630_vm11 = vcmp.lt.s32.totalorder %v2388_v49, 15  ;;  %v327_v4 = vsel %vm2721_vm13, %v310_v32, -inf  ;;  %v4631_v11 = vmov 0 }
  0xa5   :  { %v2013_v3 = vsel %vm4629_vm7, 1.0, %v4604_v55  ;;  %v2014_v43 = vsel %vm4630_vm11, 1.0, %v4604_v55  ;;  %vm2805_vm9 = vmand %vm2661_vm12, %vm2765_vm5  ;;  %vm4634_vm2 = vcmp.lt.s32.totalorder %v2342_v27, 15  ;;  %vm4635_vm7 = vcmp.lt.s32.totalorder %v2342_v27, 16  ;;  %v410_v19 = vpop.permute.xlu0 %409  ;;  %1714 = vperm.xlu0 %2073, %v2046_v16  }
  0xa6   :  { %v4632_v11 = vsel %vm2805_vm9, 4294967295, %v4631_v11  ;;  %v416_v58 = vsel %vm4634_vm2, %v412_v18, %v414_v40  ;;  %v356_v15 = vsel %vm4635_vm7, %v352_v34, %v2475_v7  ;;  %vm4636_vm11 = vmmov %vm4635_vm7  ;;  %v2820_v8 = vsel %vm2745_vm1, %v309_v53, 0.0 }
  0xa7   :  { %4633 = vst [vmem:[#allocation40_spill] sm:$0xff] %v4632_v11  ;;  %v357_v42 = vsel %vm4636_vm11, %v350_v33, %v352_v34  ;;  %v2828_v40 = vsel %vm2661_vm12, %v356_v15, 0.0  ;;  %vm2836_vm2 = vmand %vm2528_vm15, %vm2777_vm10  ;;  %v4637_v33 = vmov 0  ;;  %v328_v32 = vsel %vm2745_vm1, %v309_v53, -inf }
  0xa8   :  { %v2824_v17 = vsel %vm2623_vm4, %v357_v42, 0.0  ;;  %v378_v7 = vsel %vm2623_vm4, %v357_v42, -inf  ;;  %v4638_v33 = vsel %vm2836_vm2, 4294967295, %v4637_v33  ;;  %v375_v56 = vadd.f32 %v2828_v40, %v2820_v8  ;;  %vm2856_vm11 = vmand %vm2623_vm4, %vm2789_vm0 }
  0xa9   :  { %4639 = vst [vmem:[#allocation41_spill] sm:$0xff] %v4638_v33  ;;  %v374_v55 = vadd.f32 %v2824_v17, %v2783_v50  ;;  %v379_v34 = vsel %vm2661_vm12, %v356_v15, -inf  ;;  %v4640_v42 = vmov 0  ;;  %v2862_v53 = vsel %vm2805_vm9, %v416_v58, 0.0  ;;  %1643 = vrot.lane.b32.xlu0 %v2346_v28, %s2143_s20  ;;  %vm3129_vm15 = vmand %vm2501_vm8, %vm2789_vm0 }
  0xaa   :  { %v4641_v42 = vsel %vm2856_vm11, 4294967295, %v4640_v42  ;;  %v382_v57 = vmax.f32 %v327_v4, %v378_v7  ;;  %v383_v9 = vmax.f32 %v328_v32, %v379_v34  ;;  %v276_v46 = vadd.f32 %v2013_v3, %v260_v54  ;;  %v470_v32 = vpop.permute.xlu1 %469 }
  0xab   :  { %4642 = vst [vmem:[#allocation42_spill] sm:$0xff] %v4641_v42  ;;  %vm4643_vm7 = vcmp.lt.s32.totalorder %v2342_v27, 15  ;;  %v2872_v22 = vadd.f32 %v2862_v53, %v375_v56  ;;  %v277_v49 = vadd.f32 %v2014_v43, %v261_v10  ;;  %v279_v3 = vmul.f32 %v275_v39, %v2590_v47  ;;  %v2902_v47 = vpop.permute.xlu0 %512 }
  0xac   :  { %v417_v15 = vsel %vm4643_vm7, %v410_v19, %v412_v18  ;;  %vm4644_vm12 = vmmov %vm4643_vm7  ;;  %v278_v18 = vmul.f32 %v274_v59, %v2588_v44  ;;  %v439_v7 = vsel %vm2805_vm9, %v416_v58, -inf  ;;  %vm4650_vm9 = vnez %v4556_v14 }
  0xad   :  { %v418_v41 = vsel %vm4644_vm12, %v2633_v20, %v410_v19  ;;  %v2882_v54 = vsel %vm2856_vm11, %v417_v15, 0.0  ;;  %v438_v43 = vsel %vm2856_vm11, %v417_v15, -inf  ;;  %v2907_v39 = vmax.f32 %v383_v9, %v439_v7  ;;  %vm3147_vm13 = vmand %vm4650_vm9, %vm2765_vm5 }
  0xae   :  { %v2878_v4 = vsel %vm2836_vm2, %v418_v41, 0.0  ;;  %v2889_v20 = vadd.f32 %v2882_v54, %v374_v55  ;;  %v437_v10 = vsel %vm2836_vm2, %v418_v41, -inf  ;;  %v2900_v44 = vmax.f32 %v382_v57, %v438_v43  ;;  %vm3004_vm2 = vmand %vm2501_vm8, %vm2648_vm3 }
  0xaf   :  { %v433_v19 = vadd.f32 %v2878_v4, %v2707_v1  ;;  %v441_v59 = vmax.f32 %v2709_v24, %v437_v10  ;;  %v280_v1 = vmul.f32 %v276_v46, %v244_v60  ;;  %v281_v58 = vmul.f32 %v277_v49, %v245_v13  ;;  %v2036_v24 = vld [vmem:[%s4379_s4 + $0x20] sm:$0xf]  ;;  %v468_v15 = vpop.permute.xlu0 %467 }
  0xb0   :  { %2077 = vrcp.f32 %v278_v18  ;;  %v4645_v60 = vlaneseq  ;;  %vm4646_vm12 = vnez %v4544_v61  ;;  %v4647_v49 = vmov 0  ;;  %1259 = vperm.xlu0 %2073, %v2036_v24  }
  0xb1   :  { %vm2924_vm7 = vmand %vm4646_vm12, %vm2547_vm14  ;;  %v2932_v55 = vadd.s32 1, %v2363_v36  ;;  %v2935_v56 = vadd.s32 1, %v2365_v38  ;;  %2079 = vrcp.f32 %v279_v3  ;;  %v330_v34 = vmax.f32 %v2629_v25, 0.0 }
  0xb2   :  { %v857_v9 = vshrl.u32 %v4645_v60, 7  ;;  %v4648_v49 = vsel %vm2924_vm7, 4294967295, %v4647_v49  ;;  %v2939_v18 = vadd.s32 1, %v2379_v45  ;;  %v2942_v10 = vadd.s32 1, %v2386_v48  ;;  %v4664_v45 = vld [vmem:[#allocation11_spill] sm:$0xff] }
  0xb3   :  { %4649 = vst [vmem:[#allocation43_spill] sm:$0xff] %v4648_v49  ;;  %2081 = vrcp.f32 %v280_v1  ;;  %vm4651_vm11 = vcmp.lt.s32.totalorder %v2342_v27, 1  ;;  %v2947_v7 = vstv %s2864_s19  ;;  %v2950_v60 = vstv %s2874_s3 }
  0xb4   :  { %v478_v43 = vsel %vm4651_vm11, %v468_v15, %v470_v32  ;;  %4652 = vst [vmem:[#allocation44_spill] sm:$0xff] %v2947_v7  ;;  %4653 = vst [vmem:[#allocation45_spill] sm:$0xff] %v2950_v60  ;;  %2083 = vrcp.f32 %v281_v58  ;;  %v386_v25 = vmax.f32 %v2617_v21, 0.0  ;;  %v2960_v1 = vsub.s32 0, %v857_v9  ;;  %v2968_v58 = vpop.permute.xlu1 %559  ;;  %1647 = vrot.lane.b32.xlu0 %v4664_v45, %s2143_s20 }
  0xb5   :  { %v2955_v3 = vsel %vm2924_vm7, %v478_v43, 0.0  ;;  %v497_v57 = vsel %vm2924_vm7, %v478_v43, -inf  ;;  %v332_v24 = vmax.f32 %v2783_v50, 0.0  ;;  %vm4655_vm11 = vcmp.ge.s32.totalorder %v2396_v52, 0  ;;  %v4659_v50 = vld [vmem:[#allocation21_spill] sm:$0xff] }
  0xb6   :  { %4654 = vst [vmem:[#allocation46_spill] sm:$0xff] %v2960_v1  ;;  %v2964_v41 = vadd.f32 %v2955_v3, %v433_v19  ;;  %v2966_v13 = vmax.f32 %v441_v59, %v497_v57  ;;  %vm2974_vm4 = vmand %vm2459_vm6, %vm4655_vm11  ;;  %v4656_v21 = vmov 0  ;;  %v333_v46 = vmax.f32 %v2820_v8, 0.0  ;;  %v474_v19 = vpop.permute.xlu0 %473  ;;  %v4662_v57 = vld [vmem:[#allocation34_spill] sm:$0xff]  ;;  %v4666_v8 = vld [vmem:[#allocation25_spill] sm:$0xff] }
  0xb7   :  { %v4657_v21 = vsel %vm2974_vm4, 4294967295, %v4656_v21  ;;  %v339_v16 = vmul.f32 %v4659_v50, %v330_v34  ;;  %v2981_v49 = vsub.s32 2, %v857_v9  ;;  %v2983_v59 = vsub.s32 1, %v857_v9 }
  0xb8   :  { %4658 = vst [vmem:[#allocation47_spill] sm:$0xff] %v4657_v21  ;;  %v331_v11 = vmax.f32 %v4662_v57, 0.0  ;;  %v389_v42 = vmax.f32 %v2828_v40, 0.0  ;;  %vm4663_vm11 = vcmp.lt.s32.totalorder %v2342_v27, 1  ;;  %v2991_v43 = vsub.s32 3, %v857_v9  ;;  %1687 = vrot.lane.b32.xlu0 %v2346_v28, %s2144_s27  ;;  %v4688_v28 = vld [vmem:[#allocation38_spill] sm:$0xff] }
  0xb9   :  { %4660 = vst [vmem:[#allocation21_spill] sm:$0xff] %v2981_v49  ;;  %4661 = vst [vmem:[#allocation48_spill] sm:$0xff] %v2983_v59  ;;  %v479_v33 = vsel %vm4663_vm11, %v474_v19, %v468_v15  ;;  %v395_v48 = vmul.f32 %v4666_v8, %v386_v25  ;;  %v4668_v40 = vmov 0  ;;  %v4671_v9 = vstv %s2895_s2  ;;  %v4674_v59 = vld [vmem:[#allocation33_spill] sm:$0xff] }
  0xba   :  { %4665 = vst [vmem:[#allocation34_spill] sm:$0xff] %v2991_v43  ;;  %v2996_v34 = vsel %vm2974_vm4, %v479_v33, 0.0  ;;  %v496_v38 = vsel %vm2974_vm4, %v479_v33, -inf  ;;  %v4669_v40 = vsel %vm3004_vm2, 4294967295, %v4668_v40  ;;  %v3011_v15 = vmul.f32 %v4671_v9, %v2199_v0  ;;  %v3020_v43 = vpop.permute.xlu1 %619 }
  0xbb   :  { %4670 = vst [vmem:[#allocation11_spill] sm:$0xff] %v4669_v40  ;;  %v340_v25 = vmul.f32 %v4659_v50, %v331_v11  ;;  %v3015_v36 = vmul.f32 %v4659_v50, %v332_v24  ;;  %v492_v33 = vadd.f32 %v2996_v34, %v2757_v51  ;;  %v500_v21 = vmax.f32 %v2759_v63, %v496_v38  ;;  %v4679_v51 = vld [vmem:[#allocation35_spill] sm:$0xff]  ;;  %v472_v63 = vpop.permute.xlu0 %471  ;;  %v4683_v40 = vld [vmem:[#allocation20_spill] sm:$0xff] }
  0xbc   :  { %4672 = vst [vmem:[#allocation25_spill] sm:$0xff] %v3011_v15  ;;  %4673 = vst [vmem:[#allocation31_spill] sm:$0xff] %v3020_v43  ;;  %vm4675_vm11 = vnez %v4674_v59  ;;  %v4676_v49 = vmov 0  ;;  %v342_v11 = vmul.f32 %v4659_v50, %v333_v46  ;;  %v399_v24 = vadd.f32 %v395_v48, %v339_v16  ;;  %v2048_v16 = vld [vmem:[%s4381_s6 + $0x20] sm:$0xf]  ;;  %v4770_v29 = vld [vmem:[#allocation44_spill] sm:$0xff] }
  0xbd   :  { %vm3026_vm4 = vmand %vm4650_vm9, %vm4675_vm11  ;;  %v387_v9 = vmax.f32 %v4679_v51, 0.0  ;;  %v446_v38 = vmax.f32 %v2751_v2, 0.0  ;;  %v388_v15 = vmax.f32 %v2824_v17, 0.0  ;;  %v398_v60 = vmul.f32 %v4666_v8, %v389_v42  ;;  %1802 = vperm.xlu0 %2073, %v2048_v16  }
  0xbe   :  { %v4677_v49 = vsel %vm3026_vm4, 4294967295, %v4676_v49  ;;  %vm4680_vm7 = vcmp.lt.s32.totalorder %v2342_v27, 1  ;;  %v447_v50 = vmax.f32 %v2878_v4, 0.0  ;;  %v4745_v57 = vmov 0 }
  0xbf   :  { %4678 = vst [vmem:[#allocation33_spill] sm:$0xff] %v4677_v49  ;;  %v476_v1 = vsel %vm4680_vm7, %v472_v63, %v474_v19  ;;  %vm4681_vm1 = vmmov %vm4680_vm7  ;;  %v396_v4 = vmul.f32 %v4666_v8, %v387_v9  ;;  %v397_v7 = vmul.f32 %v4666_v8, %v388_v15  ;;  %v4690_v9 = vsel %vm2459_vm6, %v2199_v0, -inf }
  0xc0   :  { %v477_v46 = vsel %vm4681_vm1, %v470_v32, %v472_v63  ;;  %v3051_v2 = vsel %vm3026_vm4, %v476_v1, 0.0  ;;  %v499_v42 = vsel %vm3026_vm4, %v476_v1, -inf  ;;  %v3060_v32 = vpop.eup %2077  ;;  %vm4684_vm1 = vcmp.lt.s32.totalorder %v4683_v40, 16  ;;  %v4689_v40 = vld [vmem:[#allocation26_spill] sm:$0xff] }
  0xc1   :  { %v3047_v48 = vsel %vm3004_vm2, %v477_v46, 0.0  ;;  %v498_v17 = vsel %vm3004_vm2, %v477_v46, -inf  ;;  %4682 = vst [vmem:[#allocation35_spill] sm:$0xff] %v3060_v32  ;;  %v495_v51 = vadd.f32 %v3051_v2, %v2872_v22  ;;  %v577_v46 = vpop.permute.xlu1 %576  ;;  %vm3072_vm7 = vmand %vm2459_vm6, %vm4684_vm1  ;;  %v4685_v1 = vmov 0  ;;  %v3076_v49 = vpop.eup %2079 }
  0xc2   :  { %v494_v19 = vadd.f32 %v3047_v48, %v2889_v20  ;;  %v502_v63 = vmax.f32 %v2900_v44, %v498_v17  ;;  %v4686_v1 = vsel %vm3072_vm7, 4294967295, %v4685_v1  ;;  %v455_v20 = vmul.f32 %v4688_v28, %v446_v38  ;;  %v575_v44 = vpop.permute.xlu0 %574  ;;  %v3084_v17 = vpop.eup %2081 }
  0xc3   :  { %4687 = vst [vmem:[#allocation49_spill] sm:$0xff] %v4686_v1  ;;  %v449_v32 = vmax.f32 %v2862_v53, 0.0  ;;  %v503_v22 = vmax.f32 %v2907_v39, %v499_v42  ;;  %v539_v43 = vadd.f32 %v4689_v40, %v492_v33  ;;  %v547_v38 = vmax.f32 %v500_v21, %v4690_v9  ;;  %v3096_v39 = vpop.eup %2083  ;;  %v4698_v1 = vld [vmem:[#allocation24_spill] sm:$0xff] }
  0xc4   :  { %vm4691_vm1 = vcmp.lt.s32.totalorder %v2342_v27, 127  ;;  %v402_v42 = vadd.f32 %v398_v60, %v342_v11  ;;  %v448_v8 = vmax.f32 %v2882_v54, 0.0  ;;  %v456_v21 = vmul.f32 %v4688_v28, %v447_v50 }
  0xc5   :  { %v585_v53 = vsel %vm4691_vm1, %v575_v44, %v577_v46  ;;  %v507_v33 = vmax.f32 %v2955_v3, 0.0  ;;  %v3113_v60 = vpop.permute.xlu1 %679  ;;  %vm3119_vm1 = vmand %vm4646_vm12, %vm2777_vm10  ;;  %v4692_v54 = vmov 0  ;;  %v400_v11 = vadd.f32 %v396_v4, %v340_v25  ;;  %v4699_v25 = vld [vmem:[#allocation8_spill] sm:$0xff] }
  0xc6   :  { %v3101_v15 = vsel %vm3072_vm7, %v585_v53, 0.0  ;;  %v603_v0 = vsel %vm3072_vm7, %v585_v53, -inf  ;;  %v4693_v54 = vsel %vm3119_vm1, 4294967295, %v4692_v54  ;;  %v459_v53 = vadd.f32 %v455_v20, %v399_v24 }
  0xc7   :  { %v3109_v16 = vadd.f32 %v3101_v15, %v539_v43  ;;  %v3111_v9 = vmax.f32 %v547_v38, %v603_v0  ;;  %4694 = vst [vmem:[#allocation38_spill] sm:$0xff] %v4693_v54  ;;  %v458_v50 = vmul.f32 %v4688_v28, %v449_v32  ;;  %v506_v3 = vmax.f32 %v2996_v34, 0.0  ;;  %v579_v43 = vpop.permute.xlu0 %578 }
  0xc8   :  { %v4695_v38 = vmov 0  ;;  %v401_v0 = vadd.f32 %v397_v7, %v3015_v36  ;;  %v540_v62 = vadd.f32 %v4698_v1, %v2964_v41  ;;  %v4700_v24 = vsel %vm4646_vm12, %v4699_v25, -inf }
  0xc9   :  { %v4696_v38 = vsel %vm3129_vm15, 4294967295, %v4695_v38  ;;  %v548_v34 = vmax.f32 %v2966_v13, %v4700_v24  ;;  %vm4701_vm4 = vcmp.lt.s32.totalorder %v2342_v27, 127  ;;  %v4702_v4 = vmov 0 }
  0xca   :  { %4697 = vst [vmem:[#allocation26_spill] sm:$0xff] %v4696_v38  ;;  %v584_v32 = vsel %vm4701_vm4, %v577_v46, %v579_v43  ;;  %v4703_v4 = vsel %vm3147_vm13, 4294967295, %v4702_v4  ;;  %v457_v36 = vmul.f32 %v4688_v28, %v448_v8  ;;  %v3152_v41 = vadd.f32 %v458_v50, %v402_v42  ;;  %v635_v50 = vpop.permute.xlu1 %634 }
  0xcb   :  { %4704 = vst [vmem:[#allocation24_spill] sm:$0xff] %v4703_v4  ;;  %v3156_v7 = vsel %vm3119_vm1, %v584_v32, 0.0  ;;  %v604_v13 = vsel %vm3119_vm1, %v584_v32, -inf  ;;  %vm4705_vm4 = vcmp.lt.s32.totalorder %v2932_v55, 16  ;;  %vm4706_vm7 = vcmp.ge.s32.totalorder %v2932_v55, 0  ;;  %v581_v32 = vpop.permute.xlu0 %580 }
  0xcc   :  { %vm3164_vm2 = vmand %vm4706_vm7, %vm4705_vm4  ;;  %v4707_v46 = vmov 0  ;;  %v460_v20 = vadd.f32 %v456_v21, %v400_v11  ;;  %v516_v28 = vmul.f32 %v2902_v47, %v507_v33  ;;  %v600_v42 = vadd.f32 %v3156_v7, %v540_v62 }
  0xcd   :  { %v4708_v46 = vsel %vm3164_vm2, 4294967295, %v4707_v46  ;;  %v608_v8 = vmax.f32 %v548_v34, %v604_v13  ;;  %vm4710_vm12 = vcmp.lt.s32.totalorder %v2935_v56, 16  ;;  %vm4711_vm6 = vcmp.ge.s32.totalorder %v2935_v56, 0 }
  0xce   :  { %4709 = vst [vmem:[#allocation8_spill] sm:$0xff] %v4708_v46  ;;  %vm3174_vm1 = vmand %vm4711_vm6, %vm4710_vm12  ;;  %v4712_v25 = vmov 0  ;;  %v515_v55 = vmul.f32 %v2902_v47, %v506_v3  ;;  %v508_v24 = vmax.f32 %v3047_v48, 0.0  ;;  %v541_v21 = vadd.f32 %v2556_v31, %v494_v19 }
  0xcf   :  { %v4713_v25 = vsel %vm3174_vm1, 4294967295, %v4712_v25  ;;  %v542_v33 = vadd.f32 %v2580_v37, %v495_v51  ;;  %v4715_v62 = vsel %vm2501_vm8, %v2216_v5, -inf  ;;  %v4716_v56 = vsel %vm4650_vm9, %v2222_v6, -inf  ;;  %v4723_v5 = vld [vmem:[#allocation9_spill] sm:$0xff] }
  0xd0   :  { %4714 = vst [vmem:[#allocation50_spill] sm:$0xff] %v4713_v25  ;;  %v549_v11 = vmax.f32 %v502_v63, %v4715_v62  ;;  %v550_v34 = vmax.f32 %v503_v22, %v4716_v56  ;;  %vm4717_vm6 = vcmp.lt.s32.totalorder %v2342_v27, 127  ;;  %vm4719_vm7 = vcmp.ge.s32.totalorder %v2396_v52, 0  ;;  %1729 = vrot.lane.b32.xlu0 %v4723_v5, %s2145_s12  ;;  %v639_v62 = vpop.permute.xlu1 %638 }
  0xd1   :  { %v583_v3 = vsel %vm4717_vm6, %v579_v43, %v581_v32  ;;  %vm4718_vm12 = vmmov %vm4717_vm6  ;;  %v4720_v19 = vmov 0  ;;  %v4724_v22 = vmov 0  ;;  %v4732_v56 = vmax.f32 %v4689_v40, 0.0 }
  0xd2   :  { %v586_v48 = vsel %vm4718_vm12, %v581_v32, %v575_v44  ;;  %vm3198_vm4 = vmand %vm3164_vm2, %vm4719_vm7  ;;  %v3206_v6 = vsel %vm3129_vm15, %v583_v3, 0.0  ;;  %v605_v52 = vsel %vm3129_vm15, %v583_v3, -inf  ;;  %v461_v44 = vadd.f32 %v457_v36, %v401_v0 }
  0xd3   :  { %v4721_v19 = vsel %vm3198_vm4, 4294967295, %v4720_v19  ;;  %v3210_v51 = vsel %vm3147_vm13, %v586_v48, 0.0  ;;  %v606_v63 = vsel %vm3147_vm13, %v586_v48, -inf  ;;  %vm3220_vm6 = vmand %vm3174_vm1, %vm2547_vm14  ;;  %v601_v43 = vadd.f32 %v3206_v6, %v541_v21 }
  0xd4   :  { %4722 = vst [vmem:[#allocation51_spill] sm:$0xff] %v4721_v19  ;;  %v4725_v22 = vsel %vm3220_vm6, 4294967295, %v4724_v22  ;;  %v602_v13 = vadd.f32 %v3210_v51, %v542_v33  ;;  %v609_v32 = vmax.f32 %v549_v11, %v605_v52  ;;  %vm4727_vm7 = vcmp.lt.s32.totalorder %v2939_v18, 16  ;;  %v637_v11 = vpop.permute.xlu0 %636  ;;  %1733 = vrot.lane.b32.xlu0 %v2352_v30, %s2145_s12 }
  0xd5   :  { %4726 = vst [vmem:[#allocation9_spill] sm:$0xff] %v4725_v22  ;;  %vm4728_vm13 = vcmp.ge.s32.totalorder %v2939_v18, 0  ;;  %v562_v3 = vmul.f32 %v2968_v58, %v4732_v56  ;;  %v4733_v0 = vmax.f32 %v4698_v1, 0.0  ;;  %v509_v21 = vmax.f32 %v3051_v2, 0.0 }
  0xd6   :  { %vm3231_vm15 = vmand %vm4728_vm13, %vm4727_vm7  ;;  %v610_v33 = vmax.f32 %v550_v34, %v606_v63  ;;  %vm4734_vm14 = vcmp.lt.s32.totalorder %v2942_v10, 16  ;;  %vm4735_vm12 = vcmp.ge.s32.totalorder %v2942_v10, 0  ;;  %v4736_v18 = vmov 0 }
  0xd7   :  { %v4730_v26 = vsel %vm3231_vm15, 4294967295, %v4729_v26  ;;  %v563_v36 = vmul.f32 %v2968_v58, %v4733_v0  ;;  %vm3246_vm13 = vmand %vm4735_vm12, %vm4734_vm14  ;;  %v4739_v40 = vmax.f32 %v2556_v31, 0.0  ;;  %v517_v1 = vmul.f32 %v2902_v47, %v508_v24 }
  0xd8   :  { %4731 = vst [vmem:[#allocation52_spill] sm:$0xff] %v4730_v26  ;;  %v4737_v18 = vsel %vm3246_vm13, 4294967295, %v4736_v18  ;;  %vm4740_vm7 = vcmp.lt.s32.totalorder %v2342_v27, 113  ;;  %v520_v10 = vadd.f32 %v516_v28, %v460_v20  ;;  %v519_v34 = vadd.f32 %v515_v55, %v459_v53  ;;  %vm3268_vm12 = vmand %vm3231_vm15, %vm2648_vm3  ;;  %v641_v28 = vpop.permute.xlu1 %640  ;;  %1735 = vrot.lane.b32.xlu0 %v4664_v45, %s2145_s12 }
  0xd9   :  { %4738 = vst [vmem:[#allocation53_spill] sm:$0xff] %v4737_v18  ;;  %v564_v48 = vmul.f32 %v2968_v58, %v4739_v40  ;;  %v644_v52 = vsel %vm4740_vm7, %v637_v11, %v639_v62  ;;  %vm4741_vm8 = vmmov %vm4740_vm7  ;;  %v4742_v24 = vmov 0  ;;  %v518_v55 = vmul.f32 %v2902_v47, %v509_v21  ;;  %v3288_v40 = vpop.permute.xlu0 %739 }
  0xda   :  { %v645_v2 = vsel %vm4741_vm8, %v635_v50, %v637_v11  ;;  %v656_v31 = vsel %vm3220_vm6, %v644_v52, 0.0  ;;  %v4743_v24 = vsel %vm3268_vm12, 4294967295, %v4742_v24  ;;  %v664_v20 = vsel %vm3220_vm6, %v644_v52, -inf  ;;  %vm3281_vm8 = vmand %vm3246_vm13, %vm4675_vm11 }
  0xdb   :  { %v655_v63 = vsel %vm3198_vm4, %v645_v2, 0.0  ;;  %4744 = vst [vmem:[#allocation54_spill] sm:$0xff] %v4743_v24  ;;  %v660_v0 = vadd.f32 %v656_v31, %v600_v42  ;;  %v663_v53 = vsel %vm3198_vm4, %v645_v2, -inf  ;;  %v4746_v57 = vsel %vm3281_vm8, 4294967295, %v4745_v57  ;;  %vm4748_vm3 = vmmov %vm4740_vm7 }
  0xdc   :  { %v659_v56 = vadd.f32 %v655_v63, %v3109_v16  ;;  %4747 = vst [vmem:[#allocation55_spill] sm:$0xff] %v4746_v57  ;;  %v613_v16 = vmax.f32 %v3101_v15, 0.0  ;;  %v667_v42 = vmax.f32 %v3111_v9, %v663_v53  ;;  %v668_v11 = vmax.f32 %v608_v8, %v664_v20  ;;  %vm4749_vm11 = vmmov %vm4748_vm3  ;;  %v697_v21 = vpop.permute.xlu1 %696 }
  0xdd   :  { %v521_v2 = vadd.f32 %v517_v1, %v461_v44  ;;  %v614_v52 = vmax.f32 %v3156_v7, 0.0  ;;  %v643_v59 = vsel %vm4748_vm3, %v639_v62, %v641_v28  ;;  %v646_v22 = vsel %vm4749_vm11, %v641_v28, %v635_v50  ;;  %v695_v19 = vpop.permute.xlu0 %694 }
  0xde   :  { %v657_v47 = vsel %vm3268_vm12, %v643_v59, 0.0  ;;  %v658_v15 = vsel %vm3281_vm8, %v646_v22, 0.0  ;;  %v665_v9 = vsel %vm3268_vm12, %v643_v59, -inf  ;;  %v666_v7 = vsel %vm3281_vm8, %v646_v22, -inf  ;;  %v4752_v22 = vld [vmem:[#allocation31_spill] sm:$0xff] }
  0xdf   :  { %v615_v8 = vmax.f32 %v3206_v6, 0.0  ;;  %v616_v44 = vmax.f32 %v3210_v51, 0.0  ;;  %v661_v50 = vadd.f32 %v657_v47, %v601_v43  ;;  %v662_v62 = vadd.f32 %v658_v15, %v602_v13 }
  0xe0   :  { %v673_v1 = vmax.f32 %v655_v63, 0.0  ;;  %v674_v53 = vmax.f32 %v656_v31, 0.0  ;;  %v669_v20 = vmax.f32 %v609_v32, %v665_v9  ;;  %v670_v28 = vmax.f32 %v610_v33, %v666_v7 }
  0xe1   :  { %v4750_v4 = vmax.f32 %v2580_v37, 0.0  ;;  %v567_v59 = vadd.f32 %v563_v36, %v520_v10  ;;  %v522_v57 = vadd.f32 %v518_v55, %v3152_v41  ;;  %vm4751_vm14 = vcmp.lt.s32.totalorder %v2342_v27, 112  ;;  %v3321_v36 = vpop.permute.xlu1 %799  ;;  %v699_v55 = vpop.permute.xlu0 %698 }
  0xe2   :  { %v705_v6 = vsel %vm4751_vm14, %v695_v19, %v697_v21  ;;  %v622_v51 = vmul.f32 %v4752_v22, %v613_v16  ;;  %v623_v43 = vmul.f32 %v4752_v22, %v614_v52  ;;  %vm4487_vm7 = vcmp.lt.s32.totalorder %v2342_v27, 111  ;;  %vm4753_vm3 = vmmov %vm4751_vm14 }
  0xe3   :  { %v565_v24 = vmul.f32 %v2968_v58, %v4750_v4  ;;  %v715_v13 = vsel %vm3164_vm2, %v705_v6, 0.0  ;;  %v723_v32 = vsel %vm3164_vm2, %v705_v6, -inf  ;;  %v566_v37 = vadd.f32 %v562_v3, %v519_v34  ;;  %vm4754_vm11 = vmmov %vm4753_vm3 }
  0xe4   :  { %v624_v58 = vmul.f32 %v4752_v22, %v615_v8  ;;  %v719_v4 = vadd.f32 %v715_v13, %v659_v56  ;;  %v727_v41 = vmax.f32 %v667_v42, %v723_v32  ;;  %v568_v33 = vadd.f32 %v564_v48, %v521_v2  ;;  %vm4755_vm14 = vmmov %vm4753_vm3 }
  0xe5   :  { %v625_v10 = vmul.f32 %v4752_v22, %v616_v44  ;;  %v682_v63 = vmul.f32 %v3113_v60, %v673_v1  ;;  %v683_v31 = vmul.f32 %v3113_v60, %v674_v53  ;;  %v569_v16 = vadd.f32 %v565_v24, %v522_v57  ;;  %v755_v1 = vpop.permute.xlu1 %754 }
  0xe6   :  { %v675_v52 = vmax.f32 %v657_v47, 0.0  ;;  %v676_v9 = vmax.f32 %v658_v15, 0.0  ;;  %v704_v3 = vsel %vm4753_vm3, %v697_v21, %v699_v55  ;;  %v626_v34 = vadd.f32 %v622_v51, %v566_v37  ;;  %v701_v15 = vpop.permute.xlu0 %700 }
  0xe7   :  { %v627_v7 = vadd.f32 %v623_v43, %v567_v59  ;;  %v716_v56 = vsel %vm3174_vm1, %v704_v3, 0.0  ;;  %v724_v48 = vsel %vm3174_vm1, %v704_v3, -inf  ;;  %v628_v42 = vadd.f32 %v624_v58, %v568_v33 }
  0xe8   :  { %v733_v2 = vmax.f32 %v715_v13, 0.0  ;;  %v720_v8 = vadd.f32 %v716_v56, %v660_v0  ;;  %v728_v44 = vmax.f32 %v668_v11, %v724_v48  ;;  %v629_v53 = vadd.f32 %v625_v10, %v569_v16  ;;  %v4756_v13 = vld [vmem:[#allocation20_spill] sm:$0xff] }
  0xe9   :  { %v686_v24 = vadd.f32 %v682_v63, %v626_v34  ;;  %v687_v57 = vadd.f32 %v683_v31, %v627_v7  ;;  %v734_v47 = vmax.f32 %v716_v56, 0.0  ;;  %v684_v21 = vmul.f32 %v3113_v60, %v675_v52  ;;  %v759_v33 = vpop.permute.xlu1 %758 }
  0xea   :  { %v685_v59 = vmul.f32 %v3113_v60, %v676_v9  ;;  %v703_v6 = vsel %vm4754_vm11, %v699_v55, %v701_v15  ;;  %v706_v22 = vsel %vm4755_vm14, %v701_v15, %v695_v19  ;;  %vm4757_vm3 = vcmp.lt.s32.totalorder %v4756_v13, 16  ;;  %vm3359_vm14 = vmand %vm3174_vm1, %vm2777_vm10  ;;  %v757_v52 = vpop.permute.xlu0 %756 }
  0xeb   :  { %v717_v0 = vsel %vm3231_vm15, %v703_v6, 0.0  ;;  %v718_v11 = vsel %vm3246_vm13, %v706_v22, 0.0  ;;  %v725_v51 = vsel %vm3231_vm15, %v703_v6, -inf  ;;  %v726_v43 = vsel %vm3246_vm13, %v706_v22, -inf  ;;  %vm3350_vm11 = vmand %vm3164_vm2, %vm4757_vm3 }
  0xec   :  { %v4758_v60 = vmov 0  ;;  %v742_v19 = vmul.f32 %v3288_v40, %v733_v2  ;;  %v721_v32 = vadd.f32 %v717_v0, %v661_v50  ;;  %v722_v37 = vadd.f32 %v718_v11, %v662_v62  ;;  %vm3382_vm10 = vmand %vm3231_vm15, %vm2789_vm0 }
  0xed   :  { %v4759_v60 = vsel %vm3350_vm11, 4294967295, %v4758_v60  ;;  %v729_v58 = vmax.f32 %v669_v20, %v725_v51  ;;  %v4761_v10 = vmov 0  ;;  %v743_v63 = vmul.f32 %v3288_v40, %v734_v47  ;;  %vm3390_vm3 = vmand %vm3246_vm13, %vm2765_vm5 }
  0xee   :  { %4760 = vst [vmem:[#allocation31_spill] sm:$0xff] %v4759_v60  ;;  %v4762_v10 = vsel %vm3359_vm14, 4294967295, %v4761_v10  ;;  %v730_v31 = vmax.f32 %v670_v28, %v726_v43  ;;  %v735_v55 = vmax.f32 %v717_v0, 0.0  ;;  %v736_v16 = vmax.f32 %v718_v11, 0.0  ;;  %v4771_v11 = vld [vmem:[#allocation35_spill] sm:$0xff]  ;;  %v4802_v60 = vld [vmem:[#allocation17_spill] sm:$0xff] }
  0xef   :  { %4763 = vst [vmem:[#allocation20_spill] sm:$0xff] %v4762_v10  ;;  %v688_v9 = vadd.f32 %v684_v21, %v628_v42  ;;  %v689_v3 = vadd.f32 %v685_v59, %v629_v53  ;;  %v764_v50 = vsel %vm4487_vm7, %v757_v52, %v759_v33  ;;  %v765_v23 = vsel %vm4487_vm7, %v755_v1, %v757_v52 }
  0xf0   :  { %v744_v62 = vmul.f32 %v3288_v40, %v735_v55  ;;  %v745_v20 = vmul.f32 %v3288_v40, %v736_v16  ;;  %v775_v34 = vsel %vm3350_vm11, %v765_v23, 0.0  ;;  %v776_v28 = vsel %vm3359_vm14, %v764_v50, 0.0 }
  0xf1   :  { %v779_v7 = vadd.f32 %v775_v34, %v719_v4  ;;  %v780_v56 = vadd.f32 %v776_v28, %v720_v8  ;;  %v783_v48 = vsel %vm3350_vm11, %v765_v23, -inf  ;;  %v784_v42 = vsel %vm3359_vm14, %v764_v50, -inf  ;;  %v761_v4 = vpop.permute.xlu0 %760  ;;  %v4772_v23 = vld [vmem:[#allocation46_spill] sm:$0xff] }
  0xf2   :  { %v746_v2 = vadd.f32 %v742_v19, %v686_v24  ;;  %v747_v53 = vadd.f32 %v743_v63, %v687_v57  ;;  %v787_v47 = vmax.f32 %v727_v41, %v783_v48  ;;  %v788_v15 = vmax.f32 %v728_v44, %v784_v42  ;;  %v4773_v42 = vld [vmem:[#allocation45_spill] sm:$0xff] }
  0xf3   :  { %v4764_v40 = vmov 0  ;;  %v748_v8 = vadd.f32 %v744_v62, %v688_v9  ;;  %v749_v21 = vadd.f32 %v745_v20, %v689_v3  ;;  %v793_v59 = vmax.f32 %v775_v34, 0.0  ;;  %v854_v20 = vpop.permute.xlu1 %853 }
  0xf4   :  { %v4765_v40 = vsel %vm3382_vm10, 4294967295, %v4764_v40  ;;  %v794_v6 = vmax.f32 %v776_v28, 0.0  ;;  %v4767_v41 = vmov 0  ;;  %v3395_v44 = vmul.f32 %v4770_v29, %v787_v47 }
  0xf5   :  { %4766 = vst [vmem:[#allocation56_spill] sm:$0xff] %v4765_v40  ;;  %v4768_v41 = vsel %vm3390_vm3, 4294967295, %v4767_v41  ;;  %v3398_v24 = vmul.f32 %v4770_v29, %v788_v15  ;;  %v763_v57 = vsel %vm4487_vm7, %v759_v33, %v761_v4  ;;  %v766_v22 = vsel %vm4487_vm7, %v761_v4, %v755_v1 }
  0xf6   :  { %4769 = vst [vmem:[#allocation57_spill] sm:$0xff] %v4768_v41  ;;  %v802_v35 = vmul.f32 %v3321_v36, %v793_v59  ;;  %v803_v0 = vmul.f32 %v3321_v36, %v794_v6  ;;  %v831_v51 = vmul.f32 %v4771_v11, %v779_v7  ;;  %v832_v43 = vmul.f32 %v3076_v49, %v780_v56  ;;  %v881_v56 = vpop.permute.xlu0 %880 }
  0xf7   :  { %v824_v13 = vcombine.low %v3395_v44, %v3398_v24  ;;  %v777_v19 = vsel %vm3382_vm10, %v763_v57, 0.0  ;;  %v778_v33 = vsel %vm3390_vm3, %v766_v22, 0.0  ;;  %v785_v1 = vsel %vm3382_vm10, %v763_v57, -inf  ;;  %v4775_v57 = vld [vmem:[#allocation21_spill] sm:$0xff] }
  0xf8   :  { %v806_v63 = vadd.f32 %v802_v35, %v746_v2  ;;  %v807_v55 = vadd.f32 %v803_v0, %v747_v53  ;;  %v781_v16 = vadd.f32 %v777_v19, %v721_v32  ;;  %v782_v52 = vadd.f32 %v778_v33, %v722_v37 }
  0xf9   :  { %v786_v9 = vsel %vm3390_vm3, %v766_v22, -inf  ;;  %v789_v49 = vmax.f32 %v729_v58, %v785_v1  ;;  %v795_v3 = vmax.f32 %v777_v19, 0.0  ;;  %v796_v50 = vmax.f32 %v778_v33, 0.0 }
  0xfa   :  { %v859_v62 = vrot.slane %v806_v63, %v4772_v23  ;;  %v863_v34 = vrot.slane %v807_v55, %v4772_v23  ;;  %v790_v28 = vmax.f32 %v730_v31, %v786_v9  ;;  %v833_v7 = vmul.f32 %v3084_v17, %v781_v16  ;;  %v2091_v31 = vld [vmem:[%s4376_s1 + $0x8] sm:$0xff]  ;;  %v943_v9 = vpop.permute.xlu0 %942  ;;  %s1990_s1 = sshll.u32 %s2147_s15, 4  ;;  %s1991_s1 = int_to_ptr.vmem [resolvable:$true] %s1990_s1 }
  0xfb   :  { %v804_v48 = vmul.f32 %v3321_v36, %v795_v3  ;;  %v805_v32 = vmul.f32 %v3321_v36, %v796_v50  ;;  %v818_v37 = vmul.f32 %v4770_v29, %v789_v49  ;;  %v834_v58 = vmul.f32 %v3096_v39, %v782_v52  ;;  %v4776_v39 = vld [vmem:[#allocation48_spill] sm:$0xff]  ;;  %s2104_s17 = scalar_lea.vmem %s1991_s1, 256  ;;  %p2109_p6 = scmp.lt.s32.totalorder %s1991_s1, %s1991_s1 }
  0xfc   :  { %v836_v2 = vmul.f32 %v4773_v42, %v831_v51  ;;  %v872_v53 = vmul.f32 %v859_v62, %v854_v20  ;;  %v819_v47 = vmul.f32 %v4770_v29, %v790_v28  ;;  %v4774_v15 = vstv %s2895_s2  ;;  %v4777_v62 = vld [vmem:[#allocation34_spill] sm:$0xff]  ;;  %p2105_p5 = scmp.ne.s32.totalorder %s1991_s1, %s2104_s17  ;;  %p2110_p7 = scmp.lt.s32.totalorder %s2104_s17, %s2104_s17 }
  0xfd   :  { %v813_v17 = vmul.f32 %v2091_v31, %v4774_v15  ;;  %v873_v4 = vmul.f32 %v863_v34, %v854_v20  ;;  %v808_v59 = vadd.f32 %v804_v48, %v748_v8  ;;  %v809_v6 = vadd.f32 %v805_v32, %v749_v21  ;;  %v912_v21 = vpop.permute.xlu1 %911 }
  0xfe   :  { %v917_v36 = vrot.slane %v806_v63, %v4775_v57  ;;  %v825_v22 = vcombine.low %v818_v37, %v819_v47  ;;  %v921_v35 = vrot.slane %v807_v55, %v4775_v57  ;;  %v886_v0 = vrot.slane %v806_v63, %v4776_v39  ;;  %p2111_p8 = por %p2110_p7, %p2109_p6 }
  0xff   :  { %v890_v11 = vrot.slane %v807_v55, %v4776_v39  ;;  %v837_v29 = vmul.f32 %v4773_v42, %v832_v43  ;;  %v838_v51 = vmul.f32 %v4773_v42, %v833_v7  ;;  %v839_v19 = vmul.f32 %v4773_v42, %v834_v58 }
 0x100   :  { %v894_v33 = vrot.slane %v808_v59, %v4776_v39  ;;  %v925_v8 = vrot.slane %v808_v59, %v4775_v57  ;;  %v898_v1 = vrot.slane %v809_v6, %v4776_v39  ;;  %v899_v16 = vmul.f32 %v886_v0, %v881_v56  ;;  %p2112_p9 = pnand %p2111_p8, %p2105_p5 }
 0x101   :  { %v900_v52 = vmul.f32 %v890_v11, %v881_v56  ;;  %v929_v49 = vrot.slane %v809_v6, %v4775_v57  ;;  %v930_v3 = vmul.f32 %v917_v36, %v912_v21  ;;  %v931_v50 = vmul.f32 %v921_v35, %v912_v21 }
 0x102   :  { %v948_v43 = vrot.slane %v806_v63, %v4777_v62  ;;  %v901_v34 = vmul.f32 %v894_v33, %v881_v56  ;;  %v903_v28 = vadd.f32 %v899_v16, %v872_v53  ;;  %v952_v48 = vrot.slane %v807_v55, %v4777_v62  ;;  %v4778_v63 = vld [vmem:[#allocation25_spill] sm:$0xff] }
 0x103   :  { %v904_v7 = vadd.f32 %v900_v52, %v873_v4  ;;  %v902_v32 = vmul.f32 %v898_v1, %v881_v56  ;;  %v956_v37 = vrot.slane %v808_v59, %v4777_v62  ;;  %v867_v42 = vrot.slane %v808_v59, %v4772_v23 }
 0x104   :  { %v961_v58 = vmul.f32 %v948_v43, %v943_v9  ;;  %v934_v47 = vadd.f32 %v930_v3, %v903_v28  ;;  %v962_v15 = vmul.f32 %v952_v48, %v943_v9  ;;  %v871_v0 = vrot.slane %v809_v6, %v4772_v23  ;;  %v2034_v28 = vld [vmem:[%s4379_s4 + $0x18] sm:$0xf]  ;;  %v2047_v48 = vld [vmem:[%s4381_s6 + $0x1c] sm:$0xf] }
 0x105   :  { %v935_v31 = vadd.f32 %v931_v50, %v904_v7  ;;  %v960_v36 = vrot.slane %v809_v6, %v4777_v62  ;;  %v874_v35 = vmul.f32 %v867_v42, %v854_v20  ;;  %vm4488_vm5 = vcmask 1043456   ;;  %v2035_v7 = vld [vmem:[%s4379_s4 + $0x1c] sm:$0xf] }
 0x106   :  { %v828_v55 = vadd.f32 %v824_v13, %v4778_v63  ;;  %v3453_v56 = vadd.f32 %v961_v58, %v934_v47  ;;  %v875_v4 = vmul.f32 %v871_v0, %v854_v20  ;;  %v829_v59 = vadd.f32 %v825_v22, %v813_v17 }
 0x107   :  { %v3455_v53 = vadd.f32 %v962_v15, %v935_v31  ;;  %v932_v11 = vmul.f32 %v925_v8, %v912_v21  ;;  %v905_v33 = vadd.f32 %v901_v34, %v874_v35  ;;  %v844_v1 = vcombine.low %v836_v2, %v837_v29  ;;  %v2044_v34 = vld [vmem:[%s4381_s6 + $0x10] sm:$0xf]  ;;  %v2037_v31 = vld [vmem:[%s4380_s5 + $0x4] sm:$0xf]  ;;  %v2038_v15 = vld [vmem:[%s4380_s5 + $0x8] sm:$0xf]  ;;  %v3540_v35 = vpop.permute.xlu1 %1027 }
 0x108   :  { %v845_v16 = vcombine.low %v838_v51, %v839_v19  ;;  %v933_v52 = vmul.f32 %v929_v49, %v912_v21  ;;  %v963_v3 = vmul.f32 %v956_v37, %v943_v9  ;;  %v906_v6 = vadd.f32 %v902_v32, %v875_v4  ;;  %v2032_v49 = vld [vmem:[%s4379_s4 + $0x10] sm:$0xf]  ;;  %v3508_v32 = vpop.permute.xlu0 %1085  ;;  %s2146_s4 = smov 94  }
 0x109   :  { %v970_v50 = vsel %vm4488_vm5, %v3453_v56, 0.0  ;;  %v936_v43 = vadd.f32 %v932_v11, %v905_v33  ;;  %v971_v44 = vsel %vm4488_vm5, %v3455_v53, 0.0  ;;  %v3461_v24 = vadd.f32 %v844_v1, %v828_v55 }
 0x10a   :  { %v3463_v13 = vadd.f32 %v845_v16, %v829_v59  ;;  %v964_v20 = vmul.f32 %v960_v36, %v943_v9  ;;  %v937_v17 = vadd.f32 %v933_v52, %v906_v6  ;;  %v972_v29 = vadd.f32 %v971_v44, %v970_v50  ;;  %v4781_v9 = vld [vmem:[#allocation10_spill] sm:$0xff]  ;;  %v4784_v16 = vld [vmem:[#allocation12_spill] sm:$0xff] }
 0x10b   :  { %4779 = vst [vmem:[#allocation44_spill] sm:$0xff] %v3461_v24  ;;  %v3465_v22 = vadd.f32 %v963_v3, %v936_v43  ;;  %v3544_v55 = vpop.permute.xlu1 %1054  ;;  %v62_v52 = vadd.s32 4294967294, %v4784_v16  ;;  %v4785_v3 = vld [vmem:[#allocation13_spill] sm:$0xff]  ;;  %v4786_v50 = vld [vmem:[#allocation14_spill] sm:$0xff]  ;;  %vm4791_vm14 = vcmp.lt.s32.totalorder %v2342_v27, 32  ;;  %v140_v18 = vadd.s32 4294967294, %v4802_v60 }
 0x10c   :  { %4780 = vst [vmem:[#allocation35_spill] sm:$0xff] %v3463_v13  ;;  %v3467_v2 = vadd.f32 %v964_v20, %v937_v17  ;;  %v3512_v37 = vpop.permute.xlu0 %1519  ;;  %v63_v6 = vadd.s32 4294967294, %v4785_v3  ;;  %v139_v43 = vadd.s32 4294967294, %v4786_v50  ;;  %v4787_v20 = vld [vmem:[#allocation15_spill] sm:$0xff] }
 0x10d   :  { %v973_v51 = vsel %vm4488_vm5, %v3465_v22, 0.0  ;;  %vm66_vm7 = vcmp.ge.s32.totalorder %v62_v52, 0  ;;  %v3561_v17 = vadd.s32 4294967294, %v4787_v20 }
 0x10e   :  { %v974_v19 = vadd.f32 %v973_v51, %v972_v29  ;;  %v975_v8 = vsel %vm4488_vm5, %v3467_v2, 0.0  ;;  %vm70_vm5 = vcmp.lt.s32.totalorder %v62_v52, 16  ;;  %vm67_vm3 = vcmp.ge.s32.totalorder %v63_v6, 0  ;;  %v4797_v52 = vld [vmem:[#allocation19_spill] sm:$0xff] }
 0x10f   :  { %v3548_v59 = vpop.permute.xlu1 %1479  ;;  %vm71_vm10 = vcmp.lt.s32.totalorder %v63_v6, 16  ;;  %vm147_vm11 = vcmp.lt.s32.totalorder %v139_v43, 16  ;;  %vm3577_vm0 = vmand %vm66_vm7, %vm70_vm5  ;;  %vm4500_vm7 = vcmp.ge.s32.totalorder %v3561_v17, 0  ;;  %vm4794_vm5 = vcmp.ge.s32.totalorder %v139_v43, 0 }
 0x110   :  { %v976_v21 = vadd.f32 %v975_v8, %v974_v19  ;;  %v3516_v58 = vpop.permute.xlu0 %1116  ;;  %vm3586_vm13 = vmand %vm67_vm3, %vm71_vm10  ;;  %v141_v6 = vadd.s32 4294967294, %v4797_v52  ;;  %vm4800_vm3 = vcmask 1043456  }
 0x111   :  { %4782 = vst [vmem:[#allocation46_spill] sm:$0xff] %v3516_v58  ;;  %vm3598_vm15 = vmand %vm4794_vm5, %vm147_vm11 }
 0x112   :  { %977 = vadd.xlane.f32.xlu1 %v976_v21  ;;  %vm3608_vm10 = vmand %vm3577_vm0, %vm4500_vm7  ;;  %vm149_vm2 = vcmp.lt.s32.totalorder %v141_v6, 16 }
 0x113   :  { %v3552_v33 = vpop.permute.xlu1 %1563  ;;  %vm4801_vm11 = vmmov %vm4800_vm3 }
 0x114   :  { %v3522_v42 = vpop.permute.xlu0 %1453  ;;  %vm1442_vm7 = vmand %vm3586_vm13, %vm3598_vm15 }
 0x115   :  { %vm4804_vm1 = vmmov %vm4800_vm3 }
 0x118   :  { %v3526_v47 = vpop.permute.xlu0 %1490 }
 0x11c   :  { %v3536_v0 = vpop.permute.xlu0 %1496 }
 0x120   :  { %v3538_v36 = vpop.permute.xlu0 %1607 }
 0x123   :  { %1451 = vrot.lane.b32.xlu1 %v4723_v5, %s2138_s23 }
 0x124   :  { %v3542_v63 = vpop.permute.xlu0 %1494 }
 0x127   :  { %1457 = vrot.lane.b32.xlu1 %v4664_v45, %s2138_s23 }
 0x128   :  { %v3546_v4 = vpop.permute.xlu0 %1536 }
 0x12b   :  { %1492 = vrot.lane.b32.xlu1 %v4781_v9, %s2139_s25 }
 0x12c   :  { %v3550_v11 = vpop.permute.xlu0 %1166 }
 0x12d   :  { %4783 = vst [vmem:[#allocation45_spill] sm:$0xff] %v3550_v11 }
 0x12f   :  { %1135 = vperm.xlu1 %2074, %v2032_v49  }
 0x130   :  { %v3554_v1 = vpop.permute.xlu0 %1578 }
 0x133   :  { %1455 = vrot.lane.b32.xlu1 %v2352_v30, %s2138_s23 }
 0x134   :  { %v3563_v51 = vpop.permute.xlu0 %1584 }
 0x137   :  { %1534 = vrot.lane.b32.xlu1 %v4723_v5, %s2140_s28 }
 0x138   :  { %v3618_v41 = vpop.permute.xlu0 %1670 }
 0x13b   :  { %1540 = vrot.lane.b32.xlu1 %v4664_v45, %s2140_s28 }
 0x13f   :  { %1626 = vperm.xlu1 %2074, %v2044_v34  }
 0x143   :  { %1538 = vrot.lane.b32.xlu1 %v2352_v30, %s2140_s28 }
 0x147   :  { %1580 = vrot.lane.b32.xlu1 %v4781_v9, %s2142_s11 }
 0x14b   :  { %1197 = vperm.xlu1 %2074, %v2034_v28   ;;  %v4790_v28 = vld [vmem:[#allocation18_spill] sm:$0xff] }
 0x14f   :  { %1228 = vperm.xlu1 %2074, %v2035_v7   ;;  %v65_v7 = vadd.s32 4294967294, %v4790_v28 }
 0x151   :  { %vm4806_vm5 = vcmp.ge.s32.totalorder %v65_v7, 0 }
 0x153   :  { %1641 = vrot.lane.b32.xlu1 %v4723_v5, %s2143_s20 }
 0x157   :  { %1645 = vrot.lane.b32.xlu1 %v2352_v30, %s2143_s20 }
 0x15b   :  { %1758 = vperm.xlu1 %2074, %v2047_v48  }
 0x15f   :  { %1685 = vrot.lane.b32.xlu1 %v4723_v5, %s2144_s27 }
 0x163   :  { %1689 = vrot.lane.b32.xlu1 %v2352_v30, %s2144_s27 }
 0x167   :  { %1691 = vrot.lane.b32.xlu1 %v4664_v45, %s2144_s27 }
 0x16b   :  { %1731 = vrot.lane.b32.xlu1 %v4781_v9, %s2145_s12 }
 0x16f   :  { %1773 = vrot.lane.b32.xlu1 %v4723_v5, %s2146_s4 }
 0x173   :  { %1777 = vrot.lane.b32.xlu1 %v2352_v30, %s2146_s4 }
 0x177   :  { %1300 = vperm.xlu1 %2074, %v2037_v31  }
 0x17b   :  { %1331 = vperm.xlu1 %2074, %v2038_v15  }
 0x19b   :  { %v978_v44 = vpop.xlane.xlu1 %977 }
 0x19c   :  { %v979_v29 = vmul.f32 0.001953125, %v978_v44 }
 0x19e   :  { %v3566_v19 = vsub.f32 %v3453_v56, %v979_v29  ;;  %v3569_v8 = vsub.f32 %v3455_v53, %v979_v29  ;;  %v3572_v21 = vsub.f32 %v3465_v22, %v979_v29  ;;  %v3575_v49 = vsub.f32 %v3467_v2, %v979_v29 }
 0x19f   :  { %v1452_v48 = vpop.permute.xlu1 %1451  ;;  %v1502_v56 = vsel %vm4791_vm14, %v3536_v0, %v3526_v47  ;;  %vm4510_vm14 = vcmp.lt.s32.totalorder %v2342_v27, 34 }
 0x1a0   :  { %v984_v22 = vmul.f32 %v3566_v19, %v3566_v19  ;;  %v985_v2 = vmul.f32 %v3569_v8, %v3569_v8  ;;  %v986_v31 = vmul.f32 %v3572_v21, %v3572_v21  ;;  %v987_v29 = vmul.f32 %v3575_v49, %v3575_v49 }
 0x1a1   :  { %v1511_v24 = vsel %vm3577_vm0, %v1502_v56, 0.0 }
 0x1a2   :  { %v988_v43 = vsel %vm4800_vm3, %v984_v22, 0.0  ;;  %v989_v13 = vsel %vm4801_vm11, %v985_v2, 0.0  ;;  %v1462_v22 = vsel %vm4510_vm14, %v1452_v48, %v3522_v42  ;;  %v991_v56 = vsel %vm4800_vm3, %v986_v31, 0.0 }
 0x1a3   :  { %v1458_v40 = vpop.permute.xlu1 %1457  ;;  %v990_v10 = vadd.f32 %v989_v13, %v988_v43  ;;  %vm73_vm11 = vcmp.lt.s32.totalorder %v65_v7, 16  ;;  %v4803_v43 = vld [vmem:[#allocation16_spill] sm:$0xff]  ;;  %v1522_v46 = vmul.f32 %v3512_v37, %v1511_v24  ;;  %v993_v38 = vsel %vm4804_vm1, %v987_v29, 0.0  ;;  %v3649_v29 = vpop.permute.xlu0 %1582 }
 0x1a4   :  { %v1463_v2 = vsel %vm4510_vm14, %v1458_v40, %v1452_v48  ;;  %v64_v26 = vadd.s32 4294967294, %v4803_v43  ;;  %v1473_v54 = vsel %vm1442_vm7, %v1462_v22, 0.0  ;;  %vm148_vm3 = vcmp.lt.s32.totalorder %v140_v18, 16  ;;  %vm3645_vm8 = vmand %vm4806_vm5, %vm73_vm11 }
 0x1a5   :  { %v1472_v13 = vsel %vm3608_vm10, %v1463_v2, 0.0  ;;  %v992_v25 = vadd.f32 %v991_v56, %v990_v10  ;;  %vm4805_vm10 = vcmp.lt.s32.totalorder %v2342_v27, 32  ;;  %v199_v10 = vadd.s32 2, %v4786_v50 }
 0x1a6   :  { %v1482_v11 = vmul.f32 %v3548_v59, %v1472_v13  ;;  %vm68_vm1 = vcmp.ge.s32.totalorder %v64_v26, 0  ;;  %vm72_vm7 = vcmp.lt.s32.totalorder %v64_v26, 16  ;;  %vm4809_vm14 = vcmp.ge.s32.totalorder %v141_v6, 0 }
 0x1a7   :  { %v1493_v58 = vpop.permute.xlu1 %1492  ;;  %v994_v48 = vadd.f32 %v993_v38, %v992_v25  ;;  %v1483_v25 = vmul.f32 %v3548_v59, %v1473_v54  ;;  %vm4812_vm5 = vcmp.lt.s32.totalorder %v2342_v27, 32  ;;  %vm4813_vm11 = vcmp.ge.s32.totalorder %v140_v18, 0 }
 0x1a8   :  { %v3637_v31 = vadd.f32 %v1522_v46, %v1482_v11  ;;  %v1501_v44 = vsel %vm4805_vm10, %v3526_v47, %v1493_v58  ;;  %vm3655_vm10 = vmand %vm4809_vm14, %vm149_vm2  ;;  %v1499_v11 = vsel %vm4812_vm5, %v3542_v63, %v3536_v0  ;;  %v4814_v50 = vmov 0  ;;  %v3689_v0 = vpop.permute.xlu0 %1714 }
 0x1a9   :  { %v1512_v38 = vsel %vm3586_vm13, %v1501_v44, 0.0  ;;  %995 = vadd.xlane.f32.xlu0 %v994_v48  ;;  %vm3668_vm12 = vmand %vm4813_vm11, %vm148_vm3  ;;  %vm203_vm6 = vcmp.ge.s32.totalorder %v199_v10, 0  ;;  %vm207_vm4 = vcmp.lt.s32.totalorder %v199_v10, 16  ;;  %v1514_v18 = vsel %vm3645_vm8, %v1499_v11, 0.0 }
 0x1aa   :  { %v1523_v47 = vmul.f32 %v3512_v37, %v1512_v38  ;;  %v4815_v50 = vsel %vm3668_vm12, 4294967295, %v4814_v50  ;;  %vm3672_vm2 = vmand %vm68_vm1, %vm72_vm7  ;;  %v4819_v22 = vmov 0  ;;  %v3698_v2 = vadd.s32 2, %v4787_v20 }
 0x1ab   :  { %v3665_v26 = vpop.permute.xlu1 %1135  ;;  %vm4818_vm14 = vmmov %vm4812_vm5  ;;  %vm4821_vm7 = vcmp.lt.s32.totalorder %v2342_v27, 34  ;;  %v1525_v10 = vmul.f32 %v3512_v37, %v1514_v18 }
 0x1ac   :  { %v1500_v54 = vsel %vm4818_vm14, %v1493_v58, %v3542_v63  ;;  %v1527_v6 = vadd.f32 %v1523_v47, %v1483_v25  ;;  %vm1444_vm5 = vmand %vm3645_vm8, %vm3655_vm10  ;;  %vm4515_vm14 = vcmp.lt.s32.totalorder %v2342_v27, 30  ;;  %v3729_v18 = vpop.permute.xlu0 %1643 }
 0x1ad   :  { %vm1443_vm3 = vmand %vm3672_vm2, %vm3668_vm12  ;;  %v1513_v58 = vsel %vm3672_vm2, %v1500_v54, 0.0  ;;  %v4824_v54 = vld [vmem:[#allocation22_spill] sm:$0xff] }
 0x1ae   :  { %vm3693_vm1 = vmand %vm203_vm6, %vm207_vm4  ;;  %v1524_v38 = vmul.f32 %v3512_v37, %v1513_v58  ;;  %vm4520_vm6 = vcmp.lt.s32.totalorder %v2342_v27, 2 }
 0x1af   :  { %v1456_v63 = vpop.permute.xlu1 %1455  ;;  %v4820_v22 = vsel %vm3693_vm1, 4294967295, %v4819_v22  ;;  %vm4822_vm11 = vmmov %vm4821_vm7 }
 0x1b0   :  { %v1460_v56 = vsel %vm4821_vm7, %v1456_v63, %v1458_v40  ;;  %v1461_v13 = vsel %vm4822_vm11, %v3522_v42, %v1456_v63  ;;  %vm1531_vm4 = vmand %vm3586_vm13, %vm3693_vm1  ;;  %v200_v42 = vadd.s32 2, %v4802_v60  ;;  %vm4825_vm7 = vnez %v4824_v54  ;;  %v3749_v34 = vpop.permute.xlu0 %1259 }
 0x1b1   :  { %v1474_v48 = vsel %vm1443_vm3, %v1461_v13, 0.0  ;;  %v1475_v44 = vsel %vm1444_vm5, %v1460_v56, 0.0  ;;  %vm4521_vm5 = vcmp.lt.s32.totalorder %v3698_v2, 16  ;;  %vm4823_vm3 = vcmp.ge.s32.totalorder %v3561_v17, 0 }
 0x1b2   :  { %v1484_v25 = vmul.f32 %v3548_v59, %v1474_v48  ;;  %v1485_v20 = vmul.f32 %v3548_v59, %v1475_v44  ;;  %v201_v59 = vadd.s32 2, %v4797_v52  ;;  %vm3725_vm13 = vmand %vm4825_vm7, %vm4823_vm3  ;;  %v1590_v60 = vsel %vm4520_vm6, %v3563_v51, %v3554_v1 }
 0x1b3   :  { %v1535_v40 = vpop.permute.xlu1 %1534  ;;  %vm1530_vm11 = vmand %vm3577_vm0, %vm4521_vm5  ;;  %vm204_vm3 = vcmp.ge.s32.totalorder %v200_v42, 0  ;;  %vm4828_vm1 = vcmp.lt.s32.totalorder %v2342_v27, 30  ;;  %v1599_v48 = vsel %vm3725_vm13, %v1590_v60, 0.0 }
 0x1b4   :  { %v1528_v47 = vadd.f32 %v1524_v38, %v1484_v25  ;;  %v1529_v11 = vadd.f32 %v1525_v10, %v1485_v20  ;;  %v1545_v37 = vsel %vm4515_vm14, %v1535_v40, %v3546_v4  ;;  %vm208_vm14 = vcmp.lt.s32.totalorder %v200_v42, 16 }
 0x1b5   :  { %v1556_v58 = vsel %vm1531_vm4, %v1545_v37, 0.0  ;;  %vm205_vm4 = vcmp.ge.s32.totalorder %v201_v59, 0  ;;  %vm209_vm12 = vcmp.lt.s32.totalorder %v201_v59, 16  ;;  %vm3745_vm6 = vmand %vm204_vm3, %vm208_vm14  ;;  %v4829_v38 = vmov 0 }
 0x1b6   :  { %v1567_v63 = vmul.f32 %v3552_v33, %v1556_v58  ;;  %v4830_v38 = vsel %vm3745_vm6, 4294967295, %v4829_v38  ;;  %vm3754_vm0 = vmand %vm205_vm4, %vm209_vm12  ;;  %v4831_v20 = vmov 0  ;;  %vm4833_vm14 = vcmp.lt.s32.totalorder %v2342_v27, 2  ;;  %v1270_v58 = vld [vmem:[%s4380_s5] sm:$0xf] }
 0x1b7   :  { %v1541_v52 = vpop.permute.xlu1 %1540  ;;  %v4832_v20 = vsel %vm3754_vm0, 4294967295, %v4831_v20  ;;  %v1587_v37 = vsel %vm4833_vm14, %v3649_v29, %v3563_v51  ;;  %vm1532_vm12 = vmand %vm3672_vm2, %vm3745_vm6  ;;  %vm4837_vm4 = vnez %v4815_v50 }
 0x1b8   :  { %v1571_v56 = vadd.f32 %v1567_v63, %v1527_v6  ;;  %v1546_v13 = vsel %vm4828_vm1, %v1541_v52, %v1535_v40  ;;  %v1618_v6 = vsel %vm4825_vm7, %v4723_v5, 0.0  ;;  %v1610_v40 = vmul.f32 %v3538_v36, %v1599_v48  ;;  %vm1577_vm1 = vmand %vm4650_vm9, %vm3655_vm10  ;;  %v1648_v63 = vpop.permute.xlu0 %1647 }
 0x1b9   :  { %v1555_v44 = vsel %vm1530_vm11, %v1546_v13, 0.0  ;;  %vm1533_vm13 = vmand %vm3645_vm8, %vm3754_vm0  ;;  %v1602_v53 = vsel %vm1577_vm1, %v1587_v37, 0.0  ;;  %vm4834_vm11 = vcmp.lt.s32.totalorder %v2342_v27, 30  ;;  %vm4836_vm8 = vnez %v4544_v61 }
 0x1ba   :  { %v1566_v10 = vmul.f32 %v3552_v33, %v1555_v44  ;;  %vm4835_vm3 = vmmov %vm4834_vm11  ;;  %vm4838_vm1 = vnez %v4553_v12  ;;  %v1619_v44 = vsel %vm4836_vm8, %v4781_v9, 0.0 }
 0x1bb   :  { %v1627_v25 = vpop.permute.xlu1 %1626  ;;  %vm1575_vm2 = vmand %vm4836_vm8, %vm3598_vm15 }
 0x1bc   :  { %v1570_v42 = vadd.f32 %v1566_v10, %v3637_v31  ;;  %v1629_v59 = vmul.f32 %v1627_v25, %v1618_v6  ;;  %vm1576_vm14 = vmand %vm4838_vm1, %vm4837_vm4  ;;  %v1621_v10 = vsel %vm4650_vm9, %v4664_v45, 0.0 }
 0x1be   :  { %v1614_v5 = vadd.f32 %v1610_v40, %v1570_v42 }
 0x1bf   :  { %1775 = vrot.lane.b32.xlu0 %v4781_v9, %s2146_s4  ;;  %v1539_v31 = vpop.permute.xlu1 %1538  ;;  %v1620_v9 = vsel %vm4838_vm1, %v2352_v30, 0.0 }
 0x1c0   :  { %v1543_v51 = vsel %vm4834_vm11, %v1539_v31, %v1541_v52  ;;  %v1544_v7 = vsel %vm4835_vm3, %v3546_v4, %v1539_v31  ;;  %v1633_v60 = vadd.f32 %v1629_v59, %v1614_v5  ;;  %v1613_v4 = vmul.f32 %v3538_v36, %v1602_v53  ;;  %vm1637_vm11 = vmand %vm4825_vm7, %vm4521_vm5 }
 0x1c1   :  { %v1557_v24 = vsel %vm1532_vm12, %v1544_v7, 0.0  ;;  %v1558_v13 = vsel %vm1533_vm13, %v1543_v51, 0.0  ;;  %vm4839_vm12 = vcmp.lt.s32.totalorder %v2342_v27, 2  ;;  %v1632_v31 = vmul.f32 %v1627_v25, %v1621_v10 }
 0x1c2   :  { %v1568_v48 = vmul.f32 %v3552_v33, %v1557_v24  ;;  %v1569_v52 = vmul.f32 %v3552_v33, %v1558_v13  ;;  %vm4840_vm13 = vmmov %vm4839_vm12  ;;  %v1630_v7 = vmul.f32 %v1627_v25, %v1619_v44  ;;  %vm4522_vm3 = vcmp.lt.s32.totalorder %v2342_v27, 126 }
 0x1c3   :  { %1273 = vperm.xlu0 %2073, %v1270_v58   ;;  %v1581_v6 = vpop.permute.xlu1 %1580 }
 0x1c4   :  { %v1572_v40 = vadd.f32 %v1568_v48, %v1528_v47  ;;  %v1573_v42 = vadd.f32 %v1569_v52, %v1529_v11  ;;  %v1588_v33 = vsel %vm4839_vm12, %v1581_v6, %v3649_v29  ;;  %v1589_v37 = vsel %vm4840_vm13, %v3554_v1, %v1581_v6  ;;  %v3814_v11 = vpop.permute.xlu0 %1687  ;;  %vm1639_vm13 = vmand %vm4838_vm1, %vm3745_vm6 }
 0x1c5   :  { %v1600_v5 = vsel %vm1575_vm2, %v1589_v37, 0.0  ;;  %v1601_v59 = vsel %vm1576_vm14, %v1588_v33, 0.0  ;;  %v1631_v1 = vmul.f32 %v1627_v25, %v1620_v9  ;;  %vm1640_vm2 = vmand %vm4650_vm9, %vm3754_vm0  ;;  %vm4841_vm14 = vnez %v4820_v22 }
 0x1c6   :  { %v1617_v53 = vadd.f32 %v1613_v4, %v1573_v42  ;;  %v1611_v51 = vmul.f32 %v3538_v36, %v1600_v5  ;;  %v1612_v47 = vmul.f32 %v3538_v36, %v1601_v59  ;;  %v122_v36 = vadd.s32 2, %v4784_v16  ;;  %vm1638_vm12 = vmand %vm4836_vm8, %vm4841_vm14 }
 0x1c7   :  { %v3816_v29 = vpop.permute.xlu1 %1197  ;;  %1779 = vrot.lane.b32.xlu0 %v4664_v45, %s2146_s4  ;;  %v123_v33 = vadd.s32 2, %v4785_v3  ;;  %vm1737_vm6 = vcmp.lt.s32.totalorder %v2342_v27, 96 }
 0x1c8   :  { %v1615_v58 = vadd.f32 %v1611_v51, %v1571_v56  ;;  %v1616_v24 = vadd.f32 %v1612_v47, %v1572_v40  ;;  %v1636_v30 = vadd.f32 %v1632_v31, %v1617_v53  ;;  %v3822_v4 = vpop.permute.xlu0 %1802  ;;  %vm126_vm5 = vcmp.ge.s32.totalorder %v122_v36, 0 }
 0x1c9   :  { %vm131_vm1 = vcmp.lt.s32.totalorder %v123_v33, 16 }
 0x1ca   :  { %v1634_v13 = vadd.f32 %v1630_v7, %v1615_v58  ;;  %v1635_v48 = vadd.f32 %v1631_v1, %v1616_v24  ;;  %v124_v1 = vadd.s32 2, %v4803_v43 }
 0x1cb   :  { %v3820_v52 = vpop.permute.xlu1 %1228 }
 0x1cc   :  { %v3839_v44 = vpop.permute.xlu0 %1729 }
 0x1cf   :  { %v1642_v45 = vpop.permute.xlu1 %1641 }
 0x1d0   :  { %v1652_v56 = vsel %vm4522_vm3, %v1642_v45, %v3729_v18  ;;  %v1653_v25 = vsel %vm4522_vm3, %v1648_v63, %v1642_v45  ;;  %vm130_vm3 = vcmp.lt.s32.totalorder %v122_v36, 16  ;;  %v1734_v7 = vpop.permute.xlu0 %1733 }
 0x1d1   :  { %v1662_v10 = vsel %vm1637_vm11, %v1652_v56, 0.0  ;;  %v1665_v6 = vsel %vm1640_vm2, %v1653_v25, 0.0  ;;  %vm4842_vm11 = vcmp.lt.s32.totalorder %v2342_v27, 126  ;;  %vm3860_vm9 = vmand %vm126_vm5, %vm130_vm3  ;;  %vm128_vm5 = vcmp.ge.s32.totalorder %v124_v1, 0 }
 0x1d2   :  { %v1673_v40 = vmul.f32 %v3618_v41, %v1662_v10  ;;  %v1676_v16 = vmul.f32 %v3618_v41, %v1665_v6  ;;  %vm4843_vm2 = vmmov %vm4842_vm11  ;;  %vm132_vm3 = vcmp.lt.s32.totalorder %v124_v1, 16 }
 0x1d3   :  { %v1646_v42 = vpop.permute.xlu1 %1645 }
 0x1d4   :  { %v1677_v37 = vadd.f32 %v1673_v40, %v1633_v60  ;;  %v1680_v9 = vadd.f32 %v1676_v16, %v1636_v30  ;;  %v1650_v5 = vsel %vm4842_vm11, %v1646_v42, %v1648_v63  ;;  %v1651_v59 = vsel %vm4843_vm2, %v3729_v18, %v1646_v42 }
 0x1d5   :  { %v1663_v31 = vsel %vm1638_vm12, %v1651_v59, 0.0  ;;  %v1664_v53 = vsel %vm1639_vm13, %v1650_v5, 0.0  ;;  %vm127_vm11 = vcmp.ge.s32.totalorder %v123_v33, 0  ;;  %v125_v18 = vadd.s32 2, %v4790_v28  ;;  %v1736_v28 = vpop.permute.xlu0 %1735 }
 0x1d6   :  { %v1674_v51 = vmul.f32 %v3618_v41, %v1663_v31  ;;  %v1675_v47 = vmul.f32 %v3618_v41, %v1664_v53  ;;  %vm1693_vm12 = vcmp.lt.s32.totalorder %v2342_v27, 98  ;;  %vm4846_vm13 = vcmp.ge.s32.totalorder %v3561_v17, 0  ;;  %vm3870_vm8 = vmand %vm127_vm11, %vm131_vm1 }
 0x1d7   :  { %v1759_v58 = vpop.permute.xlu1 %1758  ;;  %vm1681_vm2 = vmand %vm3860_vm9, %vm4846_vm13  ;;  %vm129_vm7 = vcmp.ge.s32.totalorder %v125_v18, 0  ;;  %vm133_vm0 = vcmp.lt.s32.totalorder %v125_v18, 16  ;;  %v1738_v36 = vsel %vm1737_vm6, %v1734_v7, %v1736_v28  ;;  %v1741_v25 = vsel %vm1737_vm6, %v1736_v28, %v3839_v44 }
 0x1d8   :  { %v1678_v60 = vadd.f32 %v1674_v51, %v1634_v13  ;;  %v1679_v63 = vadd.f32 %v1675_v47, %v1635_v48  ;;  %vm1682_vm1 = vmand %vm3870_vm8, %vm3598_vm15 }
 0x1d9   :  { %vm3883_vm11 = vmand %vm128_vm5, %vm132_vm3  ;;  %vm4858_vm3 = vcmp.lt.s32.totalorder %v2342_v27, 17 }
 0x1da   :  { %vm3887_vm13 = vmand %vm129_vm7, %vm133_vm0  ;;  %vm1781_vm0 = vcmp.lt.s32.totalorder %v2342_v27, 94 }
 0x1db   :  { %v1686_v41 = vpop.permute.xlu1 %1685  ;;  %vm1683_vm15 = vmand %vm3883_vm11, %vm4837_vm4  ;;  %v1753_v16 = vsel %vm3887_vm13, %v1741_v25, 0.0 }
 0x1dc   :  { %v1696_v24 = vsel %vm1693_vm12, %v1686_v41, %v3814_v11  ;;  %vm1684_vm7 = vmand %vm3887_vm13, %vm3655_vm10  ;;  %v1764_v53 = vmul.f32 %v1759_v58, %v1753_v16  ;;  %vm4853_vm10 = vcmp.lt.s32.totalorder %v3698_v2, 16 }
 0x1dd   :  { %v1706_v17 = vsel %vm1681_vm2, %v1696_v24, 0.0  ;;  %vm1770_vm4 = vmand %vm3870_vm8, %vm4841_vm14  ;;  %vm4855_vm14 = vnez %v4832_v20  ;;  %vm4856_vm2 = vcmp.lt.s32.totalorder %v2342_v27, 16  ;;  %v4904_v20 = vld [vmem:[#allocation46_spill] sm:$0xff] }
 0x1de   :  { %v1717_v30 = vmul.f32 %v3689_v0, %v1706_v17  ;;  %vm4857_vm5 = vmmov %vm4856_vm2 }
 0x1df   :  { %v1690_v48 = vpop.permute.xlu1 %1689 }
 0x1e0   :  { %v1721_v56 = vadd.f32 %v1717_v30, %v1677_v37  ;;  %v1695_v15 = vsel %vm1693_vm12, %v3814_v11, %v1690_v48  ;;  %v1752_v11 = vsel %vm3883_vm11, %v1738_v36, 0.0 }
 0x1e1   :  { %v1707_v10 = vsel %vm1682_vm1, %v1695_v15, 0.0  ;;  %v1763_v31 = vmul.f32 %v1759_v58, %v1752_v11  ;;  %vm4859_vm1 = vmmov %vm4858_vm3 }
 0x1e2   :  { %v1718_v6 = vmul.f32 %v3689_v0, %v1707_v10 }
 0x1e3   :  { %v1692_v40 = vpop.permute.xlu1 %1691 }
 0x1e4   :  { %v1722_v42 = vadd.f32 %v1718_v6, %v1678_v60  ;;  %v1694_v50 = vsel %vm1693_vm12, %v1690_v48, %v1692_v40  ;;  %v1697_v33 = vsel %vm1693_vm12, %v1692_v40, %v1686_v41  ;;  %vm1772_vm12 = vmand %vm3887_vm13, %vm4855_vm14  ;;  %vm4876_vm14 = vcmp.lt.s32.totalorder %v2342_v27, 15 }
 0x1e5   :  { %v1708_v37 = vsel %vm1683_vm15, %v1694_v50, 0.0  ;;  %v1709_v5 = vsel %vm1684_vm7, %v1697_v33, 0.0  ;;  %vm4861_vm13 = vmmov %vm4859_vm1 }
 0x1e6   :  { %v1719_v46 = vmul.f32 %v3689_v0, %v1708_v37  ;;  %v1720_v59 = vmul.f32 %v3689_v0, %v1709_v5  ;;  %v2050_v5 = vld [vmem:[%s4382_s7 + $0x8] sm:$0xf] }
 0x1e7   :  { %v1732_v51 = vpop.permute.xlu1 %1731 }
 0x1e8   :  { %v1723_v47 = vadd.f32 %v1719_v46, %v1679_v63  ;;  %v1724_v1 = vadd.f32 %v1720_v59, %v1680_v9  ;;  %v1739_v60 = vsel %vm1737_vm6, %v1732_v51, %v1734_v7  ;;  %v1740_v18 = vsel %vm1737_vm6, %v3839_v44, %v1732_v51  ;;  %vm1769_vm6 = vmand %vm3860_vm9, %vm4853_vm10  ;;  %v2039_v46 = vld [vmem:[%s4380_s5 + $0xc] sm:$0xf]  ;;  %s2040_s5 = sld [smem:[#allocation2 + $0x4]] }
 0x1e9   :  { %v1750_v41 = vsel %vm3860_vm9, %v1740_v18, 0.0  ;;  %v1751_v24 = vsel %vm3870_vm8, %v1739_v60, 0.0  ;;  %v2051_v59 = vld [vmem:[%s4382_s7 + $0xc] sm:$0xf]  ;;  %vm4854_vm9 = vnez %v4830_v38 }
 0x1ea   :  { %v1761_v28 = vmul.f32 %v1759_v58, %v1750_v41  ;;  %v1762_v0 = vmul.f32 %v1759_v58, %v1751_v24  ;;  %v3927_v17 = vadd.f32 %v1763_v31, %v1723_v47  ;;  %v3929_v30 = vadd.f32 %v1764_v53, %v1724_v1  ;;  %vm1771_vm8 = vmand %vm3883_vm11, %vm4854_vm9 }
 0x1eb   :  { %v3931_v48 = vpop.permute.xlu1 %1773  ;;  %vm4860_vm11 = vmmov %vm4859_vm1 }
 0x1ec   :  { %v1765_v9 = vadd.f32 %v1761_v28, %v1721_v56  ;;  %v1766_v63 = vadd.f32 %v1762_v0, %v1722_v42 }
 0x1ef   :  { %v3942_v58 = vpop.permute.xlu1 %1777 }
 0x1f3   :  { %v4047_v31 = vpop.permute.xlu1 %1300 }
 0x1f7   :  { %v4051_v51 = vpop.permute.xlu1 %1331 }
 0x232   :  { %v996_v7 = vpop.xlane.xlu0 %995 }
 0x233   :  { %v997_v36 = vmul.f32 0.001953125, %v996_v7 }
 0x235   :  { %v998_v44 = vadd.f32 1e-05, %v997_v36 }
 0x236   :  { %v1776_v56 = vpop.permute.xlu0 %1775 }
 0x237   :  { %2085 = vrsqrt.f32 %v998_v44  ;;  %v1783_v15 = vsel %vm1781_vm0, %v1776_v56, %v3942_v58  ;;  %v1784_v2 = vsel %vm1781_vm0, %v3931_v48, %v1776_v56 }
 0x238   :  { %v1794_v3 = vsel %vm1769_vm6, %v1784_v2, 0.0  ;;  %v1795_v25 = vsel %vm1770_vm4, %v1783_v15, 0.0 }
 0x239   :  { %v1805_v10 = vmul.f32 %v3822_v4, %v1794_v3  ;;  %v1806_v22 = vmul.f32 %v3822_v4, %v1795_v25 }
 0x23b   :  { %v3952_v43 = vadd.f32 %v1805_v10, %v1765_v9  ;;  %v3954_v6 = vadd.f32 %v1806_v22, %v1766_v63 }
 0x23d   :  { %v1822_v38 = vrot.slane %v3952_v43, %v4772_v23  ;;  %v1826_v13 = vrot.slane %v3954_v6, %v4772_v23 }
 0x23e   :  { %v4049_v53 = vpop.permute.xlu0 %1273 }
 0x242   :  { %v1780_v47 = vpop.permute.xlu0 %1779 }
 0x243   :  { %v1782_v2 = vsel %vm1781_vm0, %v3942_v58, %v1780_v47  ;;  %v1785_v3 = vsel %vm1781_vm0, %v1780_v47, %v3931_v48  ;;  %vm4870_vm0 = vmmov %vm4856_vm2 }
 0x244   :  { %v2086_v11 = vpop.eup %2085  ;;  %v1796_v25 = vsel %vm1771_vm8, %v1782_v2, 0.0  ;;  %v1797_v10 = vsel %vm1772_vm12, %v1785_v3, 0.0  ;;  %v4864_v2 = vld [vmem:[#allocation23_spill] sm:$0xff]  ;;  %v4866_v3 = vld [vmem:[#allocation29_spill] sm:$0xff]  ;;  %vm4871_vm4 = vmmov %vm4870_vm0 }
 0x245   :  { %v1001_v40 = vmul.f32 %v2086_v11, %v3569_v8  ;;  %v1000_v16 = vmul.f32 %v2086_v11, %v3566_v19  ;;  %v1003_v33 = vmul.f32 %v2086_v11, %v3575_v49  ;;  %v1002_v19 = vmul.f32 %v2086_v11, %v3572_v21  ;;  %v2049_v21 = vld [vmem:[%s4382_s7 + $0x4] sm:$0xf]  ;;  %v1813_v49 = vld [vmem:[%s4382_s7] sm:$0xf]  ;;  %vm4877_vm12 = vmmov %vm4876_vm14  ;;  %s2052_s7 = sld [smem:[#allocation2 + $0x5]] }
 0x246   :  { %v4101_v47 = vmul.f32 %v3822_v4, %v1797_v10  ;;  %vm4865_vm7 = vnez %v4864_v2  ;;  %vm4867_vm10 = vnez %v4866_v3 }
 0x247   :  { %v3958_v42 = vmax.f32 %v1001_v40, 0.0  ;;  %v3960_v50 = vmax.f32 %v1000_v16, 0.0  ;;  %v3967_v37 = vmax.f32 %v1003_v33, 0.0  ;;  %v3978_v8 = vmax.f32 %v1002_v19, 0.0  ;;  %v4872_v19 = vld [vmem:[#allocation37_spill] sm:$0xff]  ;;  %v4892_v33 = vld [vmem:[#allocation40_spill] sm:$0xff] }
 0x248   :  { %vm4873_vm9 = vnez %v4872_v19  ;;  %v4880_v19 = vld [vmem:[#allocation30_spill] sm:$0xff] }
 0x249   :  { %1010 = vrot.lane.b32.xlu1 %v3958_v42, %s2130_s13  ;;  %1008 = vrot.lane.b32.xlu0 %v3960_v50, %s2130_s13 }
 0x24d   :  { %1034 = vrot.lane.b32.xlu1 %v3960_v50, %s2131_s18  ;;  %1014 = vrot.lane.b32.xlu0 %v3967_v37, %s2130_s13 }
 0x251   :  { %1040 = vrot.lane.b32.xlu1 %v3967_v37, %s2131_s18  ;;  %1036 = vrot.lane.b32.xlu0 %v3958_v42, %s2131_s18 }
 0x255   :  { %1038 = vrot.lane.b32.xlu1 %v3978_v8, %s2131_s18  ;;  %1012 = vrot.lane.b32.xlu0 %v3978_v8, %s2130_s13 }
 0x259   :  { %1067 = vrot.lane.b32.xlu1 %v3958_v42, %s2132_s21  ;;  %1065 = vrot.lane.b32.xlu0 %v3960_v50, %s2132_s21 }
 0x25d   :  { %1069 = vrot.lane.b32.xlu1 %v3978_v8, %s2132_s21  ;;  %1071 = vrot.lane.b32.xlu0 %v3967_v37, %s2132_s21 }
 0x261   :  { %1098 = vrot.lane.b32.xlu1 %v3958_v42, %s2133_s24  ;;  %1096 = vrot.lane.b32.xlu0 %v3960_v50, %s2133_s24 }
 0x265   :  { %1146 = vrot.lane.b32.xlu1 %v3960_v50, %s2134_s29  ;;  %1102 = vrot.lane.b32.xlu0 %v3967_v37, %s2133_s24 }
 0x269   :  { %1150 = vrot.lane.b32.xlu1 %v3978_v8, %s2134_s29  ;;  %1100 = vrot.lane.b32.xlu0 %v3978_v8, %s2133_s24 }
 0x26d   :  { %1152 = vrot.lane.b32.xlu1 %v3967_v37, %s2134_s29  ;;  %1148 = vrot.lane.b32.xlu0 %v3958_v42, %s2134_s29 }
 0x271   :  { %1179 = vrot.lane.b32.xlu1 %v3958_v42, %s2135_s10  ;;  %1177 = vrot.lane.b32.xlu0 %v3960_v50, %s2135_s10 }
 0x275   :  { %1208 = vrot.lane.b32.xlu1 %v3960_v50, %s2136_s0  ;;  %1181 = vrot.lane.b32.xlu0 %v3978_v8, %s2135_s10 }
 0x279   :  { %1212 = vrot.lane.b32.xlu1 %v3978_v8, %s2136_s0  ;;  %1183 = vrot.lane.b32.xlu0 %v3967_v37, %s2135_s10 }
 0x27d   :  { %1214 = vrot.lane.b32.xlu1 %v3967_v37, %s2136_s0  ;;  %1210 = vrot.lane.b32.xlu0 %v3958_v42, %s2136_s0 }
 0x281   :  { %1241 = vrot.lane.b32.xlu1 %v3958_v42, %s2137_s16  ;;  %1239 = vrot.lane.b32.xlu0 %v3960_v50, %s2137_s16 }
 0x285   :  { %1245 = vrot.lane.b32.xlu1 %v3967_v37, %s2137_s16  ;;  %1243 = vrot.lane.b32.xlu0 %v3978_v8, %s2137_s16 }
 0x289   :  { %1843 = vperm.xlu1 %2074, %v2049_v21   ;;  %1816 = vperm.xlu0 %2073, %v1813_v49  }
 0x28d   :  { %1874 = vperm.xlu1 %2074, %v2050_v5   ;;  %1362 = vperm.xlu0 %2073, %v2039_v46  }
 0x291   :  { %1905 = vperm.xlu0 %2073, %v2051_v59   ;;  %v4098_v59 = vmul.f32 %v3822_v4, %v1796_v25 }
 0x2bb   :  { %v1009_v1 = vpop.permute.xlu0 %1008  ;;  %v1011_v60 = vpop.permute.xlu1 %1010 }
 0x2bc   :  { %v1018_v40 = vsel %vm4858_vm3, %v1009_v1, %v1011_v60  ;;  %vm4881_vm3 = vnez %v4880_v19 }
 0x2bf   :  { %v1015_v18 = vpop.permute.xlu0 %1014  ;;  %v1035_v41 = vpop.permute.xlu1 %1034 }
 0x2c0   :  { %v1019_v16 = vsel %vm4859_vm1, %v1015_v18, %v1009_v1  ;;  %v4862_v1 = vld [vmem:[#allocation27_spill] sm:$0xff] }
 0x2c1   :  { %vm4863_vm15 = vnez %v4862_v1  ;;  %v4874_v1 = vld [vmem:[#allocation39_spill] sm:$0xff] }
 0x2c2   :  { %vm4875_vm8 = vnez %v4874_v1 }
 0x2c3   :  { %v1037_v24 = vpop.permute.xlu0 %1036  ;;  %v1041_v28 = vpop.permute.xlu1 %1040 }
 0x2c4   :  { %v1044_v58 = vsel %vm4856_vm2, %v1035_v41, %v1037_v24  ;;  %v1045_v48 = vsel %vm4857_vm5, %v1041_v28, %v1035_v41  ;;  %vm4878_vm2 = vmmov %vm4877_vm12 }
 0x2c5   :  { %v1047_v41 = vsel %vm4863_vm15, %v1044_v58, 0.0  ;;  %vm4879_vm5 = vmmov %vm4878_vm2 }
 0x2c6   :  { %v1058_v2 = vmul.f32 %v3544_v55, %v1047_v41 }
 0x2c7   :  { %v1013_v0 = vpop.permute.xlu0 %1012  ;;  %v1039_v9 = vpop.permute.xlu1 %1038 }
 0x2c8   :  { %v1016_v21 = vsel %vm4860_vm11, %v1013_v0, %v1015_v18  ;;  %v1017_v49 = vsel %vm4861_vm13, %v1011_v60, %v1013_v0  ;;  %v1046_v18 = vsel %vm4865_vm7, %v1045_v48, 0.0  ;;  %v1021_v60 = vsel %vm4867_vm10, %v1018_v40, 0.0  ;;  %v4868_v0 = vld [vmem:[#allocation28_spill] sm:$0xff] }
 0x2c9   :  { %vm4869_vm6 = vnez %v4868_v0  ;;  %v1042_v46 = vsel %vm4870_vm0, %v1039_v9, %v1041_v28  ;;  %v1043_v25 = vsel %vm4871_vm4, %v1037_v24, %v1039_v9  ;;  %v1022_v58 = vsel %vm4873_vm9, %v1017_v49, 0.0 }
 0x2ca   :  { %v1020_v5 = vsel %vm4869_vm6, %v1019_v16, 0.0  ;;  %v1023_v48 = vsel %vm4875_vm8, %v1016_v21, 0.0  ;;  %v1057_v28 = vmul.f32 %v3544_v55, %v1046_v18  ;;  %v1048_v49 = vsel %vm4881_vm3, %v1043_v25, 0.0  ;;  %v4882_v21 = vld [vmem:[#allocation32_spill] sm:$0xff] }
 0x2cb   :  { %v1066_v63 = vpop.permute.xlu0 %1065  ;;  %v1068_v7 = vpop.permute.xlu1 %1067  ;;  %vm4883_vm1 = vnez %v4882_v21  ;;  %vm4884_vm11 = vcmp.lt.s32.totalorder %v2342_v27, 1  ;;  %v1032_v41 = vmul.f32 %v3540_v35, %v1022_v58  ;;  %v1033_v18 = vmul.f32 %v3540_v35, %v1023_v48  ;;  %v4890_v21 = vld [vmem:[#allocation42_spill] sm:$0xff] }
 0x2cc   :  { %v1075_v40 = vsel %vm4876_vm14, %v1066_v63, %v1068_v7  ;;  %v1049_v3 = vsel %vm4883_vm1, %v1042_v46, 0.0  ;;  %vm4885_vm13 = vmmov %vm4884_vm11  ;;  %vm4891_vm10 = vnez %v4890_v21  ;;  %vm4893_vm6 = vnez %v4892_v33 }
 0x2cd   :  { %vm4894_vm0 = vmmov %vm4884_vm11  ;;  %v1059_v48 = vmul.f32 %v3544_v55, %v1048_v49  ;;  %v1030_v33 = vmul.f32 %v3540_v35, %v1020_v5  ;;  %v4900_v49 = vld [vmem:[#allocation11_spill] sm:$0xff]  ;;  %vm4907_vm3 = vnez %v4553_v12  ;;  %vm4908_vm1 = vnez %v4556_v14 }
 0x2ce   :  { %vm4895_vm4 = vmmov %vm4894_vm0  ;;  %vm4901_vm14 = vnez %v4900_v49  ;;  %v4919_v49 = vld [vmem:[#allocation26_spill] sm:$0xff] }
 0x2cf   :  { %v1072_v36 = vpop.permute.xlu0 %1071  ;;  %v1070_v44 = vpop.permute.xlu1 %1069 }
 0x2d0   :  { %v1076_v16 = vsel %vm4877_vm12, %v1072_v36, %v1066_v63  ;;  %v1073_v24 = vsel %vm4878_vm2, %v1070_v44, %v1072_v36  ;;  %v1074_v9 = vsel %vm4879_vm5, %v1068_v7, %v1070_v44  ;;  %v4886_v36 = vld [vmem:[#allocation41_spill] sm:$0xff]  ;;  %v4888_v7 = vld [vmem:[#allocation36_spill] sm:$0xff]  ;;  %vm4905_vm2 = vnez %v4824_v54 }
 0x2d1   :  { %vm4887_vm15 = vnez %v4886_v36  ;;  %vm4889_vm7 = vnez %v4888_v7  ;;  %v1079_v46 = vsel %vm4891_vm10, %v1074_v9, 0.0  ;;  %v1080_v45 = vsel %vm4893_vm6, %v1073_v24, 0.0  ;;  %v4896_v36 = vld [vmem:[#allocation43_spill] sm:$0xff] }
 0x2d2   :  { %v1078_v1 = vsel %vm4887_vm15, %v1075_v40, 0.0  ;;  %v1077_v44 = vsel %vm4889_vm7, %v1076_v16, 0.0  ;;  %v1060_v40 = vmul.f32 %v3544_v55, %v1049_v3  ;;  %vm4897_vm9 = vnez %v4896_v36  ;;  %v4898_v7 = vld [vmem:[#allocation47_spill] sm:$0xff]  ;;  %v4902_v3 = vld [vmem:[#allocation33_spill] sm:$0xff] }
 0x2d3   :  { %v1097_v56 = vpop.permute.xlu0 %1096  ;;  %v1099_v15 = vpop.permute.xlu1 %1098  ;;  %vm4899_vm8 = vnez %v4898_v7  ;;  %v1031_v9 = vmul.f32 %v3540_v35, %v1021_v60  ;;  %v1089_v24 = vmul.f32 %v3508_v32, %v1078_v1  ;;  %vm4903_vm12 = vnez %v4902_v3  ;;  %v4921_v3 = vld [vmem:[#allocation24_spill] sm:$0xff] }
 0x2d4   :  { %v1106_v0 = vsel %vm4884_vm11, %v1097_v56, %v1099_v15  ;;  %v1061_v60 = vadd.f32 %v1057_v28, %v1030_v33  ;;  %v1063_v1 = vadd.f32 %v1059_v48, %v1032_v41  ;;  %vm4906_vm5 = vnez %v4544_v61 }
 0x2d5   :  { %v1109_v16 = vsel %vm4897_vm9, %v1106_v0, 0.0  ;;  %v1062_v7 = vadd.f32 %v1058_v2, %v1031_v9  ;;  %v1129_v41 = vsel %vm4907_vm3, %v3978_v8, 0.0  ;;  %v1130_v54 = vsel %vm4908_vm1, %v3967_v37, 0.0 }
 0x2d6   :  { %v1120_v35 = vmul.f32 %v4904_v20, %v1109_v16  ;;  %vm4909_vm11 = vcmp.lt.s32.totalorder %v2342_v27, 127  ;;  %vm4913_vm10 = vcmp.lt.s32.totalorder %v2342_v27, 113  ;;  %vm4920_vm9 = vnez %v4919_v49 }
 0x2d7   :  { %v1103_v22 = vpop.permute.xlu0 %1102  ;;  %v4079_v11 = vpop.permute.xlu1 %1146  ;;  %vm4911_vm15 = vmmov %vm4909_vm11 }
 0x2d8   :  { %v1107_v63 = vsel %vm4885_vm13, %v1103_v22, %v1097_v56  ;;  %vm4910_vm13 = vmmov %vm4909_vm11 }
 0x2d9   :  { %v1108_v21 = vsel %vm4899_vm8, %v1107_v63, 0.0  ;;  %vm4912_vm7 = vmmov %vm4909_vm11  ;;  %vm4922_vm8 = vnez %v4921_v3 }
 0x2da   :  { %v1119_v5 = vmul.f32 %v4904_v20, %v1108_v21  ;;  %vm4914_vm6 = vmmov %vm4913_vm10 }
 0x2db   :  { %v1101_v4 = vpop.permute.xlu0 %1100  ;;  %v1151_v10 = vpop.permute.xlu1 %1150 }
 0x2dc   :  { %v1104_v56 = vsel %vm4894_vm0, %v1101_v4, %v1103_v22  ;;  %v1105_v58 = vsel %vm4895_vm4, %v1099_v15, %v1101_v4  ;;  %v1088_v22 = vmul.f32 %v3508_v32, %v1077_v44  ;;  %v1090_v15 = vmul.f32 %v3508_v32, %v1079_v46 }
 0x2dd   :  { %v1091_v4 = vmul.f32 %v3508_v32, %v1080_v45  ;;  %v1110_v55 = vsel %vm4901_vm14, %v1105_v58, 0.0  ;;  %v1111_v0 = vsel %vm4903_vm12, %v1104_v56, 0.0  ;;  %v1064_v44 = vadd.f32 %v1060_v40, %v1033_v18 }
 0x2de   :  { %v1127_v32 = vsel %vm4905_vm2, %v3960_v50, 0.0  ;;  %v1128_v45 = vsel %vm4906_vm5, %v3958_v42, 0.0  ;;  %v1093_v46 = vadd.f32 %v1089_v24, %v1062_v7  ;;  %v1092_v56 = vadd.f32 %v1088_v22, %v1061_v60  ;;  %v4925_v60 = vld [vmem:[#allocation9_spill] sm:$0xff]  ;;  %vm4927_vm2 = vmmov %vm4914_vm6 }
 0x2df   :  { %v1149_v25 = vpop.permute.xlu0 %1148  ;;  %v1153_v19 = vpop.permute.xlu1 %1152  ;;  %v1121_v58 = vmul.f32 %v4904_v20, %v1110_v55  ;;  %v1122_v2 = vmul.f32 %v4904_v20, %v1111_v0  ;;  %v1094_v28 = vadd.f32 %v1090_v15, %v1063_v1  ;;  %v1095_v16 = vadd.f32 %v1091_v4, %v1064_v44  ;;  %vm4928_vm5 = vmmov %vm4927_vm2 }
 0x2e0   :  { %v1124_v61 = vadd.f32 %v1120_v35, %v1093_v46  ;;  %v1123_v42 = vadd.f32 %v1119_v5, %v1092_v56  ;;  %v1155_v48 = vsel %vm4909_vm11, %v1149_v25, %v1151_v10  ;;  %v1156_v20 = vsel %vm4910_vm13, %v4079_v11, %v1149_v25  ;;  %v4915_v25 = vld [vmem:[#allocation49_spill] sm:$0xff] }
 0x2e1   :  { %v1154_v40 = vsel %vm4911_vm15, %v1151_v10, %v1153_v19  ;;  %v1157_v12 = vsel %vm4912_vm7, %v1153_v19, %v4079_v11  ;;  %v1125_v8 = vadd.f32 %v1121_v58, %v1094_v28  ;;  %v1126_v21 = vadd.f32 %v1122_v2, %v1095_v16  ;;  %v4917_v10 = vld [vmem:[#allocation38_spill] sm:$0xff] }
 0x2e2   :  { %v1138_v9 = vmul.f32 %v3665_v26, %v1127_v32  ;;  %v1139_v33 = vmul.f32 %v3665_v26, %v1128_v45  ;;  %vm4916_vm0 = vnez %v4915_v25  ;;  %vm4918_vm4 = vnez %v4917_v10  ;;  %v4929_v32 = vld [vmem:[#allocation45_spill] sm:$0xff]  ;;  %v4942_v10 = vld [vmem:[#allocation52_spill] sm:$0xff] }
 0x2e3   :  { %v1178_v36 = vpop.permute.xlu0 %1177  ;;  %v1180_v63 = vpop.permute.xlu1 %1179  ;;  %v1158_v24 = vsel %vm4916_vm0, %v1156_v20, 0.0  ;;  %v1159_v22 = vsel %vm4918_vm4, %v1155_v48, 0.0  ;;  %v1140_v11 = vmul.f32 %v3665_v26, %v1129_v41  ;;  %v1141_v19 = vmul.f32 %v3665_v26, %v1130_v54 }
 0x2e4   :  { %v1187_v14 = vsel %vm4913_vm10, %v1178_v36, %v1180_v63  ;;  %v1160_v55 = vsel %vm4920_vm9, %v1154_v40, 0.0  ;;  %v1161_v0 = vsel %vm4922_vm8, %v1157_v12, 0.0  ;;  %vm4926_vm12 = vnez %v4925_v60  ;;  %v4936_v12 = vld [vmem:[#allocation8_spill] sm:$0xff] }
 0x2e5   :  { %v1142_v5 = vadd.f32 %v1138_v9, %v1123_v42  ;;  %v1143_v1 = vadd.f32 %v1139_v33, %v1124_v61  ;;  %v1169_v45 = vmul.f32 %v4929_v32, %v1158_v24  ;;  %v1170_v46 = vmul.f32 %v4929_v32, %v1159_v22 }
 0x2e6   :  { %v1144_v56 = vadd.f32 %v1140_v11, %v1125_v8  ;;  %v1145_v58 = vadd.f32 %v1141_v19, %v1126_v21  ;;  %v1171_v2 = vmul.f32 %v4929_v32, %v1160_v55  ;;  %v1172_v28 = vmul.f32 %v4929_v32, %v1161_v0  ;;  %v4944_v0 = vld [vmem:[#allocation53_spill] sm:$0xff] }
 0x2e7   :  { %v1182_v50 = vpop.permute.xlu0 %1181  ;;  %v1209_v18 = vpop.permute.xlu1 %1208  ;;  %vm4934_vm11 = vcmp.lt.s32.totalorder %v2342_v27, 112  ;;  %vm4937_vm15 = vnez %v4936_v12  ;;  %v4241_v33 = vadd.f32 %v4098_v59, %v3927_v17  ;;  %v1173_v25 = vadd.f32 %v1169_v45, %v1142_v5 }
 0x2e8   :  { %v1186_v37 = vsel %vm4914_vm6, %v1180_v63, %v1182_v50  ;;  %v4923_v63 = vld [vmem:[#allocation51_spill] sm:$0xff]  ;;  %vm4935_vm13 = vmmov %vm4934_vm11  ;;  %vm4943_vm0 = vnez %v4942_v10  ;;  %v1174_v11 = vadd.f32 %v1170_v46, %v1143_v1  ;;  %vm4945_vm4 = vnez %v4944_v0 }
 0x2e9   :  { %vm4924_vm14 = vnez %v4923_v63  ;;  %v1190_v35 = vsel %vm4926_vm12, %v1186_v37, 0.0  ;;  %v4938_v37 = vld [vmem:[#allocation50_spill] sm:$0xff]  ;;  %vm4940_vm10 = vmmov %vm4934_vm11  ;;  %vm4946_vm9 = vcmp.lt.s32.totalorder %v2342_v27, 111  ;;  %v1176_v63 = vadd.f32 %v1172_v28, %v1145_v58 }
 0x2ea   :  { %v1189_v7 = vsel %vm4924_vm14, %v1187_v14, 0.0  ;;  %v1201_v41 = vmul.f32 %v3816_v29, %v1190_v35  ;;  %vm4939_vm7 = vnez %v4938_v37  ;;  %vm4941_vm6 = vmmov %vm4940_vm10  ;;  %v4947_v35 = vld [vmem:[#allocation31_spill] sm:$0xff] }
 0x2eb   :  { %v1184_v15 = vpop.permute.xlu0 %1183  ;;  %v1213_v4 = vpop.permute.xlu1 %1212  ;;  %v1200_v16 = vmul.f32 %v3816_v29, %v1189_v7  ;;  %vm4948_vm8 = vnez %v4947_v35  ;;  %vm4949_vm14 = vmmov %vm4946_vm9 }
 0x2ec   :  { %v1185_v44 = vsel %vm4927_vm2, %v1182_v50, %v1184_v15  ;;  %v1188_v26 = vsel %vm4928_vm5, %v1184_v15, %v1178_v36  ;;  %v4930_v50 = vld [vmem:[#allocation54_spill] sm:$0xff]  ;;  %v4932_v36 = vld [vmem:[#allocation55_spill] sm:$0xff]  ;;  %v1205_v7 = vadd.f32 %v1201_v41, %v1174_v11  ;;  %vm4950_vm12 = vmmov %vm4946_vm9 }
 0x2ed   :  { %vm4931_vm3 = vnez %v4930_v50  ;;  %vm4933_vm1 = vnez %v4932_v36  ;;  %v1204_v3 = vadd.f32 %v1200_v16, %v1173_v25  ;;  %vm4951_vm2 = vmmov %vm4946_vm9  ;;  %v4954_v50 = vld [vmem:[#allocation56_spill] sm:$0xff] }
 0x2ee   :  { %v1191_v42 = vsel %vm4931_vm3, %v1185_v44, 0.0  ;;  %v1192_v48 = vsel %vm4933_vm1, %v1188_v26, 0.0  ;;  %v1830_v26 = vrot.slane %v4241_v33, %v4772_v23  ;;  %vm4955_vm3 = vnez %v4954_v50 }
 0x2ef   :  { %v1211_v54 = vpop.permute.xlu0 %1210  ;;  %v1215_v61 = vpop.permute.xlu1 %1214  ;;  %v1202_v19 = vmul.f32 %v3816_v29, %v1191_v42  ;;  %v1203_v15 = vmul.f32 %v3816_v29, %v1192_v48  ;;  %v4258_v29 = vadd.f32 %v4101_v47, %v3929_v30  ;;  %v4956_v42 = vld [vmem:[#allocation57_spill] sm:$0xff] }
 0x2f0   :  { %v1217_v20 = vsel %vm4934_vm11, %v1211_v54, %v1213_v4  ;;  %v1218_v40 = vsel %vm4935_vm13, %v1209_v18, %v1211_v54  ;;  %v1216_v21 = vsel %vm4940_vm10, %v1213_v4, %v1215_v61  ;;  %v1219_v9 = vsel %vm4941_vm6, %v1215_v61, %v1209_v18  ;;  %v4952_v54 = vld [vmem:[#allocation20_spill] sm:$0xff] }
 0x2f1   :  { %v1220_v14 = vsel %vm4937_vm15, %v1218_v40, 0.0  ;;  %v1221_v8 = vsel %vm4939_vm7, %v1217_v20, 0.0  ;;  %v1222_v22 = vsel %vm4943_vm0, %v1216_v21, 0.0  ;;  %v1175_v18 = vadd.f32 %v1171_v2, %v1144_v56 }
 0x2f2   :  { %v1231_v24 = vmul.f32 %v3820_v52, %v1220_v14  ;;  %v1232_v4 = vmul.f32 %v3820_v52, %v1221_v8  ;;  %v1223_v17 = vsel %vm4945_vm4, %v1219_v9, 0.0  ;;  %v1233_v60 = vmul.f32 %v3820_v52, %v1222_v22 }
 0x2f3   :  { %v1240_v49 = vpop.permute.xlu0 %1239  ;;  %v1242_v55 = vpop.permute.xlu1 %1241  ;;  %v1206_v32 = vadd.f32 %v1202_v19, %v1175_v18  ;;  %v1207_v45 = vadd.f32 %v1203_v15, %v1176_v63  ;;  %v1234_v56 = vmul.f32 %v3820_v52, %v1223_v17  ;;  %vm4953_vm5 = vnez %v4952_v54 }
 0x2f4   :  { %v1249_v59 = vsel %vm4946_vm9, %v1240_v49, %v1242_v55  ;;  %v1235_v1 = vadd.f32 %v1231_v24, %v1204_v3  ;;  %v1236_v46 = vadd.f32 %v1232_v4, %v1205_v7  ;;  %vm4957_vm1 = vnez %v4956_v42 }
 0x2f5   :  { %v1251_v5 = vsel %vm4948_vm8, %v1249_v59, 0.0  ;;  %v1237_v41 = vadd.f32 %v1233_v60, %v1206_v32  ;;  %v1238_v12 = vadd.f32 %v1234_v56, %v1207_v45  ;;  %v1834_v37 = vrot.slane %v4258_v29, %v4772_v23 }
 0x2f6   :  { %v1262_v44 = vmul.f32 %v3749_v34, %v1251_v5  ;;  %v1857_v8 = vrot.slane %v4241_v33, %v4776_v39  ;;  %v1861_v22 = vrot.slane %v4258_v29, %v4776_v39  ;;  %v1892_v5 = vrot.slane %v4258_v29, %v4775_v57 }
 0x2f7   :  { %v1244_v58 = vpop.permute.xlu0 %1243  ;;  %v1246_v2 = vpop.permute.xlu1 %1245  ;;  %vm4964_vm11 = vcmask 1043456  }
 0x2f8   :  { %v4264_v28 = vadd.f32 %v1262_v44, %v1235_v1  ;;  %v1248_v16 = vsel %vm4949_vm14, %v1242_v55, %v1244_v58  ;;  %v1247_v30 = vsel %vm4950_vm12, %v1244_v58, %v1246_v2  ;;  %v1250_v47 = vsel %vm4951_vm2, %v1246_v2, %v1240_v49  ;;  %vm4965_vm13 = vmmov %vm4964_vm11 }
 0x2f9   :  { %v1252_v61 = vsel %vm4953_vm5, %v1248_v16, 0.0  ;;  %v1253_v52 = vsel %vm4955_vm3, %v1247_v30, 0.0  ;;  %v1254_v36 = vsel %vm4957_vm1, %v1250_v47, 0.0  ;;  %v1919_v1 = vrot.slane %v4241_v33, %v4777_v62  ;;  %vm4966_vm15 = vmmov %vm4964_vm11 }
 0x2fa   :  { %v1279_v48 = vrot.slane %v4264_v28, %v4772_v23  ;;  %v1306_v20 = vrot.slane %v4264_v28, %v4776_v39  ;;  %v1263_v40 = vmul.f32 %v3749_v34, %v1252_v61  ;;  %v1264_v27 = vmul.f32 %v3749_v34, %v1253_v52  ;;  %vm4967_vm7 = vmmov %vm4964_vm11 }
 0x2fb   :  { %v1265_v14 = vmul.f32 %v3749_v34, %v1254_v36  ;;  %v1337_v11 = vrot.slane %v4264_v28, %v4775_v57  ;;  %v1888_v34 = vrot.slane %v4241_v33, %v4775_v57  ;;  %v1368_v45 = vrot.slane %v4264_v28, %v4777_v62  ;;  %vm4968_vm10 = vmmov %vm4967_vm7 }
 0x2fc   :  { %v1267_v21 = vadd.f32 %v1263_v40, %v1236_v46  ;;  %v1268_v9 = vadd.f32 %v1264_v27, %v1237_v41  ;;  %v1292_v25 = vmul.f32 %v1279_v48, %v4049_v53  ;;  %v1319_v24 = vmul.f32 %v1306_v20, %v4047_v31  ;;  %vm4969_vm6 = vmmov %vm4967_vm7 }
 0x2fd   :  { %v1269_v10 = vadd.f32 %v1265_v14, %v1238_v12  ;;  %v1350_v35 = vmul.f32 %v1337_v11, %v4051_v51  ;;  %v1923_v46 = vrot.slane %v4258_v29, %v4777_v62  ;;  %v4958_v52 = vrot.slane %v3952_v43, %v4776_v39  ;;  %vm4970_vm0 = vmmov %vm4969_vm6 }
 0x2fe   :  { %v1283_v19 = vrot.slane %v1267_v21, %v4772_v23  ;;  %v1310_v15 = vrot.slane %v1267_v21, %v4776_v39  ;;  %v1287_v4 = vrot.slane %v1268_v9, %v4772_v23  ;;  %v1314_v49 = vrot.slane %v1268_v9, %v4776_v39  ;;  %vm4971_vm4 = vmmov %vm4970_vm0 }
 0x2ff   :  { %v1291_v55 = vrot.slane %v1269_v10, %v4772_v23  ;;  %v1318_v18 = vrot.slane %v1269_v10, %v4776_v39  ;;  %v1323_v3 = vadd.f32 %v1319_v24, %v1292_v25  ;;  %v1341_v0 = vrot.slane %v1267_v21, %v4775_v57  ;;  %vm4972_vm9 = vmmov %vm4970_vm0 }
 0x300   :  { %v1293_v17 = vmul.f32 %v1283_v19, %v4049_v53  ;;  %v1294_v59 = vmul.f32 %v1287_v4, %v4049_v53  ;;  %v1320_v63 = vmul.f32 %v1310_v15, %v4047_v31  ;;  %v1321_v7 = vmul.f32 %v1314_v49, %v4047_v31  ;;  %vm4973_vm8 = vmmov %vm4970_vm0 }
 0x301   :  { %v1345_v60 = vrot.slane %v1268_v9, %v4775_v57  ;;  %v1351_v32 = vmul.f32 %v1341_v0, %v4051_v51  ;;  %v1354_v58 = vadd.f32 %v1350_v35, %v1323_v3  ;;  %v1295_v2 = vmul.f32 %v1291_v55, %v4049_v53  ;;  %vm4974_vm14 = vmmov %vm4970_vm0 }
 0x302   :  { %v1324_v44 = vadd.f32 %v1320_v63, %v1293_v17  ;;  %v1325_v56 = vadd.f32 %v1321_v7, %v1294_v59  ;;  %v1322_v16 = vmul.f32 %v1318_v18, %v4047_v31  ;;  %v1372_v41 = vrot.slane %v1267_v21, %v4777_v62  ;;  %vm4975_vm12 = vmmov %vm4970_vm0 }
 0x303   :  { %v1376_v54 = vrot.slane %v1268_v9, %v4777_v62  ;;  %v1380_v61 = vrot.slane %v1269_v10, %v4777_v62  ;;  %v1349_v50 = vrot.slane %v1269_v10, %v4775_v57  ;;  %v1352_v28 = vmul.f32 %v1345_v60, %v4051_v51  ;;  %vm4976_vm2 = vmmov %vm4970_vm0 }
 0x304   :  { %v1817_v30 = vpop.permute.xlu0 %1816  ;;  %v1844_v47 = vpop.permute.xlu1 %1843  ;;  %v4959_v36 = vrot.slane %v3954_v6, %v4776_v39  ;;  %v4960_v39 = vrot.slane %v3952_v43, %v4775_v57  ;;  %v4962_v63 = vrot.slane %v3952_v43, %v4777_v62  ;;  %v4963_v60 = vrot.slane %v3954_v6, %v4777_v62  ;;  %vm4977_vm5 = vmmov %vm4970_vm0 }
 0x305   :  { %v1835_v29 = vmul.f32 %v1822_v38, %v1817_v30  ;;  %v1836_v53 = vmul.f32 %v1826_v13, %v1817_v30  ;;  %v1837_v31 = vmul.f32 %v1830_v26, %v1817_v30  ;;  %v1862_v42 = vmul.f32 %v4958_v52, %v1844_v47  ;;  %vm4978_vm3 = vmmov %vm4970_vm0 }
 0x306   :  { %v1863_v48 = vmul.f32 %v4959_v36, %v1844_v47  ;;  %v1864_v20 = vmul.f32 %v1857_v8, %v1844_v47  ;;  %v1355_v38 = vadd.f32 %v1351_v32, %v1324_v44  ;;  %v1838_v40 = vmul.f32 %v1834_v37, %v1817_v30  ;;  %vm4979_vm1 = vmmov %vm4970_vm0 }
 0x307   :  { %v1865_v27 = vmul.f32 %v1861_v22, %v1844_v47  ;;  %v1356_v12 = vadd.f32 %v1352_v28, %v1325_v56  ;;  %v1326_v13 = vadd.f32 %v1322_v16, %v1295_v2  ;;  %v1866_v14 = vadd.f32 %v1862_v42, %v1835_v29 }
 0x308   :  { %v1867_v21 = vadd.f32 %v1863_v48, %v1836_v53  ;;  %v1868_v23 = vadd.f32 %v1864_v20, %v1837_v31  ;;  %v1363_v33 = vpop.permute.xlu0 %1362  ;;  %v1875_v26 = vpop.permute.xlu1 %1874  ;;  %v1353_v9 = vmul.f32 %v1349_v50, %v4051_v51  ;;  %v4961_v37 = vrot.slane %v3954_v6, %v4775_v57 }
 0x309   :  { %v1381_v25 = vmul.f32 %v1368_v45, %v1363_v33  ;;  %v1382_v24 = vmul.f32 %v1372_v41, %v1363_v33  ;;  %v1383_v10 = vmul.f32 %v1376_v54, %v1363_v33  ;;  %v1384_v11 = vmul.f32 %v1380_v61, %v1363_v33 }
 0x30a   :  { %v1893_v8 = vmul.f32 %v4960_v39, %v1875_v26  ;;  %v1894_v22 = vmul.f32 %v4961_v37, %v1875_v26  ;;  %v1895_v19 = vmul.f32 %v1888_v34, %v1875_v26  ;;  %v1896_v15 = vmul.f32 %v1892_v5, %v1875_v26 }
 0x30b   :  { %v1869_v4 = vadd.f32 %v1865_v27, %v1838_v40  ;;  %v1385_v49 = vadd.f32 %v1381_v25, %v1354_v58  ;;  %v1386_v55 = vadd.f32 %v1382_v24, %v1355_v38  ;;  %v1387_v18 = vadd.f32 %v1383_v10, %v1356_v12 }
 0x30c   :  { %v1897_v3 = vadd.f32 %v1893_v8, %v1866_v14  ;;  %v1898_v51 = vadd.f32 %v1894_v22, %v1867_v21  ;;  %v1899_v0 = vadd.f32 %v1895_v19, %v1868_v23  ;;  %v1906_v17 = vpop.permute.xlu0 %1905  ;;  %v1357_v59 = vadd.f32 %v1353_v9, %v1326_v13 }
 0x30d   :  { %v1924_v7 = vmul.f32 %v4962_v63, %v1906_v17  ;;  %v1925_v57 = vmul.f32 %v4963_v60, %v1906_v17  ;;  %v1926_v35 = vmul.f32 %v1919_v1, %v1906_v17  ;;  %v1927_v34 = vmul.f32 %v1923_v46, %v1906_v17 }
 0x30e   :  { %v1900_v5 = vadd.f32 %v1896_v15, %v1869_v4  ;;  %v1388_v44 = vadd.f32 %v1384_v11, %v1357_v59  ;;  %v1389_v32 = vsel %vm4964_vm11, %v1385_v49, 0.0  ;;  %v1390_v45 = vsel %vm4965_vm13, %v1386_v55, 0.0 }
 0x30f   :  { %v1928_v56 = vadd.f32 %v1924_v7, %v1897_v3  ;;  %v1929_v58 = vadd.f32 %v1925_v57, %v1898_v51  ;;  %v1930_v2 = vadd.f32 %v1926_v35, %v1899_v0  ;;  %v1391_v16 = vadd.f32 %v1390_v45, %v1389_v32 }
 0x310   :  { %v1392_v30 = vsel %vm4966_vm15, %v1387_v18, 0.0  ;;  %v1931_v47 = vadd.f32 %v1927_v34, %v1900_v5  ;;  %v1394_v6 = vsel %vm4969_vm6, %v1388_v44, 0.0  ;;  %v1424_v57 = vstv %s2040_s5 }
 0x311   :  { %v1393_v43 = vadd.f32 %v1392_v30, %v1391_v16  ;;  %v1932_v41 = vsel %vm4967_vm7, %v1928_v56, 0.0  ;;  %v1933_v62 = vsel %vm4968_vm10, %v1929_v58, 0.0  ;;  %v1935_v54 = vsel %vm4970_vm0, %v1930_v2, 0.0 }
 0x312   :  { %v1934_v1 = vadd.f32 %v1933_v62, %v1932_v41  ;;  %v1937_v50 = vsel %vm4971_vm4, %v1931_v47, 0.0  ;;  %v1967_v32 = vstv %s2052_s7 }
 0x313   :  { %v1395_v46 = vadd.f32 %v1394_v6, %v1393_v43 }
 0x314   :  { %v1936_v61 = vadd.f32 %v1935_v54, %v1934_v1 }
 0x315   :  { %1396 = vadd.xlane.f32.xlu1 %v1395_v46 }
 0x316   :  { %v1938_v29 = vadd.f32 %v1937_v50, %v1936_v61  ;;  %v4980_v50 = vld [vmem:[#allocation44_spill] sm:$0xff] }
 0x318   :  { %1939 = vadd.xlane.f32.xlu0 %v1938_v29 }
 0x39e   :  { %v1397_v53 = vpop.xlane.xlu1 %1396 }
 0x39f   :  { %v1398_v31 = vmul.f32 0.001953125, %v1397_v53  ;;  %v4981_v53 = vld [vmem:[#allocation35_spill] sm:$0xff] }
 0x3a1   :  { %v1399_v28 = vsub.f32 %v1385_v49, %v1398_v31  ;;  %v1400_v52 = vsub.f32 %v1386_v55, %v1398_v31  ;;  %v1401_v42 = vsub.f32 %v1387_v18, %v1398_v31  ;;  %v1402_v36 = vsub.f32 %v1388_v44, %v1398_v31  ;;  %v1940_v48 = vpop.xlane.xlu0 %1939 }
 0x3a2   :  { %v1941_v20 = vmul.f32 0.001953125, %v1940_v48 }
 0x3a3   :  { %v1403_v38 = vmul.f32 %v1399_v28, %v1399_v28  ;;  %v1404_v40 = vmul.f32 %v1400_v52, %v1400_v52  ;;  %v1405_v27 = vmul.f32 %v1401_v42, %v1401_v42  ;;  %v1406_v23 = vmul.f32 %v1402_v36, %v1402_v36 }
 0x3a4   :  { %v1942_v12 = vsub.f32 %v1928_v56, %v1941_v20  ;;  %v1943_v13 = vsub.f32 %v1929_v58, %v1941_v20  ;;  %v1944_v14 = vsub.f32 %v1930_v2, %v1941_v20  ;;  %v1945_v21 = vsub.f32 %v1931_v47, %v1941_v20 }
 0x3a5   :  { %v1407_v33 = vsel %vm4972_vm9, %v1403_v38, 0.0  ;;  %v1408_v26 = vsel %vm4973_vm8, %v1404_v40, 0.0  ;;  %v1410_v11 = vsel %vm4974_vm14, %v1405_v27, 0.0  ;;  %v1412_v19 = vsel %vm4977_vm5, %v1406_v23, 0.0 }
 0x3a6   :  { %v1946_v9 = vmul.f32 %v1942_v12, %v1942_v12  ;;  %v1947_v25 = vmul.f32 %v1943_v13, %v1943_v13  ;;  %v1409_v24 = vadd.f32 %v1408_v26, %v1407_v33  ;;  %v1948_v10 = vmul.f32 %v1944_v14, %v1944_v14 }
 0x3a7   :  { %v1949_v8 = vmul.f32 %v1945_v21, %v1945_v21 }
 0x3a8   :  { %v1411_v39 = vadd.f32 %v1410_v11, %v1409_v24  ;;  %v1950_v37 = vsel %vm4975_vm12, %v1946_v9, 0.0  ;;  %v1951_v22 = vsel %vm4976_vm2, %v1947_v25, 0.0  ;;  %v1953_v49 = vsel %vm4978_vm3, %v1948_v10, 0.0 }
 0x3a9   :  { %v1952_v15 = vadd.f32 %v1951_v22, %v1950_v37  ;;  %v1955_v18 = vsel %vm4979_vm1, %v1949_v8, 0.0 }
 0x3aa   :  { %v1413_v4 = vadd.f32 %v1412_v19, %v1411_v39 }
 0x3ab   :  { %v1954_v55 = vadd.f32 %v1953_v49, %v1952_v15 }
 0x3ac   :  { %1414 = vadd.xlane.f32.xlu0 %v1413_v4 }
 0x3ad   :  { %v1956_v3 = vadd.f32 %v1955_v18, %v1954_v55 }
 0x3af   :  { %1957 = vadd.xlane.f32.xlu1 %v1956_v3 }
 0x435   :  { %v1415_v51 = vpop.xlane.xlu0 %1414 }
 0x436   :  { %v1416_v0 = vmul.f32 0.001953125, %v1415_v51 }
 0x438   :  { %v1417_v17 = vadd.f32 1e-05, %v1416_v0  ;;  %v1958_v59 = vpop.xlane.xlu1 %1957 }
 0x439   :  { %v1959_v63 = vmul.f32 0.001953125, %v1958_v59 }
 0x43a   :  { %2087 = vrsqrt.f32 %v1417_v17 }
 0x43b   :  { %v1960_v7 = vadd.f32 1e-05, %v1959_v63 }
 0x43d   :  { %2089 = vrsqrt.f32 %v1960_v7 }
 0x447   :  { %v2088_v60 = vpop.eup %2087 }
 0x448   :  { %v1419_v35 = vmul.f32 %v2088_v60, %v1399_v28  ;;  %v1420_v34 = vmul.f32 %v2088_v60, %v1400_v52  ;;  %v1421_v5 = vmul.f32 %v2088_v60, %v1401_v42  ;;  %v1422_v44 = vmul.f32 %v2088_v60, %v1402_v36 }
 0x44a   :  { %v2090_v45 = vpop.eup %2089  ;;  %v1425_v56 = vmul.f32 %v1424_v57, %v1419_v35  ;;  %v1426_v58 = vmul.f32 %v1424_v57, %v1420_v34  ;;  %v1427_v2 = vmul.f32 %v1424_v57, %v1421_v5  ;;  %v1428_v16 = vmul.f32 %v1424_v57, %v1422_v44 }
 0x44b   :  { %v1962_v30 = vmul.f32 %v2090_v45, %v1942_v12  ;;  %v1963_v43 = vmul.f32 %v2090_v45, %v1943_v13  ;;  %v1964_v47 = vmul.f32 %v2090_v45, %v1944_v14  ;;  %v1965_v41 = vmul.f32 %v2090_v45, %v1945_v21 }
 0x44c   :  { %v1433_v62 = vcombine.low %v1425_v56, %v1426_v58  ;;  %v1434_v6 = vcombine.low %v1427_v2, %v1428_v16 }
 0x44d   :  { %v1968_v1 = vmul.f32 %v1967_v32, %v1962_v30  ;;  %v1969_v46 = vmul.f32 %v1967_v32, %v1963_v43  ;;  %v1970_v54 = vmul.f32 %v1967_v32, %v1964_v47  ;;  %v1971_v61 = vmul.f32 %v1967_v32, %v1965_v41 }
 0x44e   :  { %v1437_v29 = vadd.f32 %v1433_v62, %v4980_v50  ;;  %v1438_v31 = vadd.f32 %v1434_v6, %v4981_v53 }
 0x44f   :  { %v1976_v28 = vcombine.low %v1968_v1, %v1969_v46  ;;  %v1977_v52 = vcombine.low %v1970_v54, %v1971_v61 }
 0x451   :  { %v1980_v42 = vadd.f32 %v1976_v28, %v1437_v29  ;;  %v1981_v36 = vadd.f32 %v1977_v52, %v1438_v31 }
 0x453   :  { %1982 = vst [vmem:[#allocation5] sm:$0xff] %v1980_v42  ;;  %1983 = vst [vmem:[#allocation5 + $0x8] sm:$0xff] %v1981_v36 }
 0x454   :  { %2115 = shalt.err (!%p2112_p9)
}
 0x455   :  { %1993 = dma.vmem_to_hbm [thread:$0]  %s1991_s1, 256, %s4383_s8, [#allocation3]  }
 0x456   :  { %2126 = dma.done.wait [#allocation3], 256  }
 0x457   :  { %2127 = vsyncadd [#allocation3], 4294967040 }
 0x458   :  { %1997 = vsyncpa [#allocation3], 1 }
 0x459   :  { %1998 = vsyncpa [#allocation4], 1 }

</bundles_post_ra>
